<compile_context>
chip_gen: v7x
topology: tpu7x:2x2x1
jax: 0.10.0
libtpu: 0.0.40
codegen_flags: <defaults>
</compile_context>

<pallas_src>
import functools

import jax
import jax.numpy as jnp
import numpy as np
from jax import lax
from jax.experimental import pallas as pl
from jax.experimental.pallas import tpu as pltpu


def _round_up(x, m):
    return (x + m - 1) // m * m


def _multi_ncc_kernel(ip_ref, jp_ref, bw_ref, bh_ref, out_ref, cs_ref, *,
                      wins, p_max, D, TD, Hp_pad, Wp_pad, eps):
    """Grid = (batch, d_tile).  Per step: extend the running D-cumsum of the 5
    lane-stacked statistics (I, J, I*I, J*J, I*J) by this tile's TD padded
    slabs, then emit NCC partial sums for the TD output slabs whose windows
    are now fully covered (outputs lag the input stream by one tile)."""
    t = pl.program_id(1)
    nw = len(wins)
    cur = t % 2                       # cumsum slot of the current tile
    prv = 1 - cur                     # cumsum slot of the previous tile
    cbase = cur * (TD + 1)
    pbase = prv * (TD + 1)
    row_shape = (Hp_pad, 5 * Wp_pad)

    # ---- per-batch init: zero the cumsum carry and the output block --------
    @pl.when(t == 0)
    def _():
        cs_ref[pbase + TD] = jnp.zeros(row_shape, jnp.float32)
        out_ref[0] = jnp.zeros((8, 128), jnp.float32)

    # ---- stage 1: extend the running D cumsum over this tile's TD slabs ----
    # cs_ref[cbase + r] == CS(t*TD + r), where CS(x) = sum of the lane-stacked
    # stats over padded D slabs [0, x).  One slab add per D slab covers all
    # five statistics at once.
    cs_ref[cbase] = cs_ref[pbase + TD]            # carry CS(t*TD)
    for i in range(TD):
        Ii = ip_ref[0, i]
        Ji = jp_ref[0, i]
        stacked = jnp.concatenate([Ii, Ji, Ii * Ii, Ji * Ji, Ii * Ji], axis=-1)
        cs_ref[cbase + i + 1] = cs_ref[cbase + i] + stacked

    def cs_at(idx):
        # CS(idx) for an absolute padded-D index in [(t-1)*TD, (t+1)*TD].
        rel = idx - (t - 1) * TD
        flat = jnp.where(rel <= TD, pbase + rel, cbase + (rel - TD))
        return cs_ref[flat]                       # (Hp_pad, 5*Wp_pad)

    # ---- stage 2: outputs for unpadded D slabs [(t-1)*TD, t*TD) ------------
    @pl.when(t > 0)
    def _():
        def body(j, acc):
            d = (t - 1) * TD + j
            valid = d < D
            new = []
            for wi, w in enumerate(wins):
                off = p_max - w // 2
                a = d + off
                # D box sum of all 5 stats: one cumsum difference.
                S = cs_at(a + w) - cs_at(a)
                # H box sum: ONE MXU matmul batched over the 5 lane-stacked
                # stats (left-multiply first: fewer MACs since HOUT < Hp_pad).
                T1 = jnp.dot(bh_ref[wi], S, preferred_element_type=jnp.float32)
                BW = bw_ref[wi]
                # W box sum per stat (128-aligned lane slices of T1).
                I_s, J_s, I2_s, J2_s, IJ_s = [
                    jnp.dot(T1[:, k * Wp_pad:(k + 1) * Wp_pad], BW,
                            preferred_element_type=jnp.float32)
                    for k in range(5)]
                inv_ws = 1.0 / float(w ** 3)
                cross = IJ_s - I_s * J_s * inv_ws
                I_var = I2_s - I_s * I_s * inv_ws
                J_var = J2_s - J_s * J_s * inv_ws
                cc = (cross * cross) * pl.reciprocal(I_var * J_var + eps,
                                                     approx=True)
                # rows >= H / lanes >= W are exact zeros (zero rows/cols in
                # BH/BW), so the full-slab sum adds nothing spurious.
                new.append(acc[wi] + jnp.where(valid, jnp.sum(cc), 0.0))
            return tuple(new)

        parts = lax.fori_loop(0, TD, body, (jnp.float32(0.0),) * nw)

        rows = lax.broadcasted_iota(jnp.int32, (8, 128), 0)
        blk = jnp.zeros((8, 128), jnp.float32)
        for wi in range(nw):
            blk = blk + jnp.where(rows == wi, parts[wi], 0.0)
        out_ref[0] = out_ref[0] + blk


def multi_window_loss(I, J, win=(11, 9, 7), gamma=0.5, d_tile=16):
    """Pallas TPU forward of multi_window_loss: [NCC_w0, g*NCC_w1, g^2*NCC_w2]."""
    eps = 1e-3   # NCC default (multi_window_loss does not forward its own eps)
    N, C, D, H, W = I.shape
    assert C == 1, "NCC conv weight is (1,1,w,w,w) -> single channel"
    nw = len(win)
    assert nw <= 8 and all(w % 2 == 1 for w in win)

    p_max = max(win) // 2
    win_max = max(win)

    # D is streamed in tiles of TD padded slabs; any box window spans at most
    # two consecutive tiles, which requires TD >= win_max - 1.
    TD = max(int(d_tile), win_max - 1)
    n_tiles = -(-D // TD) + 1        # +1: outputs lag the input by one tile
    Dp_round = n_tiles * TD
    assert Dp_round >= D + 2 * p_max

    Hp, Wp = H + 2 * p_max, W + 2 * p_max
    Hp_pad = _round_up(Hp, 8)        # sublane aligned
    Wp_pad = _round_up(Wp, 128)      # lane dense
    HOUT = _round_up(H, 8)
    WOUT = _round_up(W, 128)

    pad_cfg = ((0, 0), (p_max, Dp_round - D - p_max),
               (p_max, p_max + Hp_pad - Hp), (p_max, p_max + Wp_pad - Wp))
    Ip = jnp.pad(I[:, 0].astype(jnp.float32), pad_cfg)
    Jp = jnp.pad(J[:, 0].astype(jnp.float32), pad_cfg)

    # Banded all-ones matrices implementing the "same"-padded box sums along W
    # (right-multiply) and H (left-multiply).  Rows/cols outside the valid
    # output range are zero, so padded lanes/sublanes contribute exactly 0.
    BW_np = np.zeros((nw, Wp_pad, WOUT), np.float32)
    BH_np = np.zeros((nw, HOUT, Hp_pad), np.float32)
    for wi, w in enumerate(win):
        off = p_max - w // 2
        for j in range(W):
            BW_np[wi, off + j:off + j + w, j] = 1.0
        for i in range(H):
            BH_np[wi, i, off + i:off + i + w] = 1.0
    BW = jnp.asarray(BW_np)
    BH = jnp.asarray(BH_np)

    # VMEM budget derived from the chip's physical capacity (~48-56 MiB on
    # v7x, ~108 MiB on v5e/v6e), instead of a flat 64 MiB request.
    try:
        phys = pltpu.get_tpu_info().vmem_capacity_bytes
    except Exception:
        phys = 64 * 1024 * 1024
    vmem_limit = int(min(phys * 0.85, 112 * 1024 * 1024))

    kernel = functools.partial(_multi_ncc_kernel, wins=tuple(win), p_max=p_max,
                               D=D, TD=TD, Hp_pad=Hp_pad, Wp_pad=Wp_pad, eps=eps)
    out = pl.pallas_call(
        kernel,
        out_shape=jax.ShapeDtypeStruct((N, 8, 128), jnp.float32),
        grid_spec=pltpu.PrefetchScalarGridSpec(
            num_scalar_prefetch=0,
            grid=(N, n_tiles),
            in_specs=[
                pl.BlockSpec((1, TD, Hp_pad, Wp_pad), lambda b, t: (b, t, 0, 0)),
                pl.BlockSpec((1, TD, Hp_pad, Wp_pad), lambda b, t: (b, t, 0, 0)),
                # band matrices: constant index -> fetched once, stay resident
                pl.BlockSpec((nw, Wp_pad, WOUT), lambda b, t: (0, 0, 0)),
                pl.BlockSpec((nw, HOUT, Hp_pad), lambda b, t: (0, 0, 0)),
            ],
            out_specs=pl.BlockSpec((1, 8, 128), lambda b, t: (b, 0, 0)),
            scratch_shapes=[
                # two-slot running cumsum of the 5 lane-stacked stats
                pltpu.VMEM((2 * (TD + 1), Hp_pad, 5 * Wp_pad), jnp.float32),
            ],
        ),
        compiler_params=pltpu.CompilerParams(
            # batch axis parallel (megacore / v7x's 2 TCs); the tile axis is a
            # genuine sequential carry (cumsum + accumulation) -> arbitrary.
            dimension_semantics=("parallel", "arbitrary"),
            vmem_limit_bytes=vmem_limit,
        ),
    )(Ip, Jp, BW, BH)

    count = float(N * C * D * H * W)
    sums = jnp.sum(out[:, :nw, 0], axis=0)       # (nw,) sum of cc per window
    return [(-sums[i] / count) * (gamma ** i) for i in range(nw)]


# ------------------------- pure-JAX reference -------------------------------
def _ncc_ref(I, J, win, eps=1e-3):
    p = win // 2
    weight = jnp.ones((1, 1, win, win, win), jnp.float32)
    dn = lax.conv_dimension_numbers(I.shape, weight.shape,
                                    ("NCDHW", "OIDHW", "NCDHW"))

    def conv(x):
        return lax.conv_general_dilated(x, weight, (1, 1, 1), [(p, p)] * 3,
                                        dimension_numbers=dn,
                                        precision=lax.Precision.HIGHEST)

    I_sum, J_sum = conv(I), conv(J)
    I2_sum, J2_sum, IJ_sum = conv(I * I), conv(J * J), conv(I * J)
    ws = float(win ** 3)
    u_I, u_J = I_sum / ws, J_sum / ws
    cross = IJ_sum - u_J * I_sum - u_I * J_sum + u_I * u_J * ws
    I_var = I2_sum - 2 * u_I * I_sum + u_I * u_I * ws
    J_var = J2_sum - 2 * u_J * J_sum + u_J * u_J * ws
    cc = cross * cross / (I_var * J_var + eps)
    return -jnp.mean(cc)


if __name__ == "__main__":
    gamma = 0.5
    key = jax.random.PRNGKey(0)

    # shape 1: single D tile feeding the output tile (D < TD)
    # shape 2: multiple D tiles -> exercises the streamed cumsum carry and
    #          windows straddling a tile boundary
    for shape in [(2, 1, 8, 12, 12), (2, 1, 20, 12, 12)]:
        k1, k2 = jax.random.split(jax.random.fold_in(key, shape[2]))
        I = jax.random.uniform(k1, shape, jnp.float32, minval=-1.0, maxval=1.0)
        J = jax.random.uniform(k2, shape, jnp.float32, minval=-1.0, maxval=1.0)

        outs = multi_window_loss(I, J)
        outs = [jax.block_until_ready(o) for o in outs]

        for i, w in enumerate((11, 9, 7)):
            ref = _ncc_ref(I, J, w) * (gamma ** i)
            np.testing.assert_allclose(np.asarray(outs[i]), np.asarray(ref),
                                       rtol=5e-3, atol=1e-5)

    print("KERNEL_OK")
</pallas_src>

<mosaic_0001>
module attributes {stable_mosaic.version = 11 : i64} {
  func.func @_multi_ncc_kernel(%arg0: i32, %arg1: i32, %arg2: memref<1x16x24x128xf32, #tpu.memory_space<vmem>>, %arg3: memref<1x16x24x128xf32, #tpu.memory_space<vmem>>, %arg4: memref<3x128x128xf32, #tpu.memory_space<vmem>>, %arg5: memref<3x16x24xf32, #tpu.memory_space<vmem>>, %arg6: memref<1x8x128xf32, #tpu.memory_space<vmem>>, %arg7: memref<34x24x640xf32, #tpu.memory_space<vmem>>) attributes {dimension_semantics = [#tpu.dimension_semantics<parallel>, #tpu.dimension_semantics<arbitrary>], iteration_bounds = array<i64: 2, 2>, scalar_prefetch = 0 : i64, scratch_operands = 1 : i64, tpu.core_type = #tpu.core_type<tc>, window_params = [{transform_indices = @transform_0, window_bounds = array<i64: 1, 16, 24, 128>}, {transform_indices = @transform_1, window_bounds = array<i64: 1, 16, 24, 128>}, {pipeline_mode = #tpu.pipeline_mode<synchronous>, transform_indices = @transform_2, window_bounds = array<i64: 3, 128, 128>}, {pipeline_mode = #tpu.pipeline_mode<synchronous>, transform_indices = @transform_3, window_bounds = array<i64: 3, 16, 24>}, {transform_indices = @transform_4, window_bounds = array<i64: 1, 8, 128>}]} {
    %c2_i32 = arith.constant 2 : i32
    %c0_i32 = arith.constant 0 : i32
    %0 = arith.cmpi eq, %c2_i32, %c0_i32 : i32
    %c1_i32 = arith.constant 1 : i32
    %1 = arith.select %0, %c1_i32, %c2_i32 : i32
    %2 = arith.remsi %arg1, %1 : i32
    %c0_i32_0 = arith.constant 0 : i32
    %3 = arith.cmpi ne, %2, %c0_i32_0 : i32
    %c0_i32_1 = arith.constant 0 : i32
    %4 = arith.cmpi slt, %2, %c0_i32_1 : i32
    %c0_i32_2 = arith.constant 0 : i32
    %5 = arith.cmpi slt, %1, %c0_i32_2 : i32
    %6 = arith.xori %4, %5 : i1
    %7 = arith.andi %6, %3 : i1
    %8 = arith.addi %2, %1 : i32
    %9 = arith.select %7, %8, %2 : i32
    %c1_i32_3 = arith.constant 1 : i32
    %10 = arith.subi %c1_i32_3, %9 : i32
    %c17_i32 = arith.constant 17 : i32
    %11 = arith.muli %9, %c17_i32 : i32
    %c17_i32_4 = arith.constant 17 : i32
    %12 = arith.muli %10, %c17_i32_4 : i32
    %c0_i32_5 = arith.constant 0 : i32
    %13 = arith.cmpi eq, %arg1, %c0_i32_5 : i32
    %14 = arith.extui %13 : i1 to i32
    %c0_i32_6 = arith.constant 0 : i32
    %15 = arith.cmpi ne, %14, %c0_i32_6 : i32
    scf.if %15 {
      %cst = arith.constant 0.000000e+00 : f32
      %331 = vector.broadcast %cst : f32 to vector<24x640xf32>
      %c16_i32_224 = arith.constant 16 : i32
      %332 = arith.addi %12, %c16_i32_224 : i32
      %333 = arith.index_cast %332 : i32 to index
      %c0_225 = arith.constant 0 : index
      %c0_226 = arith.constant 0 : index
      %334 = vector.load %arg7[%333, %c0_225, %c0_226] : memref<34x24x640xf32, #tpu.memory_space<vmem>>, vector<1x24x640xf32>
      %335 = vector.shape_cast %334 : vector<1x24x640xf32> to vector<24x640xf32>
      %336 = vector.shape_cast %331 : vector<24x640xf32> to vector<1x24x640xf32>
      tpu.vector_store %arg7[%333, %c0_225, %c0_226], %336 {strides = array<i32>} : memref<34x24x640xf32, #tpu.memory_space<vmem>>, vector<1x24x640xf32>,
      %cst_227 = arith.constant 0.000000e+00 : f32
      %337 = vector.broadcast %cst_227 : f32 to vector<8x128xf32>
      %c0_228 = arith.constant 0 : index
      %c0_229 = arith.constant 0 : index
      %c0_230 = arith.constant 0 : index
      %338 = vector.load %arg6[%c0_228, %c0_229, %c0_230] : memref<1x8x128xf32, #tpu.memory_space<vmem>>, vector<1x8x128xf32>
      %339 = vector.shape_cast %338 : vector<1x8x128xf32> to vector<8x128xf32>
      %340 = vector.shape_cast %337 : vector<8x128xf32> to vector<1x8x128xf32>
      tpu.vector_store %arg6[%c0_228, %c0_229, %c0_230], %340 {strides = array<i32>} : memref<1x8x128xf32, #tpu.memory_space<vmem>>, vector<1x8x128xf32>,
    } else {
    }
    %c16_i32 = arith.constant 16 : i32
    %16 = arith.addi %12, %c16_i32 : i32
    %17 = arith.index_cast %16 : i32 to index
    %c0 = arith.constant 0 : index
    %c0_7 = arith.constant 0 : index
    %18 = vector.load %arg7[%17, %c0, %c0_7] : memref<34x24x640xf32, #tpu.memory_space<vmem>>, vector<1x24x640xf32>
    %19 = vector.shape_cast %18 : vector<1x24x640xf32> to vector<24x640xf32>
    %20 = arith.index_cast %11 : i32 to index
    %c0_8 = arith.constant 0 : index
    %c0_9 = arith.constant 0 : index
    %21 = vector.load %arg7[%20, %c0_8, %c0_9] : memref<34x24x640xf32, #tpu.memory_space<vmem>>, vector<1x24x640xf32>
    %22 = vector.shape_cast %21 : vector<1x24x640xf32> to vector<24x640xf32>
    %23 = vector.shape_cast %19 : vector<24x640xf32> to vector<1x24x640xf32>
    tpu.vector_store %arg7[%20, %c0_8, %c0_9], %23 {strides = array<i32>} : memref<34x24x640xf32, #tpu.memory_space<vmem>>, vector<1x24x640xf32>,
    %c0_10 = arith.constant 0 : index
    %c0_11 = arith.constant 0 : index
    %c0_12 = arith.constant 0 : index
    %c0_13 = arith.constant 0 : index
    %24 = vector.load %arg2[%c0_10, %c0_11, %c0_12, %c0_13] : memref<1x16x24x128xf32, #tpu.memory_space<vmem>>, vector<1x1x24x128xf32>
    %25 = vector.shape_cast %24 : vector<1x1x24x128xf32> to vector<24x128xf32>
    %c0_14 = arith.constant 0 : index
    %c0_15 = arith.constant 0 : index
    %c0_16 = arith.constant 0 : index
    %c0_17 = arith.constant 0 : index
    %26 = vector.load %arg3[%c0_14, %c0_15, %c0_16, %c0_17] : memref<1x16x24x128xf32, #tpu.memory_space<vmem>>, vector<1x1x24x128xf32>
    %27 = vector.shape_cast %26 : vector<1x1x24x128xf32> to vector<24x128xf32>
    %28 = arith.mulf %25, %25 : vector<24x128xf32>
    %29 = arith.mulf %27, %27 : vector<24x128xf32>
    %30 = arith.mulf %25, %27 : vector<24x128xf32>
    %31 = tpu.concatenate %25, %27, %28, %29, %30 in 1 : vector<24x128xf32>, vector<24x128xf32>, vector<24x128xf32>, vector<24x128xf32>, vector<24x128xf32> -> vector<24x640xf32>
    %c0_i32_18 = arith.constant 0 : i32
    %32 = arith.addi %11, %c0_i32_18 : i32
    %33 = arith.index_cast %32 : i32 to index
    %c0_19 = arith.constant 0 : index
    %c0_20 = arith.constant 0 : index
    %34 = vector.load %arg7[%33, %c0_19, %c0_20] : memref<34x24x640xf32, #tpu.memory_space<vmem>>, vector<1x24x640xf32>
    %35 = vector.shape_cast %34 : vector<1x24x640xf32> to vector<24x640xf32>
    %36 = arith.addf %35, %31 : vector<24x640xf32>
    %c0_i32_21 = arith.constant 0 : i32
    %37 = arith.addi %11, %c0_i32_21 : i32
    %c1_i32_22 = arith.constant 1 : i32
    %38 = arith.addi %37, %c1_i32_22 : i32
    %39 = arith.index_cast %38 : i32 to index
    %c0_23 = arith.constant 0 : index
    %c0_24 = arith.constant 0 : index
    %40 = vector.load %arg7[%39, %c0_23, %c0_24] : memref<34x24x640xf32, #tpu.memory_space<vmem>>, vector<1x24x640xf32>
    %41 = vector.shape_cast %40 : vector<1x24x640xf32> to vector<24x640xf32>
    %42 = vector.shape_cast %36 : vector<24x640xf32> to vector<1x24x640xf32>
    tpu.vector_store %arg7[%39, %c0_23, %c0_24], %42 {strides = array<i32>} : memref<34x24x640xf32, #tpu.memory_space<vmem>>, vector<1x24x640xf32>,
    %c0_25 = arith.constant 0 : index
    %c1 = arith.constant 1 : index
    %c0_26 = arith.constant 0 : index
    %c0_27 = arith.constant 0 : index
    %43 = vector.load %arg2[%c0_25, %c1, %c0_26, %c0_27] : memref<1x16x24x128xf32, #tpu.memory_space<vmem>>, vector<1x1x24x128xf32>
    %44 = vector.shape_cast %43 : vector<1x1x24x128xf32> to vector<24x128xf32>
    %c0_28 = arith.constant 0 : index
    %c1_29 = arith.constant 1 : index
    %c0_30 = arith.constant 0 : index
    %c0_31 = arith.constant 0 : index
    %45 = vector.load %arg3[%c0_28, %c1_29, %c0_30, %c0_31] : memref<1x16x24x128xf32, #tpu.memory_space<vmem>>, vector<1x1x24x128xf32>
    %46 = vector.shape_cast %45 : vector<1x1x24x128xf32> to vector<24x128xf32>
    %47 = arith.mulf %44, %44 : vector<24x128xf32>
    %48 = arith.mulf %46, %46 : vector<24x128xf32>
    %49 = arith.mulf %44, %46 : vector<24x128xf32>
    %50 = tpu.concatenate %44, %46, %47, %48, %49 in 1 : vector<24x128xf32>, vector<24x128xf32>, vector<24x128xf32>, vector<24x128xf32>, vector<24x128xf32> -> vector<24x640xf32>
    %c1_i32_32 = arith.constant 1 : i32
    %51 = arith.addi %11, %c1_i32_32 : i32
    %52 = arith.index_cast %51 : i32 to index
    %c0_33 = arith.constant 0 : index
    %c0_34 = arith.constant 0 : index
    %53 = vector.load %arg7[%52, %c0_33, %c0_34] : memref<34x24x640xf32, #tpu.memory_space<vmem>>, vector<1x24x640xf32>
    %54 = vector.shape_cast %53 : vector<1x24x640xf32> to vector<24x640xf32>
    %55 = arith.addf %54, %50 : vector<24x640xf32>
    %c1_i32_35 = arith.constant 1 : i32
    %56 = arith.addi %11, %c1_i32_35 : i32
    %c1_i32_36 = arith.constant 1 : i32
    %57 = arith.addi %56, %c1_i32_36 : i32
    %58 = arith.index_cast %57 : i32 to index
    %c0_37 = arith.constant 0 : index
    %c0_38 = arith.constant 0 : index
    %59 = vector.load %arg7[%58, %c0_37, %c0_38] : memref<34x24x640xf32, #tpu.memory_space<vmem>>, vector<1x24x640xf32>
    %60 = vector.shape_cast %59 : vector<1x24x640xf32> to vector<24x640xf32>
    %61 = vector.shape_cast %55 : vector<24x640xf32> to vector<1x24x640xf32>
    tpu.vector_store %arg7[%58, %c0_37, %c0_38], %61 {strides = array<i32>} : memref<34x24x640xf32, #tpu.memory_space<vmem>>, vector<1x24x640xf32>,
    %c0_39 = arith.constant 0 : index
    %c2 = arith.constant 2 : index
    %c0_40 = arith.constant 0 : index
    %c0_41 = arith.constant 0 : index
    %62 = vector.load %arg2[%c0_39, %c2, %c0_40, %c0_41] : memref<1x16x24x128xf32, #tpu.memory_space<vmem>>, vector<1x1x24x128xf32>
    %63 = vector.shape_cast %62 : vector<1x1x24x128xf32> to vector<24x128xf32>
    %c0_42 = arith.constant 0 : index
    %c2_43 = arith.constant 2 : index
    %c0_44 = arith.constant 0 : index
    %c0_45 = arith.constant 0 : index
    %64 = vector.load %arg3[%c0_42, %c2_43, %c0_44, %c0_45] : memref<1x16x24x128xf32, #tpu.memory_space<vmem>>, vector<1x1x24x128xf32>
    %65 = vector.shape_cast %64 : vector<1x1x24x128xf32> to vector<24x128xf32>
    %66 = arith.mulf %63, %63 : vector<24x128xf32>
    %67 = arith.mulf %65, %65 : vector<24x128xf32>
    %68 = arith.mulf %63, %65 : vector<24x128xf32>
    %69 = tpu.concatenate %63, %65, %66, %67, %68 in 1 : vector<24x128xf32>, vector<24x128xf32>, vector<24x128xf32>, vector<24x128xf32>, vector<24x128xf32> -> vector<24x640xf32>
    %c2_i32_46 = arith.constant 2 : i32
    %70 = arith.addi %11, %c2_i32_46 : i32
    %71 = arith.index_cast %70 : i32 to index
    %c0_47 = arith.constant 0 : index
    %c0_48 = arith.constant 0 : index
    %72 = vector.load %arg7[%71, %c0_47, %c0_48] : memref<34x24x640xf32, #tpu.memory_space<vmem>>, vector<1x24x640xf32>
    %73 = vector.shape_cast %72 : vector<1x24x640xf32> to vector<24x640xf32>
    %74 = arith.addf %73, %69 : vector<24x640xf32>
    %c2_i32_49 = arith.constant 2 : i32
    %75 = arith.addi %11, %c2_i32_49 : i32
    %c1_i32_50 = arith.constant 1 : i32
    %76 = arith.addi %75, %c1_i32_50 : i32
    %77 = arith.index_cast %76 : i32 to index
    %c0_51 = arith.constant 0 : index
    %c0_52 = arith.constant 0 : index
    %78 = vector.load %arg7[%77, %c0_51, %c0_52] : memref<34x24x640xf32, #tpu.memory_space<vmem>>, vector<1x24x640xf32>
    %79 = vector.shape_cast %78 : vector<1x24x640xf32> to vector<24x640xf32>
    %80 = vector.shape_cast %74 : vector<24x640xf32> to vector<1x24x640xf32>
    tpu.vector_store %arg7[%77, %c0_51, %c0_52], %80 {strides = array<i32>} : memref<34x24x640xf32, #tpu.memory_space<vmem>>, vector<1x24x640xf32>,
    %c0_53 = arith.constant 0 : index
    %c3 = arith.constant 3 : index
    %c0_54 = arith.constant 0 : index
    %c0_55 = arith.constant 0 : index
    %81 = vector.load %arg2[%c0_53, %c3, %c0_54, %c0_55] : memref<1x16x24x128xf32, #tpu.memory_space<vmem>>, vector<1x1x24x128xf32>
    %82 = vector.shape_cast %81 : vector<1x1x24x128xf32> to vector<24x128xf32>
    %c0_56 = arith.constant 0 : index
    %c3_57 = arith.constant 3 : index
    %c0_58 = arith.constant 0 : index
    %c0_59 = arith.constant 0 : index
    %83 = vector.load %arg3[%c0_56, %c3_57, %c0_58, %c0_59] : memref<1x16x24x128xf32, #tpu.memory_space<vmem>>, vector<1x1x24x128xf32>
    %84 = vector.shape_cast %83 : vector<1x1x24x128xf32> to vector<24x128xf32>
    %85 = arith.mulf %82, %82 : vector<24x128xf32>
    %86 = arith.mulf %84, %84 : vector<24x128xf32>
    %87 = arith.mulf %82, %84 : vector<24x128xf32>
    %88 = tpu.concatenate %82, %84, %85, %86, %87 in 1 : vector<24x128xf32>, vector<24x128xf32>, vector<24x128xf32>, vector<24x128xf32>, vector<24x128xf32> -> vector<24x640xf32>
    %c3_i32 = arith.constant 3 : i32
    %89 = arith.addi %11, %c3_i32 : i32
    %90 = arith.index_cast %89 : i32 to index
    %c0_60 = arith.constant 0 : index
    %c0_61 = arith.constant 0 : index
    %91 = vector.load %arg7[%90, %c0_60, %c0_61] : memref<34x24x640xf32, #tpu.memory_space<vmem>>, vector<1x24x640xf32>
    %92 = vector.shape_cast %91 : vector<1x24x640xf32> to vector<24x640xf32>
    %93 = arith.addf %92, %88 : vector<24x640xf32>
    %c3_i32_62 = arith.constant 3 : i32
    %94 = arith.addi %11, %c3_i32_62 : i32
    %c1_i32_63 = arith.constant 1 : i32
    %95 = arith.addi %94, %c1_i32_63 : i32
    %96 = arith.index_cast %95 : i32 to index
    %c0_64 = arith.constant 0 : index
    %c0_65 = arith.constant 0 : index
    %97 = vector.load %arg7[%96, %c0_64, %c0_65] : memref<34x24x640xf32, #tpu.memory_space<vmem>>, vector<1x24x640xf32>
    %98 = vector.shape_cast %97 : vector<1x24x640xf32> to vector<24x640xf32>
    %99 = vector.shape_cast %93 : vector<24x640xf32> to vector<1x24x640xf32>
    tpu.vector_store %arg7[%96, %c0_64, %c0_65], %99 {strides = array<i32>} : memref<34x24x640xf32, #tpu.memory_space<vmem>>, vector<1x24x640xf32>,
    %c0_66 = arith.constant 0 : index
    %c4 = arith.constant 4 : index
    %c0_67 = arith.constant 0 : index
    %c0_68 = arith.constant 0 : index
    %100 = vector.load %arg2[%c0_66, %c4, %c0_67, %c0_68] : memref<1x16x24x128xf32, #tpu.memory_space<vmem>>, vector<1x1x24x128xf32>
    %101 = vector.shape_cast %100 : vector<1x1x24x128xf32> to vector<24x128xf32>
    %c0_69 = arith.constant 0 : index
    %c4_70 = arith.constant 4 : index
    %c0_71 = arith.constant 0 : index
    %c0_72 = arith.constant 0 : index
    %102 = vector.load %arg3[%c0_69, %c4_70, %c0_71, %c0_72] : memref<1x16x24x128xf32, #tpu.memory_space<vmem>>, vector<1x1x24x128xf32>
    %103 = vector.shape_cast %102 : vector<1x1x24x128xf32> to vector<24x128xf32>
    %104 = arith.mulf %101, %101 : vector<24x128xf32>
    %105 = arith.mulf %103, %103 : vector<24x128xf32>
    %106 = arith.mulf %101, %103 : vector<24x128xf32>
    %107 = tpu.concatenate %101, %103, %104, %105, %106 in 1 : vector<24x128xf32>, vector<24x128xf32>, vector<24x128xf32>, vector<24x128xf32>, vector<24x128xf32> -> vector<24x640xf32>
    %c4_i32 = arith.constant 4 : i32
    %108 = arith.addi %11, %c4_i32 : i32
    %109 = arith.index_cast %108 : i32 to index
    %c0_73 = arith.constant 0 : index
    %c0_74 = arith.constant 0 : index
    %110 = vector.load %arg7[%109, %c0_73, %c0_74] : memref<34x24x640xf32, #tpu.memory_space<vmem>>, vector<1x24x640xf32>
    %111 = vector.shape_cast %110 : vector<1x24x640xf32> to vector<24x640xf32>
    %112 = arith.addf %111, %107 : vector<24x640xf32>
    %c4_i32_75 = arith.constant 4 : i32
    %113 = arith.addi %11, %c4_i32_75 : i32
    %c1_i32_76 = arith.constant 1 : i32
    %114 = arith.addi %113, %c1_i32_76 : i32
    %115 = arith.index_cast %114 : i32 to index
    %c0_77 = arith.constant 0 : index
    %c0_78 = arith.constant 0 : index
    %116 = vector.load %arg7[%115, %c0_77, %c0_78] : memref<34x24x640xf32, #tpu.memory_space<vmem>>, vector<1x24x640xf32>
    %117 = vector.shape_cast %116 : vector<1x24x640xf32> to vector<24x640xf32>
    %118 = vector.shape_cast %112 : vector<24x640xf32> to vector<1x24x640xf32>
    tpu.vector_store %arg7[%115, %c0_77, %c0_78], %118 {strides = array<i32>} : memref<34x24x640xf32, #tpu.memory_space<vmem>>, vector<1x24x640xf32>,
    %c0_79 = arith.constant 0 : index
    %c5 = arith.constant 5 : index
    %c0_80 = arith.constant 0 : index
    %c0_81 = arith.constant 0 : index
    %119 = vector.load %arg2[%c0_79, %c5, %c0_80, %c0_81] : memref<1x16x24x128xf32, #tpu.memory_space<vmem>>, vector<1x1x24x128xf32>
    %120 = vector.shape_cast %119 : vector<1x1x24x128xf32> to vector<24x128xf32>
    %c0_82 = arith.constant 0 : index
    %c5_83 = arith.constant 5 : index
    %c0_84 = arith.constant 0 : index
    %c0_85 = arith.constant 0 : index
    %121 = vector.load %arg3[%c0_82, %c5_83, %c0_84, %c0_85] : memref<1x16x24x128xf32, #tpu.memory_space<vmem>>, vector<1x1x24x128xf32>
    %122 = vector.shape_cast %121 : vector<1x1x24x128xf32> to vector<24x128xf32>
    %123 = arith.mulf %120, %120 : vector<24x128xf32>
    %124 = arith.mulf %122, %122 : vector<24x128xf32>
    %125 = arith.mulf %120, %122 : vector<24x128xf32>
    %126 = tpu.concatenate %120, %122, %123, %124, %125 in 1 : vector<24x128xf32>, vector<24x128xf32>, vector<24x128xf32>, vector<24x128xf32>, vector<24x128xf32> -> vector<24x640xf32>
    %c5_i32 = arith.constant 5 : i32
    %127 = arith.addi %11, %c5_i32 : i32
    %128 = arith.index_cast %127 : i32 to index
    %c0_86 = arith.constant 0 : index
    %c0_87 = arith.constant 0 : index
    %129 = vector.load %arg7[%128, %c0_86, %c0_87] : memref<34x24x640xf32, #tpu.memory_space<vmem>>, vector<1x24x640xf32>
    %130 = vector.shape_cast %129 : vector<1x24x640xf32> to vector<24x640xf32>
    %131 = arith.addf %130, %126 : vector<24x640xf32>
    %c5_i32_88 = arith.constant 5 : i32
    %132 = arith.addi %11, %c5_i32_88 : i32
    %c1_i32_89 = arith.constant 1 : i32
    %133 = arith.addi %132, %c1_i32_89 : i32
    %134 = arith.index_cast %133 : i32 to index
    %c0_90 = arith.constant 0 : index
    %c0_91 = arith.constant 0 : index
    %135 = vector.load %arg7[%134, %c0_90, %c0_91] : memref<34x24x640xf32, #tpu.memory_space<vmem>>, vector<1x24x640xf32>
    %136 = vector.shape_cast %135 : vector<1x24x640xf32> to vector<24x640xf32>
    %137 = vector.shape_cast %131 : vector<24x640xf32> to vector<1x24x640xf32>
    tpu.vector_store %arg7[%134, %c0_90, %c0_91], %137 {strides = array<i32>} : memref<34x24x640xf32, #tpu.memory_space<vmem>>, vector<1x24x640xf32>,
    %c0_92 = arith.constant 0 : index
    %c6 = arith.constant 6 : index
    %c0_93 = arith.constant 0 : index
    %c0_94 = arith.constant 0 : index
    %138 = vector.load %arg2[%c0_92, %c6, %c0_93, %c0_94] : memref<1x16x24x128xf32, #tpu.memory_space<vmem>>, vector<1x1x24x128xf32>
    %139 = vector.shape_cast %138 : vector<1x1x24x128xf32> to vector<24x128xf32>
    %c0_95 = arith.constant 0 : index
    %c6_96 = arith.constant 6 : index
    %c0_97 = arith.constant 0 : index
    %c0_98 = arith.constant 0 : index
    %140 = vector.load %arg3[%c0_95, %c6_96, %c0_97, %c0_98] : memref<1x16x24x128xf32, #tpu.memory_space<vmem>>, vector<1x1x24x128xf32>
    %141 = vector.shape_cast %140 : vector<1x1x24x128xf32> to vector<24x128xf32>
    %142 = arith.mulf %139, %139 : vector<24x128xf32>
    %143 = arith.mulf %141, %141 : vector<24x128xf32>
    %144 = arith.mulf %139, %141 : vector<24x128xf32>
    %145 = tpu.concatenate %139, %141, %142, %143, %144 in 1 : vector<24x128xf32>, vector<24x128xf32>, vector<24x128xf32>, vector<24x128xf32>, vector<24x128xf32> -> vector<24x640xf32>
    %c6_i32 = arith.constant 6 : i32
    %146 = arith.addi %11, %c6_i32 : i32
    %147 = arith.index_cast %146 : i32 to index
    %c0_99 = arith.constant 0 : index
    %c0_100 = arith.constant 0 : index
    %148 = vector.load %arg7[%147, %c0_99, %c0_100] : memref<34x24x640xf32, #tpu.memory_space<vmem>>, vector<1x24x640xf32>
    %149 = vector.shape_cast %148 : vector<1x24x640xf32> to vector<24x640xf32>
    %150 = arith.addf %149, %145 : vector<24x640xf32>
    %c6_i32_101 = arith.constant 6 : i32
    %151 = arith.addi %11, %c6_i32_101 : i32
    %c1_i32_102 = arith.constant 1 : i32
    %152 = arith.addi %151, %c1_i32_102 : i32
    %153 = arith.index_cast %152 : i32 to index
    %c0_103 = arith.constant 0 : index
    %c0_104 = arith.constant 0 : index
    %154 = vector.load %arg7[%153, %c0_103, %c0_104] : memref<34x24x640xf32, #tpu.memory_space<vmem>>, vector<1x24x640xf32>
    %155 = vector.shape_cast %154 : vector<1x24x640xf32> to vector<24x640xf32>
    %156 = vector.shape_cast %150 : vector<24x640xf32> to vector<1x24x640xf32>
    tpu.vector_store %arg7[%153, %c0_103, %c0_104], %156 {strides = array<i32>} : memref<34x24x640xf32, #tpu.memory_space<vmem>>, vector<1x24x640xf32>,
    %c0_105 = arith.constant 0 : index
    %c7 = arith.constant 7 : index
    %c0_106 = arith.constant 0 : index
    %c0_107 = arith.constant 0 : index
    %157 = vector.load %arg2[%c0_105, %c7, %c0_106, %c0_107] : memref<1x16x24x128xf32, #tpu.memory_space<vmem>>, vector<1x1x24x128xf32>
    %158 = vector.shape_cast %157 : vector<1x1x24x128xf32> to vector<24x128xf32>
    %c0_108 = arith.constant 0 : index
    %c7_109 = arith.constant 7 : index
    %c0_110 = arith.constant 0 : index
    %c0_111 = arith.constant 0 : index
    %159 = vector.load %arg3[%c0_108, %c7_109, %c0_110, %c0_111] : memref<1x16x24x128xf32, #tpu.memory_space<vmem>>, vector<1x1x24x128xf32>
    %160 = vector.shape_cast %159 : vector<1x1x24x128xf32> to vector<24x128xf32>
    %161 = arith.mulf %158, %158 : vector<24x128xf32>
    %162 = arith.mulf %160, %160 : vector<24x128xf32>
    %163 = arith.mulf %158, %160 : vector<24x128xf32>
    %164 = tpu.concatenate %158, %160, %161, %162, %163 in 1 : vector<24x128xf32>, vector<24x128xf32>, vector<24x128xf32>, vector<24x128xf32>, vector<24x128xf32> -> vector<24x640xf32>
    %c7_i32 = arith.constant 7 : i32
    %165 = arith.addi %11, %c7_i32 : i32
    %166 = arith.index_cast %165 : i32 to index
    %c0_112 = arith.constant 0 : index
    %c0_113 = arith.constant 0 : index
    %167 = vector.load %arg7[%166, %c0_112, %c0_113] : memref<34x24x640xf32, #tpu.memory_space<vmem>>, vector<1x24x640xf32>
    %168 = vector.shape_cast %167 : vector<1x24x640xf32> to vector<24x640xf32>
    %169 = arith.addf %168, %164 : vector<24x640xf32>
    %c7_i32_114 = arith.constant 7 : i32
    %170 = arith.addi %11, %c7_i32_114 : i32
    %c1_i32_115 = arith.constant 1 : i32
    %171 = arith.addi %170, %c1_i32_115 : i32
    %172 = arith.index_cast %171 : i32 to index
    %c0_116 = arith.constant 0 : index
    %c0_117 = arith.constant 0 : index
    %173 = vector.load %arg7[%172, %c0_116, %c0_117] : memref<34x24x640xf32, #tpu.memory_space<vmem>>, vector<1x24x640xf32>
    %174 = vector.shape_cast %173 : vector<1x24x640xf32> to vector<24x640xf32>
    %175 = vector.shape_cast %169 : vector<24x640xf32> to vector<1x24x640xf32>
    tpu.vector_store %arg7[%172, %c0_116, %c0_117], %175 {strides = array<i32>} : memref<34x24x640xf32, #tpu.memory_space<vmem>>, vector<1x24x640xf32>,
    %c0_118 = arith.constant 0 : index
    %c8 = arith.constant 8 : index
    %c0_119 = arith.constant 0 : index
    %c0_120 = arith.constant 0 : index
    %176 = vector.load %arg2[%c0_118, %c8, %c0_119, %c0_120] : memref<1x16x24x128xf32, #tpu.memory_space<vmem>>, vector<1x1x24x128xf32>
    %177 = vector.shape_cast %176 : vector<1x1x24x128xf32> to vector<24x128xf32>
    %c0_121 = arith.constant 0 : index
    %c8_122 = arith.constant 8 : index
    %c0_123 = arith.constant 0 : index
    %c0_124 = arith.constant 0 : index
    %178 = vector.load %arg3[%c0_121, %c8_122, %c0_123, %c0_124] : memref<1x16x24x128xf32, #tpu.memory_space<vmem>>, vector<1x1x24x128xf32>
    %179 = vector.shape_cast %178 : vector<1x1x24x128xf32> to vector<24x128xf32>
    %180 = arith.mulf %177, %177 : vector<24x128xf32>
    %181 = arith.mulf %179, %179 : vector<24x128xf32>
    %182 = arith.mulf %177, %179 : vector<24x128xf32>
    %183 = tpu.concatenate %177, %179, %180, %181, %182 in 1 : vector<24x128xf32>, vector<24x128xf32>, vector<24x128xf32>, vector<24x128xf32>, vector<24x128xf32> -> vector<24x640xf32>
    %c8_i32 = arith.constant 8 : i32
    %184 = arith.addi %11, %c8_i32 : i32
    %185 = arith.index_cast %184 : i32 to index
    %c0_125 = arith.constant 0 : index
    %c0_126 = arith.constant 0 : index
    %186 = vector.load %arg7[%185, %c0_125, %c0_126] : memref<34x24x640xf32, #tpu.memory_space<vmem>>, vector<1x24x640xf32>
    %187 = vector.shape_cast %186 : vector<1x24x640xf32> to vector<24x640xf32>
    %188 = arith.addf %187, %183 : vector<24x640xf32>
    %c8_i32_127 = arith.constant 8 : i32
    %189 = arith.addi %11, %c8_i32_127 : i32
    %c1_i32_128 = arith.constant 1 : i32
    %190 = arith.addi %189, %c1_i32_128 : i32
    %191 = arith.index_cast %190 : i32 to index
    %c0_129 = arith.constant 0 : index
    %c0_130 = arith.constant 0 : index
    %192 = vector.load %arg7[%191, %c0_129, %c0_130] : memref<34x24x640xf32, #tpu.memory_space<vmem>>, vector<1x24x640xf32>
    %193 = vector.shape_cast %192 : vector<1x24x640xf32> to vector<24x640xf32>
    %194 = vector.shape_cast %188 : vector<24x640xf32> to vector<1x24x640xf32>
    tpu.vector_store %arg7[%191, %c0_129, %c0_130], %194 {strides = array<i32>} : memref<34x24x640xf32, #tpu.memory_space<vmem>>, vector<1x24x640xf32>,
    %c0_131 = arith.constant 0 : index
    %c9 = arith.constant 9 : index
    %c0_132 = arith.constant 0 : index
    %c0_133 = arith.constant 0 : index
    %195 = vector.load %arg2[%c0_131, %c9, %c0_132, %c0_133] : memref<1x16x24x128xf32, #tpu.memory_space<vmem>>, vector<1x1x24x128xf32>
    %196 = vector.shape_cast %195 : vector<1x1x24x128xf32> to vector<24x128xf32>
    %c0_134 = arith.constant 0 : index
    %c9_135 = arith.constant 9 : index
    %c0_136 = arith.constant 0 : index
    %c0_137 = arith.constant 0 : index
    %197 = vector.load %arg3[%c0_134, %c9_135, %c0_136, %c0_137] : memref<1x16x24x128xf32, #tpu.memory_space<vmem>>, vector<1x1x24x128xf32>
    %198 = vector.shape_cast %197 : vector<1x1x24x128xf32> to vector<24x128xf32>
    %199 = arith.mulf %196, %196 : vector<24x128xf32>
    %200 = arith.mulf %198, %198 : vector<24x128xf32>
    %201 = arith.mulf %196, %198 : vector<24x128xf32>
    %202 = tpu.concatenate %196, %198, %199, %200, %201 in 1 : vector<24x128xf32>, vector<24x128xf32>, vector<24x128xf32>, vector<24x128xf32>, vector<24x128xf32> -> vector<24x640xf32>
    %c9_i32 = arith.constant 9 : i32
    %203 = arith.addi %11, %c9_i32 : i32
    %204 = arith.index_cast %203 : i32 to index
    %c0_138 = arith.constant 0 : index
    %c0_139 = arith.constant 0 : index
    %205 = vector.load %arg7[%204, %c0_138, %c0_139] : memref<34x24x640xf32, #tpu.memory_space<vmem>>, vector<1x24x640xf32>
    %206 = vector.shape_cast %205 : vector<1x24x640xf32> to vector<24x640xf32>
    %207 = arith.addf %206, %202 : vector<24x640xf32>
    %c9_i32_140 = arith.constant 9 : i32
    %208 = arith.addi %11, %c9_i32_140 : i32
    %c1_i32_141 = arith.constant 1 : i32
    %209 = arith.addi %208, %c1_i32_141 : i32
    %210 = arith.index_cast %209 : i32 to index
    %c0_142 = arith.constant 0 : index
    %c0_143 = arith.constant 0 : index
    %211 = vector.load %arg7[%210, %c0_142, %c0_143] : memref<34x24x640xf32, #tpu.memory_space<vmem>>, vector<1x24x640xf32>
    %212 = vector.shape_cast %211 : vector<1x24x640xf32> to vector<24x640xf32>
    %213 = vector.shape_cast %207 : vector<24x640xf32> to vector<1x24x640xf32>
    tpu.vector_store %arg7[%210, %c0_142, %c0_143], %213 {strides = array<i32>} : memref<34x24x640xf32, #tpu.memory_space<vmem>>, vector<1x24x640xf32>,
    %c0_144 = arith.constant 0 : index
    %c10 = arith.constant 10 : index
    %c0_145 = arith.constant 0 : index
    %c0_146 = arith.constant 0 : index
    %214 = vector.load %arg2[%c0_144, %c10, %c0_145, %c0_146] : memref<1x16x24x128xf32, #tpu.memory_space<vmem>>, vector<1x1x24x128xf32>
    %215 = vector.shape_cast %214 : vector<1x1x24x128xf32> to vector<24x128xf32>
    %c0_147 = arith.constant 0 : index
    %c10_148 = arith.constant 10 : index
    %c0_149 = arith.constant 0 : index
    %c0_150 = arith.constant 0 : index
    %216 = vector.load %arg3[%c0_147, %c10_148, %c0_149, %c0_150] : memref<1x16x24x128xf32, #tpu.memory_space<vmem>>, vector<1x1x24x128xf32>
    %217 = vector.shape_cast %216 : vector<1x1x24x128xf32> to vector<24x128xf32>
    %218 = arith.mulf %215, %215 : vector<24x128xf32>
    %219 = arith.mulf %217, %217 : vector<24x128xf32>
    %220 = arith.mulf %215, %217 : vector<24x128xf32>
    %221 = tpu.concatenate %215, %217, %218, %219, %220 in 1 : vector<24x128xf32>, vector<24x128xf32>, vector<24x128xf32>, vector<24x128xf32>, vector<24x128xf32> -> vector<24x640xf32>
    %c10_i32 = arith.constant 10 : i32
    %222 = arith.addi %11, %c10_i32 : i32
    %223 = arith.index_cast %222 : i32 to index
    %c0_151 = arith.constant 0 : index
    %c0_152 = arith.constant 0 : index
    %224 = vector.load %arg7[%223, %c0_151, %c0_152] : memref<34x24x640xf32, #tpu.memory_space<vmem>>, vector<1x24x640xf32>
    %225 = vector.shape_cast %224 : vector<1x24x640xf32> to vector<24x640xf32>
    %226 = arith.addf %225, %221 : vector<24x640xf32>
    %c10_i32_153 = arith.constant 10 : i32
    %227 = arith.addi %11, %c10_i32_153 : i32
    %c1_i32_154 = arith.constant 1 : i32
    %228 = arith.addi %227, %c1_i32_154 : i32
    %229 = arith.index_cast %228 : i32 to index
    %c0_155 = arith.constant 0 : index
    %c0_156 = arith.constant 0 : index
    %230 = vector.load %arg7[%229, %c0_155, %c0_156] : memref<34x24x640xf32, #tpu.memory_space<vmem>>, vector<1x24x640xf32>
    %231 = vector.shape_cast %230 : vector<1x24x640xf32> to vector<24x640xf32>
    %232 = vector.shape_cast %226 : vector<24x640xf32> to vector<1x24x640xf32>
    tpu.vector_store %arg7[%229, %c0_155, %c0_156], %232 {strides = array<i32>} : memref<34x24x640xf32, #tpu.memory_space<vmem>>, vector<1x24x640xf32>,
    %c0_157 = arith.constant 0 : index
    %c11 = arith.constant 11 : index
    %c0_158 = arith.constant 0 : index
    %c0_159 = arith.constant 0 : index
    %233 = vector.load %arg2[%c0_157, %c11, %c0_158, %c0_159] : memref<1x16x24x128xf32, #tpu.memory_space<vmem>>, vector<1x1x24x128xf32>
    %234 = vector.shape_cast %233 : vector<1x1x24x128xf32> to vector<24x128xf32>
    %c0_160 = arith.constant 0 : index
    %c11_161 = arith.constant 11 : index
    %c0_162 = arith.constant 0 : index
    %c0_163 = arith.constant 0 : index
    %235 = vector.load %arg3[%c0_160, %c11_161, %c0_162, %c0_163] : memref<1x16x24x128xf32, #tpu.memory_space<vmem>>, vector<1x1x24x128xf32>
    %236 = vector.shape_cast %235 : vector<1x1x24x128xf32> to vector<24x128xf32>
    %237 = arith.mulf %234, %234 : vector<24x128xf32>
    %238 = arith.mulf %236, %236 : vector<24x128xf32>
    %239 = arith.mulf %234, %236 : vector<24x128xf32>
    %240 = tpu.concatenate %234, %236, %237, %238, %239 in 1 : vector<24x128xf32>, vector<24x128xf32>, vector<24x128xf32>, vector<24x128xf32>, vector<24x128xf32> -> vector<24x640xf32>
    %c11_i32 = arith.constant 11 : i32
    %241 = arith.addi %11, %c11_i32 : i32
    %242 = arith.index_cast %241 : i32 to index
    %c0_164 = arith.constant 0 : index
    %c0_165 = arith.constant 0 : index
    %243 = vector.load %arg7[%242, %c0_164, %c0_165] : memref<34x24x640xf32, #tpu.memory_space<vmem>>, vector<1x24x640xf32>
    %244 = vector.shape_cast %243 : vector<1x24x640xf32> to vector<24x640xf32>
    %245 = arith.addf %244, %240 : vector<24x640xf32>
    %c11_i32_166 = arith.constant 11 : i32
    %246 = arith.addi %11, %c11_i32_166 : i32
    %c1_i32_167 = arith.constant 1 : i32
    %247 = arith.addi %246, %c1_i32_167 : i32
    %248 = arith.index_cast %247 : i32 to index
    %c0_168 = arith.constant 0 : index
    %c0_169 = arith.constant 0 : index
    %249 = vector.load %arg7[%248, %c0_168, %c0_169] : memref<34x24x640xf32, #tpu.memory_space<vmem>>, vector<1x24x640xf32>
    %250 = vector.shape_cast %249 : vector<1x24x640xf32> to vector<24x640xf32>
    %251 = vector.shape_cast %245 : vector<24x640xf32> to vector<1x24x640xf32>
    tpu.vector_store %arg7[%248, %c0_168, %c0_169], %251 {strides = array<i32>} : memref<34x24x640xf32, #tpu.memory_space<vmem>>, vector<1x24x640xf32>,
    %c0_170 = arith.constant 0 : index
    %c12 = arith.constant 12 : index
    %c0_171 = arith.constant 0 : index
    %c0_172 = arith.constant 0 : index
    %252 = vector.load %arg2[%c0_170, %c12, %c0_171, %c0_172] : memref<1x16x24x128xf32, #tpu.memory_space<vmem>>, vector<1x1x24x128xf32>
    %253 = vector.shape_cast %252 : vector<1x1x24x128xf32> to vector<24x128xf32>
    %c0_173 = arith.constant 0 : index
    %c12_174 = arith.constant 12 : index
    %c0_175 = arith.constant 0 : index
    %c0_176 = arith.constant 0 : index
    %254 = vector.load %arg3[%c0_173, %c12_174, %c0_175, %c0_176] : memref<1x16x24x128xf32, #tpu.memory_space<vmem>>, vector<1x1x24x128xf32>
    %255 = vector.shape_cast %254 : vector<1x1x24x128xf32> to vector<24x128xf32>
    %256 = arith.mulf %253, %253 : vector<24x128xf32>
    %257 = arith.mulf %255, %255 : vector<24x128xf32>
    %258 = arith.mulf %253, %255 : vector<24x128xf32>
    %259 = tpu.concatenate %253, %255, %256, %257, %258 in 1 : vector<24x128xf32>, vector<24x128xf32>, vector<24x128xf32>, vector<24x128xf32>, vector<24x128xf32> -> vector<24x640xf32>
    %c12_i32 = arith.constant 12 : i32
    %260 = arith.addi %11, %c12_i32 : i32
    %261 = arith.index_cast %260 : i32 to index
    %c0_177 = arith.constant 0 : index
    %c0_178 = arith.constant 0 : index
    %262 = vector.load %arg7[%261, %c0_177, %c0_178] : memref<34x24x640xf32, #tpu.memory_space<vmem>>, vector<1x24x640xf32>
    %263 = vector.shape_cast %262 : vector<1x24x640xf32> to vector<24x640xf32>
    %264 = arith.addf %263, %259 : vector<24x640xf32>
    %c12_i32_179 = arith.constant 12 : i32
    %265 = arith.addi %11, %c12_i32_179 : i32
    %c1_i32_180 = arith.constant 1 : i32
    %266 = arith.addi %265, %c1_i32_180 : i32
    %267 = arith.index_cast %266 : i32 to index
    %c0_181 = arith.constant 0 : index
    %c0_182 = arith.constant 0 : index
    %268 = vector.load %arg7[%267, %c0_181, %c0_182] : memref<34x24x640xf32, #tpu.memory_space<vmem>>, vector<1x24x640xf32>
    %269 = vector.shape_cast %268 : vector<1x24x640xf32> to vector<24x640xf32>
    %270 = vector.shape_cast %264 : vector<24x640xf32> to vector<1x24x640xf32>
    tpu.vector_store %arg7[%267, %c0_181, %c0_182], %270 {strides = array<i32>} : memref<34x24x640xf32, #tpu.memory_space<vmem>>, vector<1x24x640xf32>,
    %c0_183 = arith.constant 0 : index
    %c13 = arith.constant 13 : index
    %c0_184 = arith.constant 0 : index
    %c0_185 = arith.constant 0 : index
    %271 = vector.load %arg2[%c0_183, %c13, %c0_184, %c0_185] : memref<1x16x24x128xf32, #tpu.memory_space<vmem>>, vector<1x1x24x128xf32>
    %272 = vector.shape_cast %271 : vector<1x1x24x128xf32> to vector<24x128xf32>
    %c0_186 = arith.constant 0 : index
    %c13_187 = arith.constant 13 : index
    %c0_188 = arith.constant 0 : index
    %c0_189 = arith.constant 0 : index
    %273 = vector.load %arg3[%c0_186, %c13_187, %c0_188, %c0_189] : memref<1x16x24x128xf32, #tpu.memory_space<vmem>>, vector<1x1x24x128xf32>
    %274 = vector.shape_cast %273 : vector<1x1x24x128xf32> to vector<24x128xf32>
    %275 = arith.mulf %272, %272 : vector<24x128xf32>
    %276 = arith.mulf %274, %274 : vector<24x128xf32>
    %277 = arith.mulf %272, %274 : vector<24x128xf32>
    %278 = tpu.concatenate %272, %274, %275, %276, %277 in 1 : vector<24x128xf32>, vector<24x128xf32>, vector<24x128xf32>, vector<24x128xf32>, vector<24x128xf32> -> vector<24x640xf32>
    %c13_i32 = arith.constant 13 : i32
    %279 = arith.addi %11, %c13_i32 : i32
    %280 = arith.index_cast %279 : i32 to index
    %c0_190 = arith.constant 0 : index
    %c0_191 = arith.constant 0 : index
    %281 = vector.load %arg7[%280, %c0_190, %c0_191] : memref<34x24x640xf32, #tpu.memory_space<vmem>>, vector<1x24x640xf32>
    %282 = vector.shape_cast %281 : vector<1x24x640xf32> to vector<24x640xf32>
    %283 = arith.addf %282, %278 : vector<24x640xf32>
    %c13_i32_192 = arith.constant 13 : i32
    %284 = arith.addi %11, %c13_i32_192 : i32
    %c1_i32_193 = arith.constant 1 : i32
    %285 = arith.addi %284, %c1_i32_193 : i32
    %286 = arith.index_cast %285 : i32 to index
    %c0_194 = arith.constant 0 : index
    %c0_195 = arith.constant 0 : index
    %287 = vector.load %arg7[%286, %c0_194, %c0_195] : memref<34x24x640xf32, #tpu.memory_space<vmem>>, vector<1x24x640xf32>
    %288 = vector.shape_cast %287 : vector<1x24x640xf32> to vector<24x640xf32>
    %289 = vector.shape_cast %283 : vector<24x640xf32> to vector<1x24x640xf32>
    tpu.vector_store %arg7[%286, %c0_194, %c0_195], %289 {strides = array<i32>} : memref<34x24x640xf32, #tpu.memory_space<vmem>>, vector<1x24x640xf32>,
    %c0_196 = arith.constant 0 : index
    %c14 = arith.constant 14 : index
    %c0_197 = arith.constant 0 : index
    %c0_198 = arith.constant 0 : index
    %290 = vector.load %arg2[%c0_196, %c14, %c0_197, %c0_198] : memref<1x16x24x128xf32, #tpu.memory_space<vmem>>, vector<1x1x24x128xf32>
    %291 = vector.shape_cast %290 : vector<1x1x24x128xf32> to vector<24x128xf32>
    %c0_199 = arith.constant 0 : index
    %c14_200 = arith.constant 14 : index
    %c0_201 = arith.constant 0 : index
    %c0_202 = arith.constant 0 : index
    %292 = vector.load %arg3[%c0_199, %c14_200, %c0_201, %c0_202] : memref<1x16x24x128xf32, #tpu.memory_space<vmem>>, vector<1x1x24x128xf32>
    %293 = vector.shape_cast %292 : vector<1x1x24x128xf32> to vector<24x128xf32>
    %294 = arith.mulf %291, %291 : vector<24x128xf32>
    %295 = arith.mulf %293, %293 : vector<24x128xf32>
    %296 = arith.mulf %291, %293 : vector<24x128xf32>
    %297 = tpu.concatenate %291, %293, %294, %295, %296 in 1 : vector<24x128xf32>, vector<24x128xf32>, vector<24x128xf32>, vector<24x128xf32>, vector<24x128xf32> -> vector<24x640xf32>
    %c14_i32 = arith.constant 14 : i32
    %298 = arith.addi %11, %c14_i32 : i32
    %299 = arith.index_cast %298 : i32 to index
    %c0_203 = arith.constant 0 : index
    %c0_204 = arith.constant 0 : index
    %300 = vector.load %arg7[%299, %c0_203, %c0_204] : memref<34x24x640xf32, #tpu.memory_space<vmem>>, vector<1x24x640xf32>
    %301 = vector.shape_cast %300 : vector<1x24x640xf32> to vector<24x640xf32>
    %302 = arith.addf %301, %297 : vector<24x640xf32>
    %c14_i32_205 = arith.constant 14 : i32
    %303 = arith.addi %11, %c14_i32_205 : i32
    %c1_i32_206 = arith.constant 1 : i32
    %304 = arith.addi %303, %c1_i32_206 : i32
    %305 = arith.index_cast %304 : i32 to index
    %c0_207 = arith.constant 0 : index
    %c0_208 = arith.constant 0 : index
    %306 = vector.load %arg7[%305, %c0_207, %c0_208] : memref<34x24x640xf32, #tpu.memory_space<vmem>>, vector<1x24x640xf32>
    %307 = vector.shape_cast %306 : vector<1x24x640xf32> to vector<24x640xf32>
    %308 = vector.shape_cast %302 : vector<24x640xf32> to vector<1x24x640xf32>
    tpu.vector_store %arg7[%305, %c0_207, %c0_208], %308 {strides = array<i32>} : memref<34x24x640xf32, #tpu.memory_space<vmem>>, vector<1x24x640xf32>,
    %c0_209 = arith.constant 0 : index
    %c15 = arith.constant 15 : index
    %c0_210 = arith.constant 0 : index
    %c0_211 = arith.constant 0 : index
    %309 = vector.load %arg2[%c0_209, %c15, %c0_210, %c0_211] : memref<1x16x24x128xf32, #tpu.memory_space<vmem>>, vector<1x1x24x128xf32>
    %310 = vector.shape_cast %309 : vector<1x1x24x128xf32> to vector<24x128xf32>
    %c0_212 = arith.constant 0 : index
    %c15_213 = arith.constant 15 : index
    %c0_214 = arith.constant 0 : index
    %c0_215 = arith.constant 0 : index
    %311 = vector.load %arg3[%c0_212, %c15_213, %c0_214, %c0_215] : memref<1x16x24x128xf32, #tpu.memory_space<vmem>>, vector<1x1x24x128xf32>
    %312 = vector.shape_cast %311 : vector<1x1x24x128xf32> to vector<24x128xf32>
    %313 = arith.mulf %310, %310 : vector<24x128xf32>
    %314 = arith.mulf %312, %312 : vector<24x128xf32>
    %315 = arith.mulf %310, %312 : vector<24x128xf32>
    %316 = tpu.concatenate %310, %312, %313, %314, %315 in 1 : vector<24x128xf32>, vector<24x128xf32>, vector<24x128xf32>, vector<24x128xf32>, vector<24x128xf32> -> vector<24x640xf32>
    %c15_i32 = arith.constant 15 : i32
    %317 = arith.addi %11, %c15_i32 : i32
    %318 = arith.index_cast %317 : i32 to index
    %c0_216 = arith.constant 0 : index
    %c0_217 = arith.constant 0 : index
    %319 = vector.load %arg7[%318, %c0_216, %c0_217] : memref<34x24x640xf32, #tpu.memory_space<vmem>>, vector<1x24x640xf32>
    %320 = vector.shape_cast %319 : vector<1x24x640xf32> to vector<24x640xf32>
    %321 = arith.addf %320, %316 : vector<24x640xf32>
    %c15_i32_218 = arith.constant 15 : i32
    %322 = arith.addi %11, %c15_i32_218 : i32
    %c1_i32_219 = arith.constant 1 : i32
    %323 = arith.addi %322, %c1_i32_219 : i32
    %324 = arith.index_cast %323 : i32 to index
    %c0_220 = arith.constant 0 : index
    %c0_221 = arith.constant 0 : index
    %325 = vector.load %arg7[%324, %c0_220, %c0_221] : memref<34x24x640xf32, #tpu.memory_space<vmem>>, vector<1x24x640xf32>
    %326 = vector.shape_cast %325 : vector<1x24x640xf32> to vector<24x640xf32>
    %327 = vector.shape_cast %321 : vector<24x640xf32> to vector<1x24x640xf32>
    tpu.vector_store %arg7[%324, %c0_220, %c0_221], %327 {strides = array<i32>} : memref<34x24x640xf32, #tpu.memory_space<vmem>>, vector<1x24x640xf32>,
    %c0_i32_222 = arith.constant 0 : i32
    %328 = arith.cmpi sgt, %arg1, %c0_i32_222 : i32
    %329 = arith.extui %328 : i1 to i32
    %c0_i32_223 = arith.constant 0 : i32
    %330 = arith.cmpi ne, %329, %c0_i32_223 : i32
    scf.if %330 {
      %cst = arith.constant 0.000000e+00 : f32
      %cst_224 = arith.constant 0.000000e+00 : f32
      %cst_225 = arith.constant 0.000000e+00 : f32
      %c0_i32_226 = arith.constant 0 : i32
      %c16_i32_227 = arith.constant 16 : i32
      %331 = arith.addi %c0_i32_226, %c16_i32_227 : i32
      %c1_i32_228 = arith.constant 1 : i32
      %332:3 = scf.for %arg8 = %c0_i32_226 to %331 step %c1_i32_228 iter_args(%arg9 = %cst, %arg10 = %cst_224, %arg11 = %cst_225) -> (f32, f32, f32)  : i32 {
        %c1_i32_243 = arith.constant 1 : i32
        %359 = arith.subi %arg1, %c1_i32_243 : i32
        %c16_i32_244 = arith.constant 16 : i32
        %360 = arith.muli %359, %c16_i32_244 : i32
        %361 = arith.addi %360, %arg8 : i32
        %c8_i32_245 = arith.constant 8 : i32
        %362 = arith.cmpi slt, %361, %c8_i32_245 : i32
        %c0_i32_246 = arith.constant 0 : i32
        %363 = arith.addi %361, %c0_i32_246 : i32
        %c11_i32_247 = arith.constant 11 : i32
        %364 = arith.addi %363, %c11_i32_247 : i32
        %c1_i32_248 = arith.constant 1 : i32
        %365 = arith.subi %arg1, %c1_i32_248 : i32
        %c16_i32_249 = arith.constant 16 : i32
        %366 = arith.muli %365, %c16_i32_249 : i32
        %367 = arith.subi %364, %366 : i32
        %c16_i32_250 = arith.constant 16 : i32
        %368 = arith.cmpi sle, %367, %c16_i32_250 : i32
        %369 = arith.addi %12, %367 : i32
        %c16_i32_251 = arith.constant 16 : i32
        %370 = arith.subi %367, %c16_i32_251 : i32
        %371 = arith.addi %11, %370 : i32
        %372 = arith.select %368, %369, %371 : i32
        %373 = arith.index_cast %372 : i32 to index
        %c0_252 = arith.constant 0 : index
        %c0_253 = arith.constant 0 : index
        %374 = vector.load %arg7[%373, %c0_252, %c0_253] : memref<34x24x640xf32, #tpu.memory_space<vmem>>, vector<1x24x640xf32>
        %375 = vector.shape_cast %374 : vector<1x24x640xf32> to vector<24x640xf32>
        %c1_i32_254 = arith.constant 1 : i32
        %376 = arith.subi %arg1, %c1_i32_254 : i32
        %c16_i32_255 = arith.constant 16 : i32
        %377 = arith.muli %376, %c16_i32_255 : i32
        %378 = arith.subi %363, %377 : i32
        %c16_i32_256 = arith.constant 16 : i32
        %379 = arith.cmpi sle, %378, %c16_i32_256 : i32
        %380 = arith.addi %12, %378 : i32
        %c16_i32_257 = arith.constant 16 : i32
        %381 = arith.subi %378, %c16_i32_257 : i32
        %382 = arith.addi %11, %381 : i32
        %383 = arith.select %379, %380, %382 : i32
        %384 = arith.index_cast %383 : i32 to index
        %c0_258 = arith.constant 0 : index
        %c0_259 = arith.constant 0 : index
        %385 = vector.load %arg7[%384, %c0_258, %c0_259] : memref<34x24x640xf32, #tpu.memory_space<vmem>>, vector<1x24x640xf32>
        %386 = vector.shape_cast %385 : vector<1x24x640xf32> to vector<24x640xf32>
        %387 = arith.subf %375, %386 : vector<24x640xf32>
        %c0_260 = arith.constant 0 : index
        %c0_261 = arith.constant 0 : index
        %c0_262 = arith.constant 0 : index
        %388 = vector.load %arg5[%c0_260, %c0_261, %c0_262] : memref<3x16x24xf32, #tpu.memory_space<vmem>>, vector<1x16x24xf32>
        %389 = vector.shape_cast %388 : vector<1x16x24xf32> to vector<16x24xf32>
        %cst_263 = arith.constant dense<0.000000e+00> : vector<16x640xf32>
        %390 = tpu.matmul %389, %387, %cst_263 {dimension_numbers = #tpu.dot_dimension_numbers<[1], [0], [0], [1], [0, 0, 1, 1], [], []>} : vector<16x24xf32>, vector<24x640xf32>, vector<16x640xf32> -> vector<16x640xf32>
        %c0_264 = arith.constant 0 : index
        %c0_265 = arith.constant 0 : index
        %c0_266 = arith.constant 0 : index
        %391 = vector.load %arg4[%c0_264, %c0_265, %c0_266] : memref<3x128x128xf32, #tpu.memory_space<vmem>>, vector<1x128x128xf32>
        %392 = vector.shape_cast %391 : vector<1x128x128xf32> to vector<128x128xf32>
        %393 = vector.extract_strided_slice %390 {offsets = [0, 0], sizes = [16, 128], strides = [1, 1]} : vector<16x640xf32> to vector<16x128xf32>
        %cst_267 = arith.constant dense<0.000000e+00> : vector<16x128xf32>
        %394 = tpu.matmul %393, %392, %cst_267 {dimension_numbers = #tpu.dot_dimension_numbers<[1], [0], [0], [1], [0, 0, 1, 1], [], []>} : vector<16x128xf32>, vector<128x128xf32>, vector<16x128xf32> -> vector<16x128xf32>
        %395 = vector.extract_strided_slice %390 {offsets = [0, 128], sizes = [16, 128], strides = [1, 1]} : vector<16x640xf32> to vector<16x128xf32>
        %cst_268 = arith.constant dense<0.000000e+00> : vector<16x128xf32>
        %396 = tpu.matmul %395, %392, %cst_268 {dimension_numbers = #tpu.dot_dimension_numbers<[1], [0], [0], [1], [0, 0, 1, 1], [], []>} : vector<16x128xf32>, vector<128x128xf32>, vector<16x128xf32> -> vector<16x128xf32>
        %397 = vector.extract_strided_slice %390 {offsets = [0, 256], sizes = [16, 128], strides = [1, 1]} : vector<16x640xf32> to vector<16x128xf32>
        %cst_269 = arith.constant dense<0.000000e+00> : vector<16x128xf32>
        %398 = tpu.matmul %397, %392, %cst_269 {dimension_numbers = #tpu.dot_dimension_numbers<[1], [0], [0], [1], [0, 0, 1, 1], [], []>} : vector<16x128xf32>, vector<128x128xf32>, vector<16x128xf32> -> vector<16x128xf32>
        %399 = vector.extract_strided_slice %390 {offsets = [0, 384], sizes = [16, 128], strides = [1, 1]} : vector<16x640xf32> to vector<16x128xf32>
        %cst_270 = arith.constant dense<0.000000e+00> : vector<16x128xf32>
        %400 = tpu.matmul %399, %392, %cst_270 {dimension_numbers = #tpu.dot_dimension_numbers<[1], [0], [0], [1], [0, 0, 1, 1], [], []>} : vector<16x128xf32>, vector<128x128xf32>, vector<16x128xf32> -> vector<16x128xf32>
        %401 = vector.extract_strided_slice %390 {offsets = [0, 512], sizes = [16, 128], strides = [1, 1]} : vector<16x640xf32> to vector<16x128xf32>
        %cst_271 = arith.constant dense<0.000000e+00> : vector<16x128xf32>
        %402 = tpu.matmul %401, %392, %cst_271 {dimension_numbers = #tpu.dot_dimension_numbers<[1], [0], [0], [1], [0, 0, 1, 1], [], []>} : vector<16x128xf32>, vector<128x128xf32>, vector<16x128xf32> -> vector<16x128xf32>
        %403 = arith.mulf %394, %396 : vector<16x128xf32>
        %cst_272 = arith.constant 7.51314801E-4 : f32
        %404 = vector.broadcast %cst_272 : f32 to vector<16x128xf32>
        %405 = arith.mulf %403, %404 : vector<16x128xf32>
        %406 = arith.subf %402, %405 : vector<16x128xf32>
        %407 = arith.mulf %394, %394 : vector<16x128xf32>
        %cst_273 = arith.constant 7.51314801E-4 : f32
        %408 = vector.broadcast %cst_273 : f32 to vector<16x128xf32>
        %409 = arith.mulf %407, %408 : vector<16x128xf32>
        %410 = arith.subf %398, %409 : vector<16x128xf32>
        %411 = arith.mulf %396, %396 : vector<16x128xf32>
        %cst_274 = arith.constant 7.51314801E-4 : f32
        %412 = vector.broadcast %cst_274 : f32 to vector<16x128xf32>
        %413 = arith.mulf %411, %412 : vector<16x128xf32>
        %414 = arith.subf %400, %413 : vector<16x128xf32>
        %415 = arith.mulf %406, %406 : vector<16x128xf32>
        %416 = arith.mulf %410, %414 : vector<16x128xf32>
        %cst_275 = arith.constant 1.000000e-03 : f32
        %417 = vector.broadcast %cst_275 : f32 to vector<16x128xf32>
        %418 = arith.addf %416, %417 : vector<16x128xf32>
        %419 = tpu.reciprocal %418 {approx = true} : vector<16x128xf32> -> vector<16x128xf32>
        %420 = arith.mulf %415, %419 : vector<16x128xf32>
        %421 = vector.shape_cast %420 : vector<16x128xf32> to vector<1x16x128xf32>
        %cst_276 = arith.constant dense<0.000000e+00> : vector<1xf32>
        %422 = vector.multi_reduction <add>, %421, %cst_276 [1, 2] : vector<1x16x128xf32> to vector<1xf32>
        %423 = vector.shape_cast %422 : vector<1xf32> to vector<1x1x1xf32>
        %424 = vector.extract %423[0, 0, 0] : f32 from vector<1x1x1xf32>
        %cst_277 = arith.constant 0.000000e+00 : f32
        %425 = arith.select %362, %424, %cst_277 : f32
        %426 = arith.addf %arg9, %425 : f32
        %c1_i32_278 = arith.constant 1 : i32
        %427 = arith.addi %361, %c1_i32_278 : i32
        %c9_i32_279 = arith.constant 9 : i32
        %428 = arith.addi %427, %c9_i32_279 : i32
        %c1_i32_280 = arith.constant 1 : i32
        %429 = arith.subi %arg1, %c1_i32_280 : i32
        %c16_i32_281 = arith.constant 16 : i32
        %430 = arith.muli %429, %c16_i32_281 : i32
        %431 = arith.subi %428, %430 : i32
        %c16_i32_282 = arith.constant 16 : i32
        %432 = arith.cmpi sle, %431, %c16_i32_282 : i32
        %433 = arith.addi %12, %431 : i32
        %c16_i32_283 = arith.constant 16 : i32
        %434 = arith.subi %431, %c16_i32_283 : i32
        %435 = arith.addi %11, %434 : i32
        %436 = arith.select %432, %433, %435 : i32
        %437 = arith.index_cast %436 : i32 to index
        %c0_284 = arith.constant 0 : index
        %c0_285 = arith.constant 0 : index
        %438 = vector.load %arg7[%437, %c0_284, %c0_285] : memref<34x24x640xf32, #tpu.memory_space<vmem>>, vector<1x24x640xf32>
        %439 = vector.shape_cast %438 : vector<1x24x640xf32> to vector<24x640xf32>
        %c1_i32_286 = arith.constant 1 : i32
        %440 = arith.subi %arg1, %c1_i32_286 : i32
        %c16_i32_287 = arith.constant 16 : i32
        %441 = arith.muli %440, %c16_i32_287 : i32
        %442 = arith.subi %427, %441 : i32
        %c16_i32_288 = arith.constant 16 : i32
        %443 = arith.cmpi sle, %442, %c16_i32_288 : i32
        %444 = arith.addi %12, %442 : i32
        %c16_i32_289 = arith.constant 16 : i32
        %445 = arith.subi %442, %c16_i32_289 : i32
        %446 = arith.addi %11, %445 : i32
        %447 = arith.select %443, %444, %446 : i32
        %448 = arith.index_cast %447 : i32 to index
        %c0_290 = arith.constant 0 : index
        %c0_291 = arith.constant 0 : index
        %449 = vector.load %arg7[%448, %c0_290, %c0_291] : memref<34x24x640xf32, #tpu.memory_space<vmem>>, vector<1x24x640xf32>
        %450 = vector.shape_cast %449 : vector<1x24x640xf32> to vector<24x640xf32>
        %451 = arith.subf %439, %450 : vector<24x640xf32>
        %c1_292 = arith.constant 1 : index
        %c0_293 = arith.constant 0 : index
        %c0_294 = arith.constant 0 : index
        %452 = vector.load %arg5[%c1_292, %c0_293, %c0_294] : memref<3x16x24xf32, #tpu.memory_space<vmem>>, vector<1x16x24xf32>
        %453 = vector.shape_cast %452 : vector<1x16x24xf32> to vector<16x24xf32>
        %cst_295 = arith.constant dense<0.000000e+00> : vector<16x640xf32>
        %454 = tpu.matmul %453, %451, %cst_295 {dimension_numbers = #tpu.dot_dimension_numbers<[1], [0], [0], [1], [0, 0, 1, 1], [], []>} : vector<16x24xf32>, vector<24x640xf32>, vector<16x640xf32> -> vector<16x640xf32>
        %c1_296 = arith.constant 1 : index
        %c0_297 = arith.constant 0 : index
        %c0_298 = arith.constant 0 : index
        %455 = vector.load %arg4[%c1_296, %c0_297, %c0_298] : memref<3x128x128xf32, #tpu.memory_space<vmem>>, vector<1x128x128xf32>
        %456 = vector.shape_cast %455 : vector<1x128x128xf32> to vector<128x128xf32>
        %457 = vector.extract_strided_slice %454 {offsets = [0, 0], sizes = [16, 128], strides = [1, 1]} : vector<16x640xf32> to vector<16x128xf32>
        %cst_299 = arith.constant dense<0.000000e+00> : vector<16x128xf32>
        %458 = tpu.matmul %457, %456, %cst_299 {dimension_numbers = #tpu.dot_dimension_numbers<[1], [0], [0], [1], [0, 0, 1, 1], [], []>} : vector<16x128xf32>, vector<128x128xf32>, vector<16x128xf32> -> vector<16x128xf32>
        %459 = vector.extract_strided_slice %454 {offsets = [0, 128], sizes = [16, 128], strides = [1, 1]} : vector<16x640xf32> to vector<16x128xf32>
        %cst_300 = arith.constant dense<0.000000e+00> : vector<16x128xf32>
        %460 = tpu.matmul %459, %456, %cst_300 {dimension_numbers = #tpu.dot_dimension_numbers<[1], [0], [0], [1], [0, 0, 1, 1], [], []>} : vector<16x128xf32>, vector<128x128xf32>, vector<16x128xf32> -> vector<16x128xf32>
        %461 = vector.extract_strided_slice %454 {offsets = [0, 256], sizes = [16, 128], strides = [1, 1]} : vector<16x640xf32> to vector<16x128xf32>
        %cst_301 = arith.constant dense<0.000000e+00> : vector<16x128xf32>
        %462 = tpu.matmul %461, %456, %cst_301 {dimension_numbers = #tpu.dot_dimension_numbers<[1], [0], [0], [1], [0, 0, 1, 1], [], []>} : vector<16x128xf32>, vector<128x128xf32>, vector<16x128xf32> -> vector<16x128xf32>
        %463 = vector.extract_strided_slice %454 {offsets = [0, 384], sizes = [16, 128], strides = [1, 1]} : vector<16x640xf32> to vector<16x128xf32>
        %cst_302 = arith.constant dense<0.000000e+00> : vector<16x128xf32>
        %464 = tpu.matmul %463, %456, %cst_302 {dimension_numbers = #tpu.dot_dimension_numbers<[1], [0], [0], [1], [0, 0, 1, 1], [], []>} : vector<16x128xf32>, vector<128x128xf32>, vector<16x128xf32> -> vector<16x128xf32>
        %465 = vector.extract_strided_slice %454 {offsets = [0, 512], sizes = [16, 128], strides = [1, 1]} : vector<16x640xf32> to vector<16x128xf32>
        %cst_303 = arith.constant dense<0.000000e+00> : vector<16x128xf32>
        %466 = tpu.matmul %465, %456, %cst_303 {dimension_numbers = #tpu.dot_dimension_numbers<[1], [0], [0], [1], [0, 0, 1, 1], [], []>} : vector<16x128xf32>, vector<128x128xf32>, vector<16x128xf32> -> vector<16x128xf32>
        %467 = arith.mulf %458, %460 : vector<16x128xf32>
        %cst_304 = arith.constant 0.00137174211 : f32
        %468 = vector.broadcast %cst_304 : f32 to vector<16x128xf32>
        %469 = arith.mulf %467, %468 : vector<16x128xf32>
        %470 = arith.subf %466, %469 : vector<16x128xf32>
        %471 = arith.mulf %458, %458 : vector<16x128xf32>
        %cst_305 = arith.constant 0.00137174211 : f32
        %472 = vector.broadcast %cst_305 : f32 to vector<16x128xf32>
        %473 = arith.mulf %471, %472 : vector<16x128xf32>
        %474 = arith.subf %462, %473 : vector<16x128xf32>
        %475 = arith.mulf %460, %460 : vector<16x128xf32>
        %cst_306 = arith.constant 0.00137174211 : f32
        %476 = vector.broadcast %cst_306 : f32 to vector<16x128xf32>
        %477 = arith.mulf %475, %476 : vector<16x128xf32>
        %478 = arith.subf %464, %477 : vector<16x128xf32>
        %479 = arith.mulf %470, %470 : vector<16x128xf32>
        %480 = arith.mulf %474, %478 : vector<16x128xf32>
        %cst_307 = arith.constant 1.000000e-03 : f32
        %481 = vector.broadcast %cst_307 : f32 to vector<16x128xf32>
        %482 = arith.addf %480, %481 : vector<16x128xf32>
        %483 = tpu.reciprocal %482 {approx = true} : vector<16x128xf32> -> vector<16x128xf32>
        %484 = arith.mulf %479, %483 : vector<16x128xf32>
        %485 = vector.shape_cast %484 : vector<16x128xf32> to vector<1x16x128xf32>
        %cst_308 = arith.constant dense<0.000000e+00> : vector<1xf32>
        %486 = vector.multi_reduction <add>, %485, %cst_308 [1, 2] : vector<1x16x128xf32> to vector<1xf32>
        %487 = vector.shape_cast %486 : vector<1xf32> to vector<1x1x1xf32>
        %488 = vector.extract %487[0, 0, 0] : f32 from vector<1x1x1xf32>
        %cst_309 = arith.constant 0.000000e+00 : f32
        %489 = arith.select %362, %488, %cst_309 : f32
        %490 = arith.addf %arg10, %489 : f32
        %c2_i32_310 = arith.constant 2 : i32
        %491 = arith.addi %361, %c2_i32_310 : i32
        %c7_i32_311 = arith.constant 7 : i32
        %492 = arith.addi %491, %c7_i32_311 : i32
        %c1_i32_312 = arith.constant 1 : i32
        %493 = arith.subi %arg1, %c1_i32_312 : i32
        %c16_i32_313 = arith.constant 16 : i32
        %494 = arith.muli %493, %c16_i32_313 : i32
        %495 = arith.subi %492, %494 : i32
        %c16_i32_314 = arith.constant 16 : i32
        %496 = arith.cmpi sle, %495, %c16_i32_314 : i32
        %497 = arith.addi %12, %495 : i32
        %c16_i32_315 = arith.constant 16 : i32
        %498 = arith.subi %495, %c16_i32_315 : i32
        %499 = arith.addi %11, %498 : i32
        %500 = arith.select %496, %497, %499 : i32
        %501 = arith.index_cast %500 : i32 to index
        %c0_316 = arith.constant 0 : index
        %c0_317 = arith.constant 0 : index
        %502 = vector.load %arg7[%501, %c0_316, %c0_317] : memref<34x24x640xf32, #tpu.memory_space<vmem>>, vector<1x24x640xf32>
        %503 = vector.shape_cast %502 : vector<1x24x640xf32> to vector<24x640xf32>
        %c1_i32_318 = arith.constant 1 : i32
        %504 = arith.subi %arg1, %c1_i32_318 : i32
        %c16_i32_319 = arith.constant 16 : i32
        %505 = arith.muli %504, %c16_i32_319 : i32
        %506 = arith.subi %491, %505 : i32
        %c16_i32_320 = arith.constant 16 : i32
        %507 = arith.cmpi sle, %506, %c16_i32_320 : i32
        %508 = arith.addi %12, %506 : i32
        %c16_i32_321 = arith.constant 16 : i32
        %509 = arith.subi %506, %c16_i32_321 : i32
        %510 = arith.addi %11, %509 : i32
        %511 = arith.select %507, %508, %510 : i32
        %512 = arith.index_cast %511 : i32 to index
        %c0_322 = arith.constant 0 : index
        %c0_323 = arith.constant 0 : index
        %513 = vector.load %arg7[%512, %c0_322, %c0_323] : memref<34x24x640xf32, #tpu.memory_space<vmem>>, vector<1x24x640xf32>
        %514 = vector.shape_cast %513 : vector<1x24x640xf32> to vector<24x640xf32>
        %515 = arith.subf %503, %514 : vector<24x640xf32>
        %c2_324 = arith.constant 2 : index
        %c0_325 = arith.constant 0 : index
        %c0_326 = arith.constant 0 : index
        %516 = vector.load %arg5[%c2_324, %c0_325, %c0_326] : memref<3x16x24xf32, #tpu.memory_space<vmem>>, vector<1x16x24xf32>
        %517 = vector.shape_cast %516 : vector<1x16x24xf32> to vector<16x24xf32>
        %cst_327 = arith.constant dense<0.000000e+00> : vector<16x640xf32>
        %518 = tpu.matmul %517, %515, %cst_327 {dimension_numbers = #tpu.dot_dimension_numbers<[1], [0], [0], [1], [0, 0, 1, 1], [], []>} : vector<16x24xf32>, vector<24x640xf32>, vector<16x640xf32> -> vector<16x640xf32>
        %c2_328 = arith.constant 2 : index
        %c0_329 = arith.constant 0 : index
        %c0_330 = arith.constant 0 : index
        %519 = vector.load %arg4[%c2_328, %c0_329, %c0_330] : memref<3x128x128xf32, #tpu.memory_space<vmem>>, vector<1x128x128xf32>
        %520 = vector.shape_cast %519 : vector<1x128x128xf32> to vector<128x128xf32>
        %521 = vector.extract_strided_slice %518 {offsets = [0, 0], sizes = [16, 128], strides = [1, 1]} : vector<16x640xf32> to vector<16x128xf32>
        %cst_331 = arith.constant dense<0.000000e+00> : vector<16x128xf32>
        %522 = tpu.matmul %521, %520, %cst_331 {dimension_numbers = #tpu.dot_dimension_numbers<[1], [0], [0], [1], [0, 0, 1, 1], [], []>} : vector<16x128xf32>, vector<128x128xf32>, vector<16x128xf32> -> vector<16x128xf32>
        %523 = vector.extract_strided_slice %518 {offsets = [0, 128], sizes = [16, 128], strides = [1, 1]} : vector<16x640xf32> to vector<16x128xf32>
        %cst_332 = arith.constant dense<0.000000e+00> : vector<16x128xf32>
        %524 = tpu.matmul %523, %520, %cst_332 {dimension_numbers = #tpu.dot_dimension_numbers<[1], [0], [0], [1], [0, 0, 1, 1], [], []>} : vector<16x128xf32>, vector<128x128xf32>, vector<16x128xf32> -> vector<16x128xf32>
        %525 = vector.extract_strided_slice %518 {offsets = [0, 256], sizes = [16, 128], strides = [1, 1]} : vector<16x640xf32> to vector<16x128xf32>
        %cst_333 = arith.constant dense<0.000000e+00> : vector<16x128xf32>
        %526 = tpu.matmul %525, %520, %cst_333 {dimension_numbers = #tpu.dot_dimension_numbers<[1], [0], [0], [1], [0, 0, 1, 1], [], []>} : vector<16x128xf32>, vector<128x128xf32>, vector<16x128xf32> -> vector<16x128xf32>
        %527 = vector.extract_strided_slice %518 {offsets = [0, 384], sizes = [16, 128], strides = [1, 1]} : vector<16x640xf32> to vector<16x128xf32>
        %cst_334 = arith.constant dense<0.000000e+00> : vector<16x128xf32>
        %528 = tpu.matmul %527, %520, %cst_334 {dimension_numbers = #tpu.dot_dimension_numbers<[1], [0], [0], [1], [0, 0, 1, 1], [], []>} : vector<16x128xf32>, vector<128x128xf32>, vector<16x128xf32> -> vector<16x128xf32>
        %529 = vector.extract_strided_slice %518 {offsets = [0, 512], sizes = [16, 128], strides = [1, 1]} : vector<16x640xf32> to vector<16x128xf32>
        %cst_335 = arith.constant dense<0.000000e+00> : vector<16x128xf32>
        %530 = tpu.matmul %529, %520, %cst_335 {dimension_numbers = #tpu.dot_dimension_numbers<[1], [0], [0], [1], [0, 0, 1, 1], [], []>} : vector<16x128xf32>, vector<128x128xf32>, vector<16x128xf32> -> vector<16x128xf32>
        %531 = arith.mulf %522, %524 : vector<16x128xf32>
        %cst_336 = arith.constant 0.002915452 : f32
        %532 = vector.broadcast %cst_336 : f32 to vector<16x128xf32>
        %533 = arith.mulf %531, %532 : vector<16x128xf32>
        %534 = arith.subf %530, %533 : vector<16x128xf32>
        %535 = arith.mulf %522, %522 : vector<16x128xf32>
        %cst_337 = arith.constant 0.002915452 : f32
        %536 = vector.broadcast %cst_337 : f32 to vector<16x128xf32>
        %537 = arith.mulf %535, %536 : vector<16x128xf32>
        %538 = arith.subf %526, %537 : vector<16x128xf32>
        %539 = arith.mulf %524, %524 : vector<16x128xf32>
        %cst_338 = arith.constant 0.002915452 : f32
        %540 = vector.broadcast %cst_338 : f32 to vector<16x128xf32>
        %541 = arith.mulf %539, %540 : vector<16x128xf32>
        %542 = arith.subf %528, %541 : vector<16x128xf32>
        %543 = arith.mulf %534, %534 : vector<16x128xf32>
        %544 = arith.mulf %538, %542 : vector<16x128xf32>
        %cst_339 = arith.constant 1.000000e-03 : f32
        %545 = vector.broadcast %cst_339 : f32 to vector<16x128xf32>
        %546 = arith.addf %544, %545 : vector<16x128xf32>
        %547 = tpu.reciprocal %546 {approx = true} : vector<16x128xf32> -> vector<16x128xf32>
        %548 = arith.mulf %543, %547 : vector<16x128xf32>
        %549 = vector.shape_cast %548 : vector<16x128xf32> to vector<1x16x128xf32>
        %cst_340 = arith.constant dense<0.000000e+00> : vector<1xf32>
        %550 = vector.multi_reduction <add>, %549, %cst_340 [1, 2] : vector<1x16x128xf32> to vector<1xf32>
        %551 = vector.shape_cast %550 : vector<1xf32> to vector<1x1x1xf32>
        %552 = vector.extract %551[0, 0, 0] : f32 from vector<1x1x1xf32>
        %cst_341 = arith.constant 0.000000e+00 : f32
        %553 = arith.select %362, %552, %cst_341 : f32
        %554 = arith.addf %arg11, %553 : f32
        scf.yield %426, %490, %554 : f32, f32, f32
      }
      %c16_i32_229 = arith.constant 16 : i32
      %333 = tpu.iota {dimensions = array<i32: 0>} : vector<8x128xi32>
      %cst_230 = arith.constant 0.000000e+00 : f32
      %334 = vector.broadcast %cst_230 : f32 to vector<8x128xf32>
      %c0_i32_231 = arith.constant 0 : i32
      %335 = vector.broadcast %c0_i32_231 : i32 to vector<8x128xi32>
      %336 = arith.cmpi eq, %333, %335 : vector<8x128xi32>
      %cst_232 = arith.constant 0.000000e+00 : f32
      %337 = vector.broadcast %332#0 : f32 to vector<8x128xf32>
      %338 = vector.broadcast %cst_232 : f32 to vector<8x128xf32>
      %339 = arith.select %336, %337, %338 : vector<8x128xi1>, vector<8x128xf32>
      %340 = arith.addf %334, %339 : vector<8x128xf32>
      %c1_i32_233 = arith.constant 1 : i32
      %341 = vector.broadcast %c1_i32_233 : i32 to vector<8x128xi32>
      %342 = arith.cmpi eq, %333, %341 : vector<8x128xi32>
      %cst_234 = arith.constant 0.000000e+00 : f32
      %343 = vector.broadcast %332#1 : f32 to vector<8x128xf32>
      %344 = vector.broadcast %cst_234 : f32 to vector<8x128xf32>
      %345 = arith.select %342, %343, %344 : vector<8x128xi1>, vector<8x128xf32>
      %346 = arith.addf %340, %345 : vector<8x128xf32>
      %c2_i32_235 = arith.constant 2 : i32
      %347 = vector.broadcast %c2_i32_235 : i32 to vector<8x128xi32>
      %348 = arith.cmpi eq, %333, %347 : vector<8x128xi32>
      %cst_236 = arith.constant 0.000000e+00 : f32
      %349 = vector.broadcast %332#2 : f32 to vector<8x128xf32>
      %350 = vector.broadcast %cst_236 : f32 to vector<8x128xf32>
      %351 = arith.select %348, %349, %350 : vector<8x128xi1>, vector<8x128xf32>
      %352 = arith.addf %346, %351 : vector<8x128xf32>
      %c0_237 = arith.constant 0 : index
      %c0_238 = arith.constant 0 : index
      %c0_239 = arith.constant 0 : index
      %353 = vector.load %arg6[%c0_237, %c0_238, %c0_239] : memref<1x8x128xf32, #tpu.memory_space<vmem>>, vector<1x8x128xf32>
      %354 = vector.shape_cast %353 : vector<1x8x128xf32> to vector<8x128xf32>
      %355 = arith.addf %354, %352 : vector<8x128xf32>
      %c0_240 = arith.constant 0 : index
      %c0_241 = arith.constant 0 : index
      %c0_242 = arith.constant 0 : index
      %356 = vector.load %arg6[%c0_240, %c0_241, %c0_242] : memref<1x8x128xf32, #tpu.memory_space<vmem>>, vector<1x8x128xf32>
      %357 = vector.shape_cast %356 : vector<1x8x128xf32> to vector<8x128xf32>
      %358 = vector.shape_cast %355 : vector<8x128xf32> to vector<1x8x128xf32>
      tpu.vector_store %arg6[%c0_240, %c0_241, %c0_242], %358 {strides = array<i32>} : memref<1x8x128xf32, #tpu.memory_space<vmem>>, vector<1x8x128xf32>,
    } else {
    }
    return
  }
  func.func @transform_0(%arg0: i32, %arg1: i32) -> (i32, i32, i32, i32) {
    %c0_i32 = arith.constant 0 : i32
    %c0_i32_0 = arith.constant 0 : i32
    %c0_i32_1 = arith.constant 0 : i32
    return %arg0, %arg1, %c0_i32, %c0_i32_0 : i32, i32, i32, i32
  }
  func.func @transform_1(%arg0: i32, %arg1: i32) -> (i32, i32, i32, i32) {
    %c0_i32 = arith.constant 0 : i32
    %c0_i32_0 = arith.constant 0 : i32
    %c0_i32_1 = arith.constant 0 : i32
    return %arg0, %arg1, %c0_i32, %c0_i32_0 : i32, i32, i32, i32
  }
  func.func @transform_2(%arg0: i32, %arg1: i32) -> (i32, i32, i32) {
    %c0_i32 = arith.constant 0 : i32
    %c0_i32_0 = arith.constant 0 : i32
    %c0_i32_1 = arith.constant 0 : i32
    %c0_i32_2 = arith.constant 0 : i32
    return %c0_i32, %c0_i32_0, %c0_i32_1 : i32, i32, i32
  }
  func.func @transform_3(%arg0: i32, %arg1: i32) -> (i32, i32, i32) {
    %c0_i32 = arith.constant 0 : i32
    %c0_i32_0 = arith.constant 0 : i32
    %c0_i32_1 = arith.constant 0 : i32
    %c0_i32_2 = arith.constant 0 : i32
    return %c0_i32, %c0_i32_0, %c0_i32_1 : i32, i32, i32
  }
  func.func @transform_4(%arg0: i32, %arg1: i32) -> (i32, i32, i32) {
    %c0_i32 = arith.constant 0 : i32
    %c0_i32_0 = arith.constant 0 : i32
    %c0_i32_1 = arith.constant 0 : i32
    return %arg0, %c0_i32, %c0_i32_0 : i32, i32, i32
  }
}

</mosaic_0001>

<bundles_post_ra>
// kernel: tpu_custom_call.1
= control target key start
LH: loop header
LB: loop body
LE: loop exit
PB: predicated region body
PF: predicated region fallthrough
CT: control target
= control target key end

     0   :  { %s7753_s0 = inlined_call_operand.hbm [shape: f32[2,32,24,128], index: 0, kind: input, shape index: {}]   ;;  %s7754_s1 = inlined_call_operand.hbm [shape: f32[2,32,24,128], index: 1, kind: input, shape index: {}]   ;;  %s7755_s2 = inlined_call_operand.hbm [shape: f32[3,128,128], index: 2, kind: input, shape index: {}]   ;;  %s7756_s3 = inlined_call_operand.hbm [shape: f32[3,16,24], index: 3, kind: input, shape index: {}]   ;;  %s7757_s4 = inlined_call_operand.hbm [shape: f32[2,8,128], index: 4, kind: output, shape index: {}]  }
   0x1   :  { %7774 = sst [smem:[#allocation24_spill]] %s7753_s0 }
   0x2   :  { %7775 = sst [smem:[#allocation25_spill]] %s7755_s2 }
   0x3   :  { %7776 = sst [smem:[#allocation26_spill]] %s7756_s3 }
   0x4   :  { %7777 = sst [smem:[#allocation27_spill]] %s7757_s4 }
   0x5   :  { %9 = vsyncpa [#allocation4], 0 }
   0x6   :  { %11 = vsyncpa [#allocation4 + $0x1], 0 }
   0x7   :  { %12 = vsyncpa [#allocation7], 0 }
   0x8   :  { %14 = vsyncpa [#allocation7 + $0x1], 0 }
   0x9   :  { %15 = vsyncpa [#allocation10], 0 }
   0xa   :  { %16 = vsyncpa [#allocation5], 0 }
   0xb   :  { %18 = vsyncpa [#allocation5 + $0x1], 0  ;;  %s6447_s15 = smov 0   ;;  %s6449_s16 = smov 0  }
   0xc   :  { %s6451_s17 = smov 0   ;;  %s6453_s18 = smov 0  }
   0xd   :  { %s6455_s19 = smov 0   ;;  %s6457_s20 = smov 0  }
   0xe   :  { %s6459_s21 = smov 0   ;;  %s6461_s22 = smov 0  }
   0xf   :  { %s6463_s23 = smov 0   ;;  %s6465_s24 = smov 0  }
  0x10   :  { %s6467_s25 = smov 0  }
  0x11 LB: > { %7778 = sst [smem:[#allocation17_spill]] %s6355_s15  ;;  %s6501_s26 = sadd.s32 4294967295, %s6395_s25   ;;  %s6395_s25 = sphi %s6467_s25, %s24_s25   ;;  %s6391_s24 = sphi %s6465_s24, %s7828_s24   ;;  %s6387_s23 = sphi %s6463_s23, %s7820_s23   ;;  %s6383_s22 = sphi %s6461_s22, %s7827_s22   ;;  %s6379_s21 = sphi %s6459_s21, %s7819_s21   ;;  %s6375_s20 = sphi %s6457_s20, %s7826_s20   ;;  %s6371_s19 = sphi %s6455_s19, %s7825_s19   ;;  %s6367_s18 = sphi %s6453_s18, %s7824_s18   ;;  %s6363_s17 = sphi %s6451_s17, %s7823_s17   ;;  %s6359_s16 = sphi %s6449_s16, %s7822_s16   ;;  %s6355_s15 = sphi %s6447_s15, %s7821_s15  }
  0x12   : > { %7779 = sst [smem:[#allocation18_spill]] %s6379_s21  ;;  %s3919_s27 = sadd.s32 4294967294, %s6395_s25  }
  0x13   : > { %7780 = sst [smem:[#allocation19_spill]] %s6383_s22  ;;  %p58_p0 = scmp.ne.s32.totalorder %s6371_s19, %s6367_s18 }
  0x14   : > { %7781 = sst [smem:[#allocation20_spill]] %s6387_s23  ;;  %p7758_p1 = scmp.eq.s32.totalorder %s6501_s26, 0 }
  0x15   : > { %p151_p2 = scmp.ne.s32.totalorder %s6363_s17, %s6359_s16  ;;  %p152_p4 = scmp.eq.s32.totalorder %s6501_s26, 3 }
  0x16   : > { %p6511_p3 = por %p7758_p1, %p58_p0  ;;  %p157_p5 = scmp.ne.s32.totalorder %s6359_s16, %s6355_s15 }
  0x17   : > { %p158_p6 = scmp.eq.s32.totalorder %s3919_s27, 3  ;;  %p6518_p7 = por %p152_p4, %p151_p2 }
  0x18   : > { %s7782_s29 = scalar_select %p6511_p3, 1, 0 }
  0x19   : > { %s7783_s30 = scalar_select %p6518_p7, 1, 0 }
  0x1a   : > { %p3920_p8 = scmp.ge.s32.totalorder %s6395_s25, 1  ;;  %p6523_p9 = por %p158_p6, %p157_p5 }
  0x1b   : > { %7784 = sst [smem:[#allocation21_spill]] %s7783_s30  ;;  %p165_p10 = scmp.lt.s32.totalorder %s6395_s25, 5 }
  0x1c   : > { %s7785_s5 = scalar_select %p6523_p9, 1, 0 }
  0x1d   : > { %p6528_p11 = pnand %p3920_p8, %p165_p10  ;;  %s6413_s7 = smov [#allocation8]  }
  0x1e   : > { %7786 = sst [smem:[#allocation22_spill]] %s7785_s5  ;;  %s177_s8 = sshll.u32 %s6413_s7, 4  ;;  %s178_s8 = int_to_ptr.vmem [resolvable:$true] %s177_s8 }
  0x1f   : > { %s7787_s6 = scalar_select %p6528_p11, 1, 0 }
  0x20   : > { %p5967_p12 = pneg %p6528_p11  ;;  %s6414_s10 = smov [#allocation9]  }
  0x21   : > { %s190_s11 = sshll.u32 %s6414_s10, 4  ;;  %s7789_s2 = sld [smem:[#allocation25_spill]]  ;;  %s6540_s11 = int_to_ptr.vmem [resolvable:$true] %s190_s11 }
  0x22   : > { %p6536_p13 = pnand %p5967_p12, %p7758_p1 }
  0x24   : > { %p6131_p2 = pneg %p6536_p13 }
  0x27   : > { %s6129_s14 = scalar_lea.hbm %s7789_s2, 6144 }
  0x28   : > { %p6130_p0 = scmp.ne.s32.totalorder %s7789_s2, %s6129_s14  ;;  %p6136_p6 = scmp.lt.u32.totalorder %s6129_s14, %s7789_s2 }
  0x2a   : > { %p6132_p4 = pnand %p6131_p2, %p6130_p0 }
  0x2c   : > { %p6133_p5 = pneg %p6132_p4 }
  0x2e   : > { %p6138_p8 = pnand %p6136_p6, %p6133_p5 }
  0x30   : > { %6141 = shalt.err (!%p6138_p8)
}
  0x31   : > { %s6142_s10 = scalar_lea.vmem %s178_s8, 6144  ;;  %p6150_p9 = scmp.lt.s32.totalorder %s178_s8, %s178_s8 }
  0x32   : > { %p6143_p10 = scmp.ne.s32.totalorder %s178_s8, %s6142_s10  ;;  %p6151_p7 = scmp.lt.s32.totalorder %s6142_s10, %s6142_s10 }
  0x34   : > { %p6145_p12 = pnand %p6143_p10, %p6131_p2  ;;  %p6152_p3 = por %p6151_p7, %p6150_p9 }
  0x36   : > { %p6146_p1 = pneg %p6145_p12 }
  0x38   : > { %p6153_p11 = pnand %p6152_p3, %p6146_p1 }
  0x3a   : > { %6156 = shalt.err (!%p6153_p11)
}
  0x3b   : > { %s7765_s12 = smov 128   ;;  %s7767_s13 = smov 8  }
  0x3c   : > { %5970 = dma.hbm_to_vmem [thread:$0]  (!%p6536_p13), %s7789_s2, 6144, %s178_s8, [#allocation7], %s7765_s12, %s7765_s12, %s7767_s13  }
  0x3d   : > { %s7790_s3 = sld [smem:[#allocation26_spill]] }
  0x43   : > { %s6157_s7 = scalar_lea.hbm %s7790_s3, 768 }
  0x44   : > { %p6158_p1 = scmp.ne.s32.totalorder %s7790_s3, %s6157_s7  ;;  %p6164_p9 = scmp.lt.u32.totalorder %s6157_s7, %s7790_s3 }
  0x46   : > { %p6160_p3 = pnand %p6158_p1, %p6131_p2 }
  0x48   : > { %p6161_p7 = pneg %p6160_p3 }
  0x4a   : > { %p6166_p11 = pnand %p6164_p9, %p6161_p7 }
  0x4c   : > { %6169 = shalt.err (!%p6166_p11)
}
  0x4d   : > { %s6170_s8 = scalar_lea.vmem %s6540_s11, 768  ;;  %p6178_p6 = scmp.lt.s32.totalorder %s6540_s11, %s6540_s11 }
  0x4e   : > { %p6171_p0 = scmp.ne.s32.totalorder %s6540_s11, %s6170_s8  ;;  %p6179_p8 = scmp.lt.s32.totalorder %s6170_s8, %s6170_s8 }
  0x50   : > { %p6173_p4 = pnand %p6171_p0, %p6131_p2  ;;  %p6180_p10 = por %p6179_p8, %p6178_p6 }
  0x52   : > { %p6174_p5 = pneg %p6173_p4 }
  0x54   : > { %p6181_p12 = pnand %p6180_p10, %p6174_p5 }
  0x56   : > { %6184 = shalt.err (!%p6181_p12)
}
  0x57   : > { %5973 = dma.hbm_to_vmem [thread:$0]  (!%p6536_p13), %s7790_s3, 768, %s6540_s11, [#allocation10], %s7765_s12, %s7765_s12, %s7767_s13  }
  0x58   : > { %s33_s5 = sadd.s32 1, %s6387_s23  ;;  %s36_s9 = sadd.s32 1, %s6391_s24 }
  0x59   : > { %p34_p2 = scmp.ge.s32.totalorder %s33_s5, 2  ;;  %s45_s28 = sadd.s32 1, %s6375_s20 }
  0x5a   : > { %p52_p1 = scmp.ne.s32.totalorder %s6375_s20, %s6371_s19  ;;  %p53_p3 = scmp.eq.s32.totalorder %s6395_s25, 0 }
  0x5b   : > { %s7830_s5 = smov (%p34_p2, %s33_s5), 0  ;;  %s7832_s9 = smov (!%p34_p2, %s36_s9), %s6391_s24 }
  0x5c   : > { %7791 = sst [smem:[#allocation23_spill]] %s7830_s5  ;;  %s41_s14 = ssub.s32 %s6387_s23, %s7830_s5 }
  0x5d   : > { %p6606_p7 = por %p53_p3, %p52_p1  ;;  %p38_p13 = scmp.ge.s32.totalorder %s7832_s9, 2 }
  0x5e   : > { %p5987_p9 = scmp.lt.s32.totalorder %s6395_s25, 4  ;;  %s204_s11 = sand.u32 1, %s6375_s20  }
  0x5f   : > { %s5941_s27 = smul.u32 48, %s6387_s23  ;;  %s7834_s9 = smov (%p38_p13, %s7832_s9), 0 }
  0x60   : > { %s6615_s7 = smul.u32 384, %s204_s11  ;;  %s40_s10 = ssub.s32 %s6391_s24, %s7834_s9 }
  0x61   : > { %s5942_s8 = smul.u32 96, %s6391_s24  ;;  %s42_s4 = sor.u32 %s41_s14, %s40_s10 }
  0x62   : > { %p139_p11 = scmp.eq.s32.totalorder %s40_s10, 0  ;;  %p43_p0 = scmp.eq.s32.totalorder %s42_s4, 0 }
  0x63   : > { %s7793_s15 = sadd.s32 1, %s6363_s17  ;;  %s215_s2 = sadd.s32 %s5942_s8, %s5941_s27 }
  0x64   : > { %s6623_s12 = scalar_select %p139_p11, %s6363_s17, %s7793_s15  }
  0x65   : > { %s6626_s13 = scalar_select %p43_p0, %s6375_s20, %s45_s28  }
  0x66   : > { %s208_s3 = scalar_lea.vmem [#allocation3], %s6615_s7  ;;  %s3926_s23 = sshll.u32 %s215_s2, 7 }
  0x67   : > { %s218_s5 = sshll.u32 %s208_s3, 4  ;;  %s7794_s0 = sld [smem:[#allocation24_spill]]  ;;  %s6629_s5 = int_to_ptr.vmem [resolvable:$true] %s218_s5 }
  0x68   : > { %p6640_p4 = pnand %p5987_p9, %p6606_p7  ;;  %s228_s2 = sand.u32 1, %s6395_s25  }
  0x69   : > { %s6648_s27 = scalar_lea.hbm %s7754_s1, %s3926_s23  ;;  %s6650_s22 = scalar_lea.sflag [#allocation4], %s204_s11 }
  0x6a   : > { %p6187_p6 = pneg %p6640_p4 }
  0x6d   : > { %s6634_s21 = scalar_lea.hbm %s7794_s0, %s3926_s23  ;;  %s6190_s8 = scalar_lea.hbm %s7794_s0, 24576 }
  0x6e   : > { %s6185_s30 = scalar_lea.hbm %s6634_s21, 6144  ;;  %p6191_p12 = scmp.lt.u32.totalorder %s6634_s21, %s7794_s0 }
  0x6f   : > { %p6186_p5 = scmp.ne.s32.totalorder %s6634_s21, %s6185_s30  ;;  %p6192_p2 = scmp.lt.u32.totalorder %s6190_s8, %s6185_s30 }
  0x70   : > { %p6194_p3 = scmp.lt.u32.totalorder %s6185_s30, %s6634_s21 }
  0x71   : > { %p6188_p8 = pnand %p6187_p6, %p6186_p5  ;;  %p6193_p1 = por %p6192_p2, %p6191_p12 }
  0x73   : > { %p6189_p10 = pneg %p6188_p8  ;;  %p6195_p7 = por %p6194_p3, %p6193_p1 }
  0x75   : > { %p6196_p13 = pnand %p6195_p7, %p6189_p10 }
  0x77   : > { %6199 = shalt.err (!%p6196_p13)
}
  0x78   : > { %s6200_s23 = scalar_lea.vmem %s6629_s5, 6144  ;;  %s6417_s11 = smov [#allocation3]  }
  0x79   : > { %p6201_p9 = scmp.ne.s32.totalorder %s6629_s5, %s6200_s23  ;;  %s6205_s3 = sshll.u32 %s6417_s11, 4  ;;  %s6206_s3 = int_to_ptr.vmem [resolvable:$false] %s6205_s3 }
  0x7a   : > { %s6207_s14 = scalar_lea.vmem %s6206_s3, 12288  ;;  %p6208_p5 = scmp.lt.s32.totalorder %s6629_s5, %s6206_s3 }
  0x7b   : > { %p6203_p11 = pnand %p6201_p9, %p6187_p6  ;;  %p6209_p8 = scmp.lt.s32.totalorder %s6207_s14, %s6200_s23 }
  0x7d   : > { %p6204_p0 = pneg %p6203_p11  ;;  %p6210_p12 = por %p6209_p8, %p6208_p5 }
  0x7f   : > { %p6211_p2 = pnand %p6210_p12, %p6204_p0 }
  0x81   : > { %6214 = shalt.err (!%p6211_p2)
}
  0x82   : > { %s7796_s30 = smov 8   ;;  %s7797_s18 = smov 128  }
  0x83   : > { %5977 = dma.hbm_to_vmem [thread:$0]  (!%p6640_p4), %s6634_s21, 6144, %s6629_s5, %s6650_s22, %s7797_s18, %s7797_s18, %s7796_s30  }
  0x84   : > { %s232_s10 = scalar_lea.vmem [#allocation6], %s6615_s7  ;;  %s6686_s4 = scalar_lea.sflag [#allocation7], %s228_s2 }
  0x85   : > { %s242_s8 = sshll.u32 %s232_s10, 4  ;;  %s6215_s15 = scalar_lea.hbm %s6648_s27, 6144  ;;  %s6682_s8 = int_to_ptr.vmem [resolvable:$true] %s242_s8 }
  0x86   : > { %p6216_p10 = scmp.ne.s32.totalorder %s6648_s27, %s6215_s15  ;;  %s6220_s3 = scalar_lea.hbm %s7754_s1, 24576 }
  0x87   : > { %p6221_p7 = scmp.lt.u32.totalorder %s6648_s27, %s7754_s1  ;;  %p6222_p13 = scmp.lt.u32.totalorder %s6220_s3, %s6215_s15 }
  0x88   : > { %p6218_p1 = pnand %p6216_p10, %p6187_p6  ;;  %p6224_p11 = scmp.lt.u32.totalorder %s6215_s15, %s6648_s27 }
  0x89   : > { %p6223_p9 = por %p6222_p13, %p6221_p7 }
  0x8a   : > { %p6219_p3 = pneg %p6218_p1 }
  0x8b   : > { %p6225_p0 = por %p6224_p11, %p6223_p9 }
  0x8d   : > { %p6226_p5 = pnand %p6225_p0, %p6219_p3 }
  0x8f   : > { %6229 = shalt.err (!%p6226_p5)
}
  0x90   : > { %s6230_s21 = scalar_lea.vmem %s6682_s8, 6144  ;;  %s6418_s5 = smov [#allocation6]  }
  0x91   : > { %p6231_p8 = scmp.ne.s32.totalorder %s6682_s8, %s6230_s21  ;;  %s6235_s7 = sshll.u32 %s6418_s5, 4  ;;  %s6236_s7 = int_to_ptr.vmem [resolvable:$false] %s6235_s7 }
  0x92   : > { %s6237_s0 = scalar_lea.vmem %s6236_s7, 12288  ;;  %p6238_p10 = scmp.lt.s32.totalorder %s6682_s8, %s6236_s7 }
  0x93   : > { %p6233_p12 = pnand %p6231_p8, %p6187_p6  ;;  %p6239_p1 = scmp.lt.s32.totalorder %s6237_s0, %s6230_s21 }
  0x95   : > { %p6234_p2 = pneg %p6233_p12  ;;  %p6240_p7 = por %p6239_p1, %p6238_p10 }
  0x97   : > { %p6241_p13 = pnand %p6240_p7, %p6234_p2 }
  0x99   : > { %6244 = shalt.err (!%p6241_p13)
}
  0x9a   : > { %5980 = dma.hbm_to_vmem [thread:$0]  (!%p6640_p4), %s6648_s27, 6144, %s6682_s8, %s6686_s4, %s7797_s18, %s7797_s18, %s7796_s30  }
  0x9b   : > { %p7798_p6 = scmp.ne.s32.totalorder %s7787_s6, 0 }
  0x9c   : > { %s256_s2 = sand.u32 (!%p7798_p6), 1, %s6371_s19   ;;  %p7799_p3 = scmp.ne.s32.totalorder (!%p7798_p6), %s7782_s29, 0 }
  0x9d   : > { %254 = sbr.rel (%p7798_p6) target bundleno = 1677 (0x68d), region = 36  ;;  %s257_s10 = scalar_lea.sflag (!%p7798_p6), [#allocation4], %s256_s2 }
  0x9e   : > { %s5946_s22 = smul.u32 (!%p7798_p6), 384, %s256_s2 }
  0xa0   : > { %s6718_s15 = scalar_lea.vmem (!%p7798_p6), [#allocation3], %s5946_s22 }
  0xa4   : > { %6334 = dma.done.wait (%p7799_p3), %s257_s10, 6144  }
  0xa5   : > { %6336 = vsyncadd (%p7799_p3), %s257_s10, 4294961152  ;;  %s265_s28 = sand.u32 1, %s6501_s26   ;;  %s6725_s27 = scalar_lea.vmem [#allocation6], %s5946_s22 }
  0xa6   : > { %s266_s23 = scalar_lea.sflag [#allocation7], %s265_s28 }
  0xa7   : > { %6338 = dma.done.wait (%p7799_p3), %s266_s23, 6144  }
  0xa8   : > { %6340 = vsyncadd (%p7799_p3), %s266_s23, 4294961152  ;;  %p7800_p4 = scmp.eq.s32.totalorder %s6501_s26, 0 }
  0xaa   : > { %6342 = dma.done.wait (%p7800_p4), [#allocation7], 6144   ;;  %p7801_p9 = pmov %p7800_p4 }
  0xab   : > { %p7802_p11 = pmov %p7800_p4 }
  0xac   : > { %6344 = vsyncadd (%p7801_p9), [#allocation7], 4294961152 }
  0xad   : > { %6346 = dma.done.wait (%p7802_p11), [#allocation10], 768   ;;  %p7803_p0 = pmov %p7800_p4 }
  0xae   : > { %s7804_s6 = sld [smem:[#allocation18_spill]]  ;;  %s304_s30 = sand.u32 1, %s6359_s16  }
  0xaf   : > { %6348 = vsyncadd (%p7803_p0), [#allocation10], 4294966528  ;;  %s3933_s29 = sshll.u32 %s304_s30, 3 }
  0xb0   : > { %s6756_s5 = scalar_lea.vmem [#allocation11], %s3933_s29 }
  0xb4   : > { %p309_p5 = scmp.lt.s32.totalorder %s7804_s6, 0  ;;  %s310_s18 = ssub.s32 0, %s7804_s6 }
  0xb5   : > { %s3934_s8 = smin.u32 %s7804_s6, %s310_s18  ;;  %p3937_p12 = scmp.ne.s32.totalorder %s7804_s6, 0 }
  0xb6   : > { %s312_s4 = sand.u32 1, %s3934_s8   ;;  %v6419_v0 = vmov (!%p3937_p12), 0.0  }
  0xb7   : > { %s313_s11 = ssub.s32 0, %s312_s4  ;;  %327 = sbr.rel (%p3937_p12) target bundleno = 201 (0xc9), region = 56  ;;  %347 = vst [vmem:[%s6756_s5] sm:$0xff] (!%p3937_p12), %v6419_v0 }
  0xb8   : > { %s7836_s11 = smov (!%p309_p5, %s313_s11), %s312_s4 }
  0xb9   : > { %p3936_p8 = scmp.lt.s32.totalorder %s7836_s11, 0  ;;  %s319_s3 = sadd.s32 2, %s7836_s11 }
  0xbb   : > { %s7838_s3 = smov (!%p3936_p8, %s319_s3), %s7836_s11 }
  0xbc   : > { %s6748_s26 = ssub.s32 1, %s7838_s3  ;;  %s6751_s14 = smul.u32 17, %s7838_s3 }
  0xbd   : > { %s6754_s21 = smul.u32 17, %s6748_s26 }
  0xbe   : > { %s3938_s7 = smul.u32 2040, %s6748_s26 }
  0xc0   : > { %s3750_s0 = scalar_lea.vmem [#allocation2], %s3938_s7 }
  0xc1   : > { %3939 = vst [vmem:[%s3750_s0 + $0x780] sm:$0xff] %v6419_v0  ;;  %3940 = vst [vmem:[%s3750_s0 + $0x788] sm:$0xff] %v6419_v0 }
  0xc2   : > { %3941 = vst [vmem:[%s3750_s0 + $0x790] sm:$0xff] %v6419_v0  ;;  %3942 = vst [vmem:[%s3750_s0 + $0x798] sm:$0xff] %v6419_v0 }
  0xc3   : > { %3943 = vst [vmem:[%s3750_s0 + $0x7a0] sm:$0xff] %v6419_v0  ;;  %3944 = vst [vmem:[%s3750_s0 + $0x7a8] sm:$0xff] %v6419_v0 }
  0xc4   : > { %3945 = vst [vmem:[%s3750_s0 + $0x7b0] sm:$0xff] %v6419_v0  ;;  %3946 = vst [vmem:[%s3750_s0 + $0x7b8] sm:$0xff] %v6419_v0 }
  0xc5   : > { %3947 = vst [vmem:[%s3750_s0 + $0x7c0] sm:$0xff] %v6419_v0  ;;  %3948 = vst [vmem:[%s3750_s0 + $0x7c8] sm:$0xff] %v6419_v0 }
  0xc6   : > { %3949 = vst [vmem:[%s3750_s0 + $0x7d0] sm:$0xff] %v6419_v0  ;;  %3950 = vst [vmem:[%s3750_s0 + $0x7d8] sm:$0xff] %v6419_v0 }
  0xc7   : > { %3951 = vst [vmem:[%s3750_s0 + $0x7e0] sm:$0xff] %v6419_v0  ;;  %3952 = vst [vmem:[%s3750_s0 + $0x7e8] sm:$0xff] %v6419_v0 }
  0xc8   : > { %3953 = vst [vmem:[%s3750_s0 + $0x7f0] sm:$0xff] %v6419_v0 }
  0xc9 PF: > { %s3954_s2 = smul.u32 2040, %s6748_s26  ;;  %v385_v1 = vld [vmem:[%s6718_s15] sm:$0xff]  ;;  %v386_v3 = vld [vmem:[%s6718_s15 + $0x8] sm:$0xff]  ;;  %v387_v8 = vld [vmem:[%s6718_s15 + $0x10] sm:$0xff] }
  0xca   : > { %v388_v2 = vld [vmem:[%s6725_s27] sm:$0xff]  ;;  %s4580_s22 = smul.u32 2040, %s7838_s3  ;;  %v391_v4 = vmul.f32 %v385_v1, %v385_v1  ;;  %v389_v7 = vld [vmem:[%s6725_s27 + $0x8] sm:$0xff]  ;;  %v390_v9 = vld [vmem:[%s6725_s27 + $0x10] sm:$0xff]  ;;  %v392_v10 = vmul.f32 %v386_v3, %v386_v3  ;;  %v6769_v13 = vmul.f32 %v387_v8, %v387_v8 }
  0xcb   : > { %v394_v5 = vmul.f32 %v388_v2, %v388_v2  ;;  %v397_v6 = vmul.f32 %v388_v2, %v385_v1  ;;  %v395_v11 = vmul.f32 %v389_v7, %v389_v7  ;;  %v398_v12 = vmul.f32 %v389_v7, %v386_v3  ;;  %v3988_v14 = vld [vmem:[%s6718_s15 + $0x18] sm:$0xff]  ;;  %v6774_v16 = vld [vmem:[%s6718_s15 + $0x20] sm:$0xff]  ;;  %s6776_s10 = scalar_lea.vmem [#allocation2], %s3954_s2  ;;  %v3990_v57 = vld [vmem:[%s6718_s15 + $0x28] sm:$0xff] }
  0xcc   : > { %v3991_v15 = vld [vmem:[%s6725_s27 + $0x18] sm:$0xff]  ;;  %v396_v20 = vmul.f32 %v390_v9, %v390_v9  ;;  %v399_v21 = vmul.f32 %v390_v9, %v387_v8  ;;  %v457_v22 = vmul.f32 %v3988_v14, %v3988_v14  ;;  %s6783_s28 = scalar_lea.vmem [#allocation2], %s4580_s22  ;;  %v458_v37 = vmul.f32 %v6774_v16, %v6774_v16  ;;  %v3992_v56 = vld [vmem:[%s6725_s27 + $0x20] sm:$0xff]  ;;  %v3993_v58 = vld [vmem:[%s6725_s27 + $0x28] sm:$0xff] }
  0xcd   : > { %v6781_v23 = vmul.f32 %v3991_v15, %v3991_v15  ;;  %v463_v30 = vmul.f32 %v3991_v15, %v3988_v14  ;;  %v461_v0 = vmul.f32 %v3992_v56, %v3992_v56 }
  0xcf   : > { %v3955_v17 = vld [vmem:[%s6776_s10 + $0x780] sm:$0xff]  ;;  %v3956_v18 = vld [vmem:[%s6776_s10 + $0x788] sm:$0xff]  ;;  %v3957_v19 = vld [vmem:[%s6776_s10 + $0x790] sm:$0xff] }
  0xd0   : > { %370 = vst [vmem:[%s6783_s28] sm:$0xff] %v3955_v17  ;;  %371 = vst [vmem:[%s6783_s28 + $0x8] sm:$0xff] %v3956_v18  ;;  %v415_v27 = vadd.f32 %v3955_v17, %v385_v1  ;;  %v416_v28 = vadd.f32 %v3956_v18, %v388_v2  ;;  %v417_v29 = vadd.f32 %v3957_v19, %v391_v4 }
  0xd1   : > { %372 = vst [vmem:[%s6783_s28 + $0x10] sm:$0xff] %v3957_v19  ;;  %v464_v1 = vmul.f32 %v3992_v56, %v6774_v16 }
  0xd2   : > { %v481_v44 = vadd.f32 %v3988_v14, %v415_v27  ;;  %v482_v51 = vadd.f32 %v3991_v15, %v416_v28  ;;  %v483_v55 = vadd.f32 %v457_v22, %v417_v29  ;;  %v4029_v14 = vld [vmem:[%s6725_s27 + $0x38] sm:$0xff] }
  0xd8   : > { %v3958_v24 = vld [vmem:[%s6776_s10 + $0x798] sm:$0xff]  ;;  %v3959_v25 = vld [vmem:[%s6776_s10 + $0x7a0] sm:$0xff]  ;;  %v3960_v26 = vld [vmem:[%s6776_s10 + $0x7a8] sm:$0xff] }
  0xd9   : > { %373 = vst [vmem:[%s6783_s28 + $0x18] sm:$0xff] %v3958_v24  ;;  %374 = vst [vmem:[%s6783_s28 + $0x20] sm:$0xff] %v3959_v25  ;;  %v418_v34 = vadd.f32 %v3958_v24, %v394_v5  ;;  %v419_v35 = vadd.f32 %v3959_v25, %v397_v6  ;;  %v420_v36 = vadd.f32 %v3960_v26, %v386_v3  ;;  %v4025_v3 = vld [vmem:[%s6718_s15 + $0x30] sm:$0xff] }
  0xda   : > { %375 = vst [vmem:[%s6783_s28 + $0x28] sm:$0xff] %v3960_v26  ;;  %v459_v5 = vmul.f32 %v3990_v57, %v3990_v57  ;;  %v462_v6 = vmul.f32 %v3993_v58, %v3993_v58  ;;  %v523_v18 = vmul.f32 %v4025_v3, %v4025_v3  ;;  %v527_v26 = vmul.f32 %v4029_v14, %v4029_v14 }
  0xdb   : > { %v484_v59 = vadd.f32 %v6781_v23, %v418_v34  ;;  %v485_v60 = vadd.f32 %v463_v30, %v419_v35  ;;  %v486_v61 = vadd.f32 %v6774_v16, %v420_v36  ;;  %v4027_v23 = vld [vmem:[%s6718_s15 + $0x40] sm:$0xff] }
  0xdc   : > { %v549_v24 = vadd.f32 %v523_v18, %v483_v55 }
  0xe1   : > { %v3961_v31 = vld [vmem:[%s6776_s10 + $0x7b0] sm:$0xff]  ;;  %v3962_v32 = vld [vmem:[%s6776_s10 + $0x7b8] sm:$0xff]  ;;  %v3963_v33 = vld [vmem:[%s6776_s10 + $0x7c0] sm:$0xff] }
  0xe2   : > { %376 = vst [vmem:[%s6783_s28 + $0x30] sm:$0xff] %v3961_v31  ;;  %377 = vst [vmem:[%s6783_s28 + $0x38] sm:$0xff] %v3962_v32  ;;  %v421_v41 = vadd.f32 %v3961_v31, %v389_v7  ;;  %v422_v42 = vadd.f32 %v3962_v32, %v392_v10  ;;  %v423_v43 = vadd.f32 %v3963_v33, %v395_v11 }
  0xe3   : > { %378 = vst [vmem:[%s6783_s28 + $0x40] sm:$0xff] %v3963_v33  ;;  %v465_v7 = vmul.f32 %v3993_v58, %v3990_v57  ;;  %v547_v11 = vadd.f32 %v4025_v3, %v481_v44  ;;  %v4062_v33 = vld [vmem:[%s6718_s15 + $0x48] sm:$0xff] }
  0xe4   : > { %v487_v62 = vadd.f32 %v3992_v56, %v421_v41  ;;  %v488_v63 = vadd.f32 %v458_v37, %v422_v42 }
  0xe6   : > { %v553_v22 = vadd.f32 %v4029_v14, %v487_v62 }
  0xea   : > { %v3964_v38 = vld [vmem:[%s6776_s10 + $0x7c8] sm:$0xff]  ;;  %v3965_v39 = vld [vmem:[%s6776_s10 + $0x7d0] sm:$0xff]  ;;  %v3966_v40 = vld [vmem:[%s6776_s10 + $0x7d8] sm:$0xff] }
  0xeb   : > { %3973 = vst [vmem:[%s6783_s28 + $0x78] sm:$0xff] %v415_v27  ;;  %3974 = vst [vmem:[%s6783_s28 + $0x80] sm:$0xff] %v416_v28  ;;  %v424_v48 = vadd.f32 %v3964_v38, %v398_v12  ;;  %v425_v49 = vadd.f32 %v3965_v39, %v387_v8  ;;  %v426_v50 = vadd.f32 %v3966_v40, %v390_v9  ;;  %v4028_v8 = vld [vmem:[%s6725_s27 + $0x30] sm:$0xff]  ;;  %v4030_v28 = vld [vmem:[%s6725_s27 + $0x40] sm:$0xff] }
  0xec   : > { %3975 = vst [vmem:[%s6783_s28 + $0x88] sm:$0xff] %v417_v29  ;;  %379 = vst [vmem:[%s6783_s28 + $0x48] sm:$0xff] %v3964_v38  ;;  %v489_v9 = vadd.f32 %v461_v0, %v423_v43  ;;  %v548_v12 = vadd.f32 %v4028_v8, %v482_v51  ;;  %v526_v19 = vmul.f32 %v4028_v8, %v4028_v8 }
  0xed   : > { %380 = vst [vmem:[%s6783_s28 + $0x50] sm:$0xff] %v3965_v39  ;;  %381 = vst [vmem:[%s6783_s28 + $0x58] sm:$0xff] %v3966_v40  ;;  %v491_v2 = vadd.f32 %v3990_v57, %v425_v49  ;;  %v492_v4 = vadd.f32 %v3993_v58, %v426_v50  ;;  %v490_v10 = vadd.f32 %v464_v1, %v424_v48 }
  0xee   : > { %v550_v29 = vadd.f32 %v526_v19, %v484_v59  ;;  %v525_v38 = vmul.f32 %v4027_v23, %v4027_v23  ;;  %v528_v39 = vmul.f32 %v4030_v28, %v4030_v28  ;;  %v531_v40 = vmul.f32 %v4030_v28, %v4027_v23  ;;  %v4101_v19 = vld [vmem:[%s6718_s15 + $0x70] sm:$0xff] }
  0xef   : > { %v557_v31 = vadd.f32 %v4027_v23, %v491_v2  ;;  %v558_v32 = vadd.f32 %v4030_v28, %v492_v4 }
  0xf4   : > { %v3967_v45 = vld [vmem:[%s6776_s10 + $0x7e0] sm:$0xff]  ;;  %v3968_v46 = vld [vmem:[%s6776_s10 + $0x7e8] sm:$0xff]  ;;  %v3969_v47 = vld [vmem:[%s6776_s10 + $0x7f0] sm:$0xff] }
  0xf5   : > { %3976 = vst [vmem:[%s6783_s28 + $0x90] sm:$0xff] %v418_v34  ;;  %3977 = vst [vmem:[%s6783_s28 + $0x98] sm:$0xff] %v419_v35  ;;  %v427_v52 = vadd.f32 %v3967_v45, %v6769_v13  ;;  %v428_v53 = vadd.f32 %v3968_v46, %v396_v20  ;;  %v429_v54 = vadd.f32 %v3969_v47, %v399_v21  ;;  %v4026_v13 = vld [vmem:[%s6718_s15 + $0x38] sm:$0xff]  ;;  %v4065_v34 = vld [vmem:[%s6725_s27 + $0x48] sm:$0xff] }
  0xf6   : > { %3978 = vst [vmem:[%s6783_s28 + $0xa0] sm:$0xff] %v420_v36  ;;  %382 = vst [vmem:[%s6783_s28 + $0x60] sm:$0xff] %v3967_v45  ;;  %v529_v20 = vmul.f32 %v4028_v8, %v4025_v3  ;;  %v552_v21 = vadd.f32 %v4026_v13, %v486_v61  ;;  %v524_v25 = vmul.f32 %v4026_v13, %v4026_v13 }
  0xf7   : > { %383 = vst [vmem:[%s6783_s28 + $0x68] sm:$0xff] %v3968_v46  ;;  %384 = vst [vmem:[%s6783_s28 + $0x70] sm:$0xff] %v3969_v47  ;;  %v493_v15 = vadd.f32 %v459_v5, %v427_v52  ;;  %v494_v16 = vadd.f32 %v462_v6, %v428_v53  ;;  %v495_v17 = vadd.f32 %v465_v7, %v429_v54 }
  0xf8   : > { %3979 = vst [vmem:[%s6783_s28 + $0xa8] sm:$0xff] %v421_v41  ;;  %3980 = vst [vmem:[%s6783_s28 + $0xb0] sm:$0xff] %v422_v42  ;;  %v530_v27 = vmul.f32 %v4029_v14, %v4026_v13  ;;  %v551_v30 = vadd.f32 %v529_v20, %v485_v60  ;;  %v554_v35 = vadd.f32 %v524_v25, %v488_v63 }
  0xf9   : > { %3981 = vst [vmem:[%s6783_s28 + $0xb8] sm:$0xff] %v423_v43  ;;  %4010 = vst [vmem:[%s6783_s28 + $0xf0] sm:$0xff] %v481_v44  ;;  %v555_v36 = vadd.f32 %v527_v26, %v489_v9  ;;  %v613_v41 = vadd.f32 %v4062_v33, %v547_v11  ;;  %v614_v42 = vadd.f32 %v4065_v34, %v548_v12  ;;  %v4063_v43 = vld [vmem:[%s6718_s15 + $0x50] sm:$0xff] }
  0xfa   : > { %3982 = vst [vmem:[%s6783_s28 + $0xc0] sm:$0xff] %v424_v48  ;;  %3983 = vst [vmem:[%s6783_s28 + $0xc8] sm:$0xff] %v425_v49  ;;  %v556_v37 = vadd.f32 %v530_v27, %v490_v10  ;;  %v559_v44 = vadd.f32 %v525_v38, %v493_v15  ;;  %v589_v45 = vmul.f32 %v4062_v33, %v4062_v33  ;;  %v4066_v48 = vld [vmem:[%s6725_s27 + $0x50] sm:$0xff] }
  0xfb   : > { %3984 = vst [vmem:[%s6783_s28 + $0xd0] sm:$0xff] %v426_v50  ;;  %4011 = vst [vmem:[%s6783_s28 + $0xf8] sm:$0xff] %v482_v51  ;;  %v592_v46 = vmul.f32 %v4065_v34, %v4065_v34  ;;  %v595_v47 = vmul.f32 %v4065_v34, %v4062_v33  ;;  %v560_v49 = vadd.f32 %v528_v39, %v494_v16  ;;  %v4137_v39 = vld [vmem:[%s6718_s15 + $0x80] sm:$0xff] }
  0xfc   : > { %3985 = vst [vmem:[%s6783_s28 + $0xd8] sm:$0xff] %v427_v52  ;;  %3986 = vst [vmem:[%s6783_s28 + $0xe0] sm:$0xff] %v428_v53  ;;  %v561_v50 = vadd.f32 %v531_v40, %v495_v17  ;;  %v618_v51 = vadd.f32 %v4063_v43, %v552_v21  ;;  %v619_v52 = vadd.f32 %v4066_v48, %v553_v22  ;;  %v4064_v53 = vld [vmem:[%s6718_s15 + $0x58] sm:$0xff] }
  0xfd   : > { %3987 = vst [vmem:[%s6783_s28 + $0xe8] sm:$0xff] %v429_v54  ;;  %4012 = vst [vmem:[%s6783_s28 + $0x100] sm:$0xff] %v483_v55  ;;  %v4067_v54 = vld [vmem:[%s6725_s27 + $0x58] sm:$0xff]  ;;  %v615_v55 = vadd.f32 %v589_v45, %v549_v24  ;;  %v616_v56 = vadd.f32 %v592_v46, %v550_v29  ;;  %v617_v57 = vadd.f32 %v595_v47, %v551_v30 }
  0xfe   : > { %4013 = vst [vmem:[%s6783_s28 + $0x108] sm:$0xff] %v484_v59  ;;  %4014 = vst [vmem:[%s6783_s28 + $0x110] sm:$0xff] %v485_v60  ;;  %v590_v58 = vmul.f32 %v4063_v43, %v4063_v43  ;;  %v593_v59 = vmul.f32 %v4066_v48, %v4066_v48  ;;  %v596_v60 = vmul.f32 %v4066_v48, %v4063_v43 }
  0xff   : > { %4015 = vst [vmem:[%s6783_s28 + $0x118] sm:$0xff] %v486_v61  ;;  %4016 = vst [vmem:[%s6783_s28 + $0x120] sm:$0xff] %v487_v62  ;;  %v623_v61 = vadd.f32 %v4064_v53, %v557_v31  ;;  %v624_v62 = vadd.f32 %v4067_v54, %v558_v32  ;;  %v591_v1 = vmul.f32 %v4064_v53, %v4064_v53 }
 0x100   : > { %4017 = vst [vmem:[%s6783_s28 + $0x128] sm:$0xff] %v488_v63  ;;  %4020 = vst [vmem:[%s6783_s28 + $0x140] sm:$0xff] %v491_v2  ;;  %v4099_v63 = vld [vmem:[%s6718_s15 + $0x60] sm:$0xff]  ;;  %v620_v0 = vadd.f32 %v590_v58, %v554_v35  ;;  %v594_v2 = vmul.f32 %v4067_v54, %v4067_v54  ;;  %v597_v3 = vmul.f32 %v4067_v54, %v4064_v53 }
 0x101   : > { %4021 = vst [vmem:[%s6783_s28 + $0x148] sm:$0xff] %v492_v4  ;;  %4018 = vst [vmem:[%s6783_s28 + $0x130] sm:$0xff] %v489_v9  ;;  %v4102_v4 = vld [vmem:[%s6725_s27 + $0x60] sm:$0xff]  ;;  %v621_v5 = vadd.f32 %v593_v59, %v555_v36  ;;  %v622_v6 = vadd.f32 %v596_v60, %v556_v37  ;;  %v679_v7 = vadd.f32 %v4099_v63, %v613_v41  ;;  %v4100_v9 = vld [vmem:[%s6718_s15 + $0x68] sm:$0xff] }
 0x102   : > { %4019 = vst [vmem:[%s6783_s28 + $0x138] sm:$0xff] %v490_v10  ;;  %4047 = vst [vmem:[%s6783_s28 + $0x168] sm:$0xff] %v547_v11  ;;  %v680_v8 = vadd.f32 %v4102_v4, %v614_v42  ;;  %v4103_v10 = vld [vmem:[%s6725_s27 + $0x68] sm:$0xff]  ;;  %v625_v11 = vadd.f32 %v591_v1, %v559_v44  ;;  %v627_v13 = vadd.f32 %v597_v3, %v561_v50  ;;  %v4173_v59 = vld [vmem:[%s6718_s15 + $0x90] sm:$0xff] }
 0x103   : > { %4048 = vst [vmem:[%s6783_s28 + $0x170] sm:$0xff] %v548_v12  ;;  %4022 = vst [vmem:[%s6783_s28 + $0x150] sm:$0xff] %v493_v15  ;;  %v626_v12 = vadd.f32 %v594_v2, %v560_v49  ;;  %v655_v14 = vmul.f32 %v4099_v63, %v4099_v63  ;;  %v658_v15 = vmul.f32 %v4102_v4, %v4102_v4 }
 0x104   : > { %4023 = vst [vmem:[%s6783_s28 + $0x158] sm:$0xff] %v494_v16  ;;  %4024 = vst [vmem:[%s6783_s28 + $0x160] sm:$0xff] %v495_v17  ;;  %v661_v16 = vmul.f32 %v4102_v4, %v4099_v63  ;;  %v684_v17 = vadd.f32 %v4100_v9, %v618_v51  ;;  %v685_v18 = vadd.f32 %v4103_v10, %v619_v52 }
 0x105   : > { %4052 = vst [vmem:[%s6783_s28 + $0x190] sm:$0xff] %v552_v21  ;;  %4053 = vst [vmem:[%s6783_s28 + $0x198] sm:$0xff] %v553_v22  ;;  %v681_v20 = vadd.f32 %v655_v14, %v615_v55  ;;  %v656_v21 = vmul.f32 %v4100_v9, %v4100_v9  ;;  %v659_v22 = vmul.f32 %v4103_v10, %v4103_v10 }
 0x106   : > { %4049 = vst [vmem:[%s6783_s28 + $0x178] sm:$0xff] %v549_v24  ;;  %4050 = vst [vmem:[%s6783_s28 + $0x180] sm:$0xff] %v550_v29  ;;  %v662_v23 = vmul.f32 %v4103_v10, %v4100_v9  ;;  %v4104_v24 = vld [vmem:[%s6725_s27 + $0x70] sm:$0xff]  ;;  %v682_v25 = vadd.f32 %v658_v15, %v616_v56  ;;  %v683_v26 = vadd.f32 %v661_v16, %v617_v57  ;;  %v4136_v29 = vld [vmem:[%s6718_s15 + $0x78] sm:$0xff] }
 0x107   : > { %4051 = vst [vmem:[%s6783_s28 + $0x188] sm:$0xff] %v551_v30  ;;  %4057 = vst [vmem:[%s6783_s28 + $0x1b8] sm:$0xff] %v557_v31  ;;  %v689_v27 = vadd.f32 %v4101_v19, %v623_v61  ;;  %v690_v28 = vadd.f32 %v4104_v24, %v624_v62  ;;  %v4139_v30 = vld [vmem:[%s6725_s27 + $0x78] sm:$0xff]  ;;  %v686_v31 = vadd.f32 %v656_v21, %v620_v0  ;;  %v4175_v15 = vld [vmem:[%s6718_s15 + $0xa0] sm:$0xff] }
 0x108   : > { %4058 = vst [vmem:[%s6783_s28 + $0x1c0] sm:$0xff] %v558_v32  ;;  %4054 = vst [vmem:[%s6783_s28 + $0x1a0] sm:$0xff] %v554_v35  ;;  %v687_v32 = vadd.f32 %v659_v22, %v621_v5  ;;  %v688_v33 = vadd.f32 %v662_v23, %v622_v6  ;;  %v657_v34 = vmul.f32 %v4101_v19, %v4101_v19 }
 0x109   : > { %4055 = vst [vmem:[%s6783_s28 + $0x1a8] sm:$0xff] %v555_v36  ;;  %4056 = vst [vmem:[%s6783_s28 + $0x1b0] sm:$0xff] %v556_v37  ;;  %v660_v35 = vmul.f32 %v4104_v24, %v4104_v24  ;;  %v663_v36 = vmul.f32 %v4104_v24, %v4101_v19  ;;  %v745_v37 = vadd.f32 %v4136_v29, %v679_v7 }
 0x10a   : > { %4084 = vst [vmem:[%s6783_s28 + $0x1e0] sm:$0xff] %v613_v41  ;;  %4085 = vst [vmem:[%s6783_s28 + $0x1e8] sm:$0xff] %v614_v42  ;;  %v746_v38 = vadd.f32 %v4139_v30, %v680_v8  ;;  %v691_v40 = vadd.f32 %v657_v34, %v625_v11  ;;  %v721_v41 = vmul.f32 %v4136_v29, %v4136_v29 }
 0x10b   : > { %4059 = vst [vmem:[%s6783_s28 + $0x1c8] sm:$0xff] %v559_v44  ;;  %4060 = vst [vmem:[%s6783_s28 + $0x1d0] sm:$0xff] %v560_v49  ;;  %v724_v42 = vmul.f32 %v4139_v30, %v4139_v30  ;;  %v727_v43 = vmul.f32 %v4139_v30, %v4136_v29  ;;  %v4140_v44 = vld [vmem:[%s6725_s27 + $0x80] sm:$0xff]  ;;  %v692_v45 = vadd.f32 %v660_v35, %v626_v12  ;;  %v4138_v49 = vld [vmem:[%s6718_s15 + $0x88] sm:$0xff] }
 0x10c   : > { %4061 = vst [vmem:[%s6783_s28 + $0x1d8] sm:$0xff] %v561_v50  ;;  %4089 = vst [vmem:[%s6783_s28 + $0x208] sm:$0xff] %v618_v51  ;;  %v693_v46 = vadd.f32 %v663_v36, %v627_v13  ;;  %v750_v47 = vadd.f32 %v4137_v39, %v684_v17  ;;  %v751_v48 = vadd.f32 %v4140_v44, %v685_v18  ;;  %v4141_v50 = vld [vmem:[%s6725_s27 + $0x88] sm:$0xff]  ;;  %v4211_v35 = vld [vmem:[%s6718_s15 + $0xb0] sm:$0xff] }
 0x10d   : > { %4090 = vst [vmem:[%s6783_s28 + $0x210] sm:$0xff] %v619_v52  ;;  %4086 = vst [vmem:[%s6783_s28 + $0x1f0] sm:$0xff] %v615_v55  ;;  %v747_v51 = vadd.f32 %v721_v41, %v681_v20  ;;  %v748_v52 = vadd.f32 %v724_v42, %v682_v25  ;;  %v749_v53 = vadd.f32 %v727_v43, %v683_v26 }
 0x10e   : > { %4087 = vst [vmem:[%s6783_s28 + $0x1f8] sm:$0xff] %v616_v56  ;;  %4088 = vst [vmem:[%s6783_s28 + $0x200] sm:$0xff] %v617_v57  ;;  %v722_v54 = vmul.f32 %v4137_v39, %v4137_v39  ;;  %v725_v55 = vmul.f32 %v4140_v44, %v4140_v44  ;;  %v728_v56 = vmul.f32 %v4140_v44, %v4137_v39 }
 0x10f   : > { %4094 = vst [vmem:[%s6783_s28 + $0x230] sm:$0xff] %v623_v61  ;;  %4095 = vst [vmem:[%s6783_s28 + $0x238] sm:$0xff] %v624_v62  ;;  %v755_v57 = vadd.f32 %v4138_v49, %v689_v27  ;;  %v756_v58 = vadd.f32 %v4141_v50, %v690_v28  ;;  %v723_v61 = vmul.f32 %v4138_v49, %v4138_v49 }
 0x110   : > { %4091 = vst [vmem:[%s6783_s28 + $0x218] sm:$0xff] %v620_v0  ;;  %4092 = vst [vmem:[%s6783_s28 + $0x220] sm:$0xff] %v621_v5  ;;  %v752_v60 = vadd.f32 %v722_v54, %v686_v31  ;;  %v726_v62 = vmul.f32 %v4141_v50, %v4141_v50  ;;  %v729_v63 = vmul.f32 %v4141_v50, %v4138_v49  ;;  %v4176_v0 = vld [vmem:[%s6725_s27 + $0x90] sm:$0xff]  ;;  %v4174_v5 = vld [vmem:[%s6718_s15 + $0x98] sm:$0xff] }
 0x111   : > { %4093 = vst [vmem:[%s6783_s28 + $0x228] sm:$0xff] %v622_v6  ;;  %4121 = vst [vmem:[%s6783_s28 + $0x258] sm:$0xff] %v679_v7  ;;  %v753_v1 = vadd.f32 %v725_v55, %v687_v32  ;;  %v754_v2 = vadd.f32 %v728_v56, %v688_v33  ;;  %v811_v3 = vadd.f32 %v4173_v59, %v745_v37  ;;  %v4177_v6 = vld [vmem:[%s6725_s27 + $0x98] sm:$0xff]  ;;  %v4247_v55 = vld [vmem:[%s6718_s15 + $0xc0] sm:$0xff] }
 0x112   : > { %4122 = vst [vmem:[%s6783_s28 + $0x260] sm:$0xff] %v680_v8  ;;  %4096 = vst [vmem:[%s6783_s28 + $0x240] sm:$0xff] %v625_v11  ;;  %v812_v4 = vadd.f32 %v4176_v0, %v746_v38  ;;  %v757_v7 = vadd.f32 %v723_v61, %v691_v40  ;;  %v758_v8 = vadd.f32 %v726_v62, %v692_v45 }
 0x113   : > { %4097 = vst [vmem:[%s6783_s28 + $0x248] sm:$0xff] %v626_v12  ;;  %4098 = vst [vmem:[%s6783_s28 + $0x250] sm:$0xff] %v627_v13  ;;  %v759_v9 = vadd.f32 %v729_v63, %v693_v46  ;;  %v787_v10 = vmul.f32 %v4173_v59, %v4173_v59  ;;  %v790_v11 = vmul.f32 %v4176_v0, %v4176_v0 }
 0x114   : > { %4126 = vst [vmem:[%s6783_s28 + $0x280] sm:$0xff] %v684_v17  ;;  %4127 = vst [vmem:[%s6783_s28 + $0x288] sm:$0xff] %v685_v18  ;;  %v793_v12 = vmul.f32 %v4176_v0, %v4173_v59  ;;  %v816_v13 = vadd.f32 %v4174_v5, %v750_v47  ;;  %v817_v14 = vadd.f32 %v4177_v6, %v751_v48 }
 0x115   : > { %4123 = vst [vmem:[%s6783_s28 + $0x268] sm:$0xff] %v681_v20  ;;  %4124 = vst [vmem:[%s6783_s28 + $0x270] sm:$0xff] %v682_v25  ;;  %v813_v16 = vadd.f32 %v787_v10, %v747_v51  ;;  %v788_v17 = vmul.f32 %v4174_v5, %v4174_v5  ;;  %v791_v18 = vmul.f32 %v4177_v6, %v4177_v6  ;;  %v4178_v20 = vld [vmem:[%s6725_s27 + $0xa0] sm:$0xff]  ;;  %v4210_v25 = vld [vmem:[%s6718_s15 + $0xa8] sm:$0xff] }
 0x116   : > { %4125 = vst [vmem:[%s6783_s28 + $0x278] sm:$0xff] %v683_v26  ;;  %4131 = vst [vmem:[%s6783_s28 + $0x2a8] sm:$0xff] %v689_v27  ;;  %v794_v19 = vmul.f32 %v4177_v6, %v4174_v5  ;;  %v814_v21 = vadd.f32 %v790_v11, %v748_v52  ;;  %v815_v22 = vadd.f32 %v793_v12, %v749_v53  ;;  %v4213_v26 = vld [vmem:[%s6725_s27 + $0xa8] sm:$0xff]  ;;  %v4249_v11 = vld [vmem:[%s6718_s15 + $0xd0] sm:$0xff] }
 0x117   : > { %4132 = vst [vmem:[%s6783_s28 + $0x2b0] sm:$0xff] %v690_v28  ;;  %4128 = vst [vmem:[%s6783_s28 + $0x290] sm:$0xff] %v686_v31  ;;  %v821_v23 = vadd.f32 %v4175_v15, %v755_v57  ;;  %v822_v24 = vadd.f32 %v4178_v20, %v756_v58  ;;  %v818_v27 = vadd.f32 %v788_v17, %v752_v60 }
 0x118   : > { %4129 = vst [vmem:[%s6783_s28 + $0x298] sm:$0xff] %v687_v32  ;;  %4130 = vst [vmem:[%s6783_s28 + $0x2a0] sm:$0xff] %v688_v33  ;;  %v819_v28 = vadd.f32 %v791_v18, %v753_v1  ;;  %v820_v29 = vadd.f32 %v794_v19, %v754_v2  ;;  %v789_v30 = vmul.f32 %v4175_v15, %v4175_v15 }
 0x119   : > { %4158 = vst [vmem:[%s6783_s28 + $0x2d0] sm:$0xff] %v745_v37  ;;  %4159 = vst [vmem:[%s6783_s28 + $0x2d8] sm:$0xff] %v746_v38  ;;  %v792_v31 = vmul.f32 %v4178_v20, %v4178_v20  ;;  %v795_v32 = vmul.f32 %v4178_v20, %v4175_v15  ;;  %v877_v33 = vadd.f32 %v4210_v25, %v811_v3 }
 0x11a   : > { %4133 = vst [vmem:[%s6783_s28 + $0x2b8] sm:$0xff] %v691_v40  ;;  %4134 = vst [vmem:[%s6783_s28 + $0x2c0] sm:$0xff] %v692_v45  ;;  %v878_v34 = vadd.f32 %v4213_v26, %v812_v4  ;;  %v823_v36 = vadd.f32 %v789_v30, %v757_v7  ;;  %v853_v37 = vmul.f32 %v4210_v25, %v4210_v25  ;;  %v4214_v40 = vld [vmem:[%s6725_s27 + $0xb0] sm:$0xff]  ;;  %v4212_v45 = vld [vmem:[%s6718_s15 + $0xb8] sm:$0xff] }
 0x11b   : > { %4135 = vst [vmem:[%s6783_s28 + $0x2c8] sm:$0xff] %v693_v46  ;;  %4163 = vst [vmem:[%s6783_s28 + $0x2f8] sm:$0xff] %v750_v47  ;;  %v856_v38 = vmul.f32 %v4213_v26, %v4213_v26  ;;  %v859_v39 = vmul.f32 %v4213_v26, %v4210_v25  ;;  %v824_v41 = vadd.f32 %v792_v31, %v758_v8  ;;  %v4215_v46 = vld [vmem:[%s6725_s27 + $0xb8] sm:$0xff]  ;;  %v4285_v31 = vld [vmem:[%s6718_s15 + $0xe0] sm:$0xff] }
 0x11c   : > { %4164 = vst [vmem:[%s6783_s28 + $0x300] sm:$0xff] %v751_v48  ;;  %4160 = vst [vmem:[%s6783_s28 + $0x2e0] sm:$0xff] %v747_v51  ;;  %v825_v42 = vadd.f32 %v795_v32, %v759_v9  ;;  %v882_v43 = vadd.f32 %v4211_v35, %v816_v13  ;;  %v883_v44 = vadd.f32 %v4214_v40, %v817_v14 }
 0x11d   : > { %4161 = vst [vmem:[%s6783_s28 + $0x2e8] sm:$0xff] %v748_v52  ;;  %4162 = vst [vmem:[%s6783_s28 + $0x2f0] sm:$0xff] %v749_v53  ;;  %v879_v47 = vadd.f32 %v853_v37, %v813_v16  ;;  %v880_v48 = vadd.f32 %v856_v38, %v814_v21  ;;  %v881_v49 = vadd.f32 %v859_v39, %v815_v22 }
 0x11e   : > { %4168 = vst [vmem:[%s6783_s28 + $0x320] sm:$0xff] %v755_v57  ;;  %4169 = vst [vmem:[%s6783_s28 + $0x328] sm:$0xff] %v756_v58  ;;  %v854_v50 = vmul.f32 %v4211_v35, %v4211_v35  ;;  %v857_v51 = vmul.f32 %v4214_v40, %v4214_v40  ;;  %v860_v52 = vmul.f32 %v4214_v40, %v4211_v35 }
 0x11f   : > { %4165 = vst [vmem:[%s6783_s28 + $0x308] sm:$0xff] %v752_v60  ;;  %4166 = vst [vmem:[%s6783_s28 + $0x310] sm:$0xff] %v753_v1  ;;  %v887_v53 = vadd.f32 %v4212_v45, %v821_v23  ;;  %v888_v54 = vadd.f32 %v4215_v46, %v822_v24  ;;  %v855_v57 = vmul.f32 %v4212_v45, %v4212_v45  ;;  %v4250_v60 = vld [vmem:[%s6725_s27 + $0xc0] sm:$0xff]  ;;  %v4248_v1 = vld [vmem:[%s6718_s15 + $0xc8] sm:$0xff] }
 0x120   : > { %4167 = vst [vmem:[%s6783_s28 + $0x318] sm:$0xff] %v754_v2  ;;  %4195 = vst [vmem:[%s6783_s28 + $0x348] sm:$0xff] %v811_v3  ;;  %v884_v56 = vadd.f32 %v854_v50, %v818_v27  ;;  %v858_v58 = vmul.f32 %v4215_v46, %v4215_v46  ;;  %v861_v59 = vmul.f32 %v4215_v46, %v4212_v45  ;;  %v4251_v2 = vld [vmem:[%s6725_s27 + $0xc8] sm:$0xff] }
 0x121   : > { %4196 = vst [vmem:[%s6783_s28 + $0x350] sm:$0xff] %v812_v4  ;;  %4170 = vst [vmem:[%s6783_s28 + $0x330] sm:$0xff] %v757_v7  ;;  %v885_v61 = vadd.f32 %v857_v51, %v819_v28  ;;  %v886_v62 = vadd.f32 %v860_v52, %v820_v29  ;;  %v943_v63 = vadd.f32 %v4247_v55, %v877_v33  ;;  %v4321_v51 = vld [vmem:[%s6718_s15 + $0xf0] sm:$0xff] }
 0x122   : > { %4171 = vst [vmem:[%s6783_s28 + $0x338] sm:$0xff] %v758_v8  ;;  %4172 = vst [vmem:[%s6783_s28 + $0x340] sm:$0xff] %v759_v9  ;;  %v944_v0 = vadd.f32 %v4250_v60, %v878_v34  ;;  %v889_v3 = vadd.f32 %v855_v57, %v823_v36  ;;  %v890_v4 = vadd.f32 %v858_v58, %v824_v41 }
 0x123   : > { %4200 = vst [vmem:[%s6783_s28 + $0x370] sm:$0xff] %v816_v13  ;;  %4201 = vst [vmem:[%s6783_s28 + $0x378] sm:$0xff] %v817_v14  ;;  %v891_v5 = vadd.f32 %v861_v59, %v825_v42  ;;  %v919_v6 = vmul.f32 %v4247_v55, %v4247_v55  ;;  %v922_v7 = vmul.f32 %v4250_v60, %v4250_v60 }
 0x124   : > { %4197 = vst [vmem:[%s6783_s28 + $0x358] sm:$0xff] %v813_v16  ;;  %4198 = vst [vmem:[%s6783_s28 + $0x360] sm:$0xff] %v814_v21  ;;  %v925_v8 = vmul.f32 %v4250_v60, %v4247_v55  ;;  %v948_v9 = vadd.f32 %v4248_v1, %v882_v43  ;;  %v949_v10 = vadd.f32 %v4251_v2, %v883_v44  ;;  %v4252_v16 = vld [vmem:[%s6725_s27 + $0xd0] sm:$0xff]  ;;  %v4284_v21 = vld [vmem:[%s6718_s15 + $0xd8] sm:$0xff] }
 0x125   : > { %4199 = vst [vmem:[%s6783_s28 + $0x368] sm:$0xff] %v815_v22  ;;  %4205 = vst [vmem:[%s6783_s28 + $0x398] sm:$0xff] %v821_v23  ;;  %v945_v12 = vadd.f32 %v919_v6, %v879_v47  ;;  %v920_v13 = vmul.f32 %v4248_v1, %v4248_v1  ;;  %v923_v14 = vmul.f32 %v4251_v2, %v4251_v2  ;;  %v4287_v22 = vld [vmem:[%s6725_s27 + $0xd8] sm:$0xff] }
 0x126   : > { %4206 = vst [vmem:[%s6783_s28 + $0x3a0] sm:$0xff] %v822_v24  ;;  %4202 = vst [vmem:[%s6783_s28 + $0x380] sm:$0xff] %v818_v27  ;;  %v926_v15 = vmul.f32 %v4251_v2, %v4248_v1  ;;  %v946_v17 = vadd.f32 %v922_v7, %v880_v48  ;;  %v947_v18 = vadd.f32 %v925_v8, %v881_v49  ;;  %v4323_v7 = vld [vmem:[%s6718_s15 + $0x100] sm:$0xff] }
 0x127   : > { %4203 = vst [vmem:[%s6783_s28 + $0x388] sm:$0xff] %v819_v28  ;;  %4204 = vst [vmem:[%s6783_s28 + $0x390] sm:$0xff] %v820_v29  ;;  %v953_v19 = vadd.f32 %v4249_v11, %v887_v53  ;;  %v954_v20 = vadd.f32 %v4252_v16, %v888_v54  ;;  %v950_v23 = vadd.f32 %v920_v13, %v884_v56 }
 0x128   : > { %4232 = vst [vmem:[%s6783_s28 + $0x3c0] sm:$0xff] %v877_v33  ;;  %4233 = vst [vmem:[%s6783_s28 + $0x3c8] sm:$0xff] %v878_v34  ;;  %v951_v24 = vadd.f32 %v923_v14, %v885_v61  ;;  %v952_v25 = vadd.f32 %v926_v15, %v886_v62  ;;  %v921_v26 = vmul.f32 %v4249_v11, %v4249_v11 }
 0x129   : > { %4207 = vst [vmem:[%s6783_s28 + $0x3a8] sm:$0xff] %v823_v36  ;;  %4208 = vst [vmem:[%s6783_s28 + $0x3b0] sm:$0xff] %v824_v41  ;;  %v924_v27 = vmul.f32 %v4252_v16, %v4252_v16  ;;  %v927_v28 = vmul.f32 %v4252_v16, %v4249_v11  ;;  %v1009_v29 = vadd.f32 %v4284_v21, %v943_v63  ;;  %v4288_v36 = vld [vmem:[%s6725_s27 + $0xe0] sm:$0xff]  ;;  %v4286_v41 = vld [vmem:[%s6718_s15 + $0xe8] sm:$0xff] }
 0x12a   : > { %4209 = vst [vmem:[%s6783_s28 + $0x3b8] sm:$0xff] %v825_v42  ;;  %4237 = vst [vmem:[%s6783_s28 + $0x3e8] sm:$0xff] %v882_v43  ;;  %v1010_v30 = vadd.f32 %v4287_v22, %v944_v0  ;;  %v955_v32 = vadd.f32 %v921_v26, %v889_v3  ;;  %v985_v33 = vmul.f32 %v4284_v21, %v4284_v21  ;;  %v4289_v42 = vld [vmem:[%s6725_s27 + $0xe8] sm:$0xff] }
 0x12b   : > { %4238 = vst [vmem:[%s6783_s28 + $0x3f0] sm:$0xff] %v883_v44  ;;  %4234 = vst [vmem:[%s6783_s28 + $0x3d0] sm:$0xff] %v879_v47  ;;  %v988_v34 = vmul.f32 %v4287_v22, %v4287_v22  ;;  %v991_v35 = vmul.f32 %v4287_v22, %v4284_v21  ;;  %v956_v37 = vadd.f32 %v924_v27, %v890_v4  ;;  %v4359_v27 = vld [vmem:[%s6718_s15 + $0x110] sm:$0xff] }
 0x12c   : > { %4235 = vst [vmem:[%s6783_s28 + $0x3d8] sm:$0xff] %v880_v48  ;;  %4236 = vst [vmem:[%s6783_s28 + $0x3e0] sm:$0xff] %v881_v49  ;;  %v957_v38 = vadd.f32 %v927_v28, %v891_v5  ;;  %v1014_v39 = vadd.f32 %v4285_v31, %v948_v9  ;;  %v1015_v40 = vadd.f32 %v4288_v36, %v949_v10 }
 0x12d   : > { %4242 = vst [vmem:[%s6783_s28 + $0x410] sm:$0xff] %v887_v53  ;;  %4243 = vst [vmem:[%s6783_s28 + $0x418] sm:$0xff] %v888_v54  ;;  %v1011_v43 = vadd.f32 %v985_v33, %v945_v12  ;;  %v1012_v44 = vadd.f32 %v988_v34, %v946_v17  ;;  %v1013_v45 = vadd.f32 %v991_v35, %v947_v18 }
 0x12e   : > { %4239 = vst [vmem:[%s6783_s28 + $0x3f8] sm:$0xff] %v884_v56  ;;  %4240 = vst [vmem:[%s6783_s28 + $0x400] sm:$0xff] %v885_v61  ;;  %v986_v46 = vmul.f32 %v4285_v31, %v4285_v31  ;;  %v989_v47 = vmul.f32 %v4288_v36, %v4288_v36  ;;  %v992_v48 = vmul.f32 %v4288_v36, %v4285_v31  ;;  %v4324_v56 = vld [vmem:[%s6725_s27 + $0xf0] sm:$0xff]  ;;  %v4322_v61 = vld [vmem:[%s6718_s15 + $0xf8] sm:$0xff] }
 0x12f   : > { %4241 = vst [vmem:[%s6783_s28 + $0x408] sm:$0xff] %v886_v62  ;;  %4269 = vst [vmem:[%s6783_s28 + $0x438] sm:$0xff] %v943_v63  ;;  %v1019_v49 = vadd.f32 %v4286_v41, %v953_v19  ;;  %v1020_v50 = vadd.f32 %v4289_v42, %v954_v20  ;;  %v987_v53 = vmul.f32 %v4286_v41, %v4286_v41  ;;  %v4325_v62 = vld [vmem:[%s6725_s27 + $0xf8] sm:$0xff] }
 0x130   : > { %4270 = vst [vmem:[%s6783_s28 + $0x440] sm:$0xff] %v944_v0  ;;  %4244 = vst [vmem:[%s6783_s28 + $0x420] sm:$0xff] %v889_v3  ;;  %v1016_v52 = vadd.f32 %v986_v46, %v950_v23  ;;  %v990_v54 = vmul.f32 %v4289_v42, %v4289_v42  ;;  %v993_v55 = vmul.f32 %v4289_v42, %v4286_v41 }
 0x131   : > { %4245 = vst [vmem:[%s6783_s28 + $0x428] sm:$0xff] %v890_v4  ;;  %4246 = vst [vmem:[%s6783_s28 + $0x430] sm:$0xff] %v891_v5  ;;  %v1017_v57 = vadd.f32 %v989_v47, %v951_v24  ;;  %v1018_v58 = vadd.f32 %v992_v48, %v952_v25  ;;  %v1075_v59 = vadd.f32 %v4321_v51, %v1009_v29  ;;  %v4395_v47 = vld [vmem:[%s6718_s15 + $0x120] sm:$0xff] }
 0x132   : > { %4274 = vst [vmem:[%s6783_s28 + $0x460] sm:$0xff] %v948_v9  ;;  %4275 = vst [vmem:[%s6783_s28 + $0x468] sm:$0xff] %v949_v10  ;;  %v1076_v60 = vadd.f32 %v4324_v56, %v1010_v30  ;;  %v1021_v63 = vadd.f32 %v987_v53, %v955_v32  ;;  %v1022_v0 = vadd.f32 %v990_v54, %v956_v37 }
 0x133   : > { %4271 = vst [vmem:[%s6783_s28 + $0x448] sm:$0xff] %v945_v12  ;;  %4272 = vst [vmem:[%s6783_s28 + $0x450] sm:$0xff] %v946_v17  ;;  %v1023_v1 = vadd.f32 %v993_v55, %v957_v38  ;;  %v1051_v2 = vmul.f32 %v4321_v51, %v4321_v51  ;;  %v1054_v3 = vmul.f32 %v4324_v56, %v4324_v56  ;;  %v4326_v12 = vld [vmem:[%s6725_s27 + $0x100] sm:$0xff]  ;;  %v4358_v17 = vld [vmem:[%s6718_s15 + $0x108] sm:$0xff] }
 0x134   : > { %4273 = vst [vmem:[%s6783_s28 + $0x458] sm:$0xff] %v947_v18  ;;  %4279 = vst [vmem:[%s6783_s28 + $0x488] sm:$0xff] %v953_v19  ;;  %v1057_v4 = vmul.f32 %v4324_v56, %v4321_v51  ;;  %v1080_v5 = vadd.f32 %v4322_v61, %v1014_v39  ;;  %v1081_v6 = vadd.f32 %v4325_v62, %v1015_v40  ;;  %v4361_v18 = vld [vmem:[%s6725_s27 + $0x108] sm:$0xff] }
 0x135   : > { %4280 = vst [vmem:[%s6783_s28 + $0x490] sm:$0xff] %v954_v20  ;;  %4276 = vst [vmem:[%s6783_s28 + $0x470] sm:$0xff] %v950_v23  ;;  %v1077_v8 = vadd.f32 %v1051_v2, %v1011_v43  ;;  %v1052_v9 = vmul.f32 %v4322_v61, %v4322_v61  ;;  %v1055_v10 = vmul.f32 %v4325_v62, %v4325_v62 }
 0x136   : > { %4277 = vst [vmem:[%s6783_s28 + $0x478] sm:$0xff] %v951_v24  ;;  %4278 = vst [vmem:[%s6783_s28 + $0x480] sm:$0xff] %v952_v25  ;;  %v1058_v11 = vmul.f32 %v4325_v62, %v4322_v61  ;;  %v1078_v13 = vadd.f32 %v1054_v3, %v1012_v44  ;;  %v1079_v14 = vadd.f32 %v1057_v4, %v1013_v45  ;;  %v4397_v3 = vld [vmem:[%s6718_s15 + $0x130] sm:$0xff] }
 0x137   : > { %4306 = vst [vmem:[%s6783_s28 + $0x4b0] sm:$0xff] %v1009_v29  ;;  %4307 = vst [vmem:[%s6783_s28 + $0x4b8] sm:$0xff] %v1010_v30  ;;  %v1085_v15 = vadd.f32 %v4323_v7, %v1019_v49  ;;  %v1086_v16 = vadd.f32 %v4326_v12, %v1020_v50  ;;  %v1082_v19 = vadd.f32 %v1052_v9, %v1016_v52 }
 0x138   : > { %4281 = vst [vmem:[%s6783_s28 + $0x498] sm:$0xff] %v955_v32  ;;  %4282 = vst [vmem:[%s6783_s28 + $0x4a0] sm:$0xff] %v956_v37  ;;  %v1083_v20 = vadd.f32 %v1055_v10, %v1017_v57  ;;  %v1084_v21 = vadd.f32 %v1058_v11, %v1018_v58  ;;  %v1053_v22 = vmul.f32 %v4323_v7, %v4323_v7  ;;  %v4362_v32 = vld [vmem:[%s6725_s27 + $0x110] sm:$0xff]  ;;  %v4360_v37 = vld [vmem:[%s6718_s15 + $0x118] sm:$0xff] }
 0x139   : > { %4283 = vst [vmem:[%s6783_s28 + $0x4a8] sm:$0xff] %v957_v38  ;;  %4311 = vst [vmem:[%s6783_s28 + $0x4d8] sm:$0xff] %v1014_v39  ;;  %v1056_v23 = vmul.f32 %v4326_v12, %v4326_v12  ;;  %v1059_v24 = vmul.f32 %v4326_v12, %v4323_v7  ;;  %v1141_v25 = vadd.f32 %v4358_v17, %v1075_v59  ;;  %v4363_v38 = vld [vmem:[%s6725_s27 + $0x118] sm:$0xff] }
 0x13a   : > { %4312 = vst [vmem:[%s6783_s28 + $0x4e0] sm:$0xff] %v1015_v40  ;;  %4308 = vst [vmem:[%s6783_s28 + $0x4c0] sm:$0xff] %v1011_v43  ;;  %v1142_v26 = vadd.f32 %v4361_v18, %v1076_v60  ;;  %v1087_v28 = vadd.f32 %v1053_v22, %v1021_v63  ;;  %v1117_v29 = vmul.f32 %v4358_v17, %v4358_v17 }
 0x13b   : > { %4309 = vst [vmem:[%s6783_s28 + $0x4c8] sm:$0xff] %v1012_v44  ;;  %4310 = vst [vmem:[%s6783_s28 + $0x4d0] sm:$0xff] %v1013_v45  ;;  %v1120_v30 = vmul.f32 %v4361_v18, %v4361_v18  ;;  %v1123_v31 = vmul.f32 %v4361_v18, %v4358_v17  ;;  %v1088_v33 = vadd.f32 %v1056_v23, %v1022_v0  ;;  %v4433_v23 = vld [vmem:[%s6718_s15 + $0x140] sm:$0xff] }
 0x13c   : > { %4316 = vst [vmem:[%s6783_s28 + $0x500] sm:$0xff] %v1019_v49  ;;  %4317 = vst [vmem:[%s6783_s28 + $0x508] sm:$0xff] %v1020_v50  ;;  %v1089_v34 = vadd.f32 %v1059_v24, %v1023_v1  ;;  %v1146_v35 = vadd.f32 %v4359_v27, %v1080_v5  ;;  %v1147_v36 = vadd.f32 %v4362_v32, %v1081_v6 }
 0x13d   : > { %4313 = vst [vmem:[%s6783_s28 + $0x4e8] sm:$0xff] %v1016_v52  ;;  %4314 = vst [vmem:[%s6783_s28 + $0x4f0] sm:$0xff] %v1017_v57  ;;  %v1143_v39 = vadd.f32 %v1117_v29, %v1077_v8  ;;  %v1144_v40 = vadd.f32 %v1120_v30, %v1078_v13  ;;  %v1145_v41 = vadd.f32 %v1123_v31, %v1079_v14  ;;  %v4398_v52 = vld [vmem:[%s6725_s27 + $0x120] sm:$0xff]  ;;  %v4396_v57 = vld [vmem:[%s6718_s15 + $0x128] sm:$0xff] }
 0x13e   : > { %4315 = vst [vmem:[%s6783_s28 + $0x4f8] sm:$0xff] %v1018_v58  ;;  %4343 = vst [vmem:[%s6783_s28 + $0x528] sm:$0xff] %v1075_v59  ;;  %v1118_v42 = vmul.f32 %v4359_v27, %v4359_v27  ;;  %v1121_v43 = vmul.f32 %v4362_v32, %v4362_v32  ;;  %v1124_v44 = vmul.f32 %v4362_v32, %v4359_v27  ;;  %v4399_v58 = vld [vmem:[%s6725_s27 + $0x128] sm:$0xff] }
 0x13f   : > { %4344 = vst [vmem:[%s6783_s28 + $0x530] sm:$0xff] %v1076_v60  ;;  %4318 = vst [vmem:[%s6783_s28 + $0x510] sm:$0xff] %v1021_v63  ;;  %v1151_v45 = vadd.f32 %v4360_v37, %v1085_v15  ;;  %v1152_v46 = vadd.f32 %v4363_v38, %v1086_v16  ;;  %v1119_v49 = vmul.f32 %v4360_v37, %v4360_v37 }
 0x140   : > { %4319 = vst [vmem:[%s6783_s28 + $0x518] sm:$0xff] %v1022_v0  ;;  %4320 = vst [vmem:[%s6783_s28 + $0x520] sm:$0xff] %v1023_v1  ;;  %v1148_v48 = vadd.f32 %v1118_v42, %v1082_v19  ;;  %v1122_v50 = vmul.f32 %v4363_v38, %v4363_v38  ;;  %v1125_v51 = vmul.f32 %v4363_v38, %v4360_v37 }
 0x141   : > { %4348 = vst [vmem:[%s6783_s28 + $0x550] sm:$0xff] %v1080_v5  ;;  %4349 = vst [vmem:[%s6783_s28 + $0x558] sm:$0xff] %v1081_v6  ;;  %v1149_v53 = vadd.f32 %v1121_v43, %v1083_v20  ;;  %v1150_v54 = vadd.f32 %v1124_v44, %v1084_v21  ;;  %v1207_v55 = vadd.f32 %v4395_v47, %v1141_v25  ;;  %v4469_v43 = vld [vmem:[%s6718_s15 + $0x150] sm:$0xff] }
 0x142   : > { %4345 = vst [vmem:[%s6783_s28 + $0x538] sm:$0xff] %v1077_v8  ;;  %4346 = vst [vmem:[%s6783_s28 + $0x540] sm:$0xff] %v1078_v13  ;;  %v1208_v56 = vadd.f32 %v4398_v52, %v1142_v26  ;;  %v1153_v59 = vadd.f32 %v1119_v49, %v1087_v28  ;;  %v1154_v60 = vadd.f32 %v1122_v50, %v1088_v33  ;;  %v4400_v8 = vld [vmem:[%s6725_s27 + $0x130] sm:$0xff]  ;;  %v4432_v13 = vld [vmem:[%s6718_s15 + $0x138] sm:$0xff] }
 0x143   : > { %4347 = vst [vmem:[%s6783_s28 + $0x548] sm:$0xff] %v1079_v14  ;;  %4353 = vst [vmem:[%s6783_s28 + $0x578] sm:$0xff] %v1085_v15  ;;  %v1155_v61 = vadd.f32 %v1125_v51, %v1089_v34  ;;  %v1183_v62 = vmul.f32 %v4395_v47, %v4395_v47  ;;  %v1186_v63 = vmul.f32 %v4398_v52, %v4398_v52  ;;  %v4435_v14 = vld [vmem:[%s6725_s27 + $0x138] sm:$0xff] }
 0x144   : > { %4354 = vst [vmem:[%s6783_s28 + $0x580] sm:$0xff] %v1086_v16  ;;  %4350 = vst [vmem:[%s6783_s28 + $0x560] sm:$0xff] %v1082_v19  ;;  %v1189_v0 = vmul.f32 %v4398_v52, %v4395_v47  ;;  %v1212_v1 = vadd.f32 %v4396_v57, %v1146_v35  ;;  %v1213_v2 = vadd.f32 %v4399_v58, %v1147_v36 }
 0x145   : > { %4351 = vst [vmem:[%s6783_s28 + $0x568] sm:$0xff] %v1083_v20  ;;  %4352 = vst [vmem:[%s6783_s28 + $0x570] sm:$0xff] %v1084_v21  ;;  %v1209_v4 = vadd.f32 %v1183_v62, %v1143_v39  ;;  %v1184_v5 = vmul.f32 %v4396_v57, %v4396_v57  ;;  %v1187_v6 = vmul.f32 %v4399_v58, %v4399_v58 }
 0x146   : > { %4380 = vst [vmem:[%s6783_s28 + $0x5a0] sm:$0xff] %v1141_v25  ;;  %4381 = vst [vmem:[%s6783_s28 + $0x5a8] sm:$0xff] %v1142_v26  ;;  %v1190_v7 = vmul.f32 %v4399_v58, %v4396_v57  ;;  %v1210_v9 = vadd.f32 %v1186_v63, %v1144_v40  ;;  %v1211_v10 = vadd.f32 %v1189_v0, %v1145_v41  ;;  %v4471_v63 = vld [vmem:[%s6718_s15 + $0x160] sm:$0xff] }
 0x147   : > { %4355 = vst [vmem:[%s6783_s28 + $0x588] sm:$0xff] %v1087_v28  ;;  %4356 = vst [vmem:[%s6783_s28 + $0x590] sm:$0xff] %v1088_v33  ;;  %v1217_v11 = vadd.f32 %v4397_v3, %v1151_v45  ;;  %v1218_v12 = vadd.f32 %v4400_v8, %v1152_v46  ;;  %v1214_v15 = vadd.f32 %v1184_v5, %v1148_v48  ;;  %v4436_v28 = vld [vmem:[%s6725_s27 + $0x140] sm:$0xff]  ;;  %v4434_v33 = vld [vmem:[%s6718_s15 + $0x148] sm:$0xff] }
 0x148   : > { %4357 = vst [vmem:[%s6783_s28 + $0x598] sm:$0xff] %v1089_v34  ;;  %4385 = vst [vmem:[%s6783_s28 + $0x5c8] sm:$0xff] %v1146_v35  ;;  %v1215_v16 = vadd.f32 %v1187_v6, %v1149_v53  ;;  %v1216_v17 = vadd.f32 %v1190_v7, %v1150_v54  ;;  %v1185_v18 = vmul.f32 %v4397_v3, %v4397_v3  ;;  %v4437_v34 = vld [vmem:[%s6725_s27 + $0x148] sm:$0xff] }
 0x149   : > { %4386 = vst [vmem:[%s6783_s28 + $0x5d0] sm:$0xff] %v1147_v36  ;;  %4382 = vst [vmem:[%s6783_s28 + $0x5b0] sm:$0xff] %v1143_v39  ;;  %v1188_v19 = vmul.f32 %v4400_v8, %v4400_v8  ;;  %v1191_v20 = vmul.f32 %v4400_v8, %v4397_v3  ;;  %v1273_v21 = vadd.f32 %v4432_v13, %v1207_v55 }
 0x14a   : > { %4383 = vst [vmem:[%s6783_s28 + $0x5b8] sm:$0xff] %v1144_v40  ;;  %4384 = vst [vmem:[%s6783_s28 + $0x5c0] sm:$0xff] %v1145_v41  ;;  %v1274_v22 = vadd.f32 %v4435_v14, %v1208_v56  ;;  %v1219_v24 = vadd.f32 %v1185_v18, %v1153_v59  ;;  %v1249_v25 = vmul.f32 %v4432_v13, %v4432_v13 }
 0x14b   : > { %4390 = vst [vmem:[%s6783_s28 + $0x5f0] sm:$0xff] %v1151_v45  ;;  %4391 = vst [vmem:[%s6783_s28 + $0x5f8] sm:$0xff] %v1152_v46  ;;  %v1252_v26 = vmul.f32 %v4435_v14, %v4435_v14  ;;  %v1255_v27 = vmul.f32 %v4435_v14, %v4432_v13  ;;  %v1220_v29 = vadd.f32 %v1188_v19, %v1154_v60  ;;  %v4507_v19 = vld [vmem:[%s6718_s15 + $0x170] sm:$0xff] }
 0x14c   : > { %4387 = vst [vmem:[%s6783_s28 + $0x5d8] sm:$0xff] %v1148_v48  ;;  %4388 = vst [vmem:[%s6783_s28 + $0x5e0] sm:$0xff] %v1149_v53  ;;  %v1221_v30 = vadd.f32 %v1191_v20, %v1155_v61  ;;  %v1278_v31 = vadd.f32 %v4433_v23, %v1212_v1  ;;  %v1279_v32 = vadd.f32 %v4436_v28, %v1213_v2  ;;  %v4472_v48 = vld [vmem:[%s6725_s27 + $0x150] sm:$0xff]  ;;  %v4470_v53 = vld [vmem:[%s6718_s15 + $0x158] sm:$0xff] }
 0x14d   : > { %4389 = vst [vmem:[%s6783_s28 + $0x5e8] sm:$0xff] %v1150_v54  ;;  %4417 = vst [vmem:[%s6783_s28 + $0x618] sm:$0xff] %v1207_v55  ;;  %v1275_v35 = vadd.f32 %v1249_v25, %v1209_v4  ;;  %v1276_v36 = vadd.f32 %v1252_v26, %v1210_v9  ;;  %v1277_v37 = vadd.f32 %v1255_v27, %v1211_v10  ;;  %v4473_v54 = vld [vmem:[%s6725_s27 + $0x158] sm:$0xff] }
 0x14e   : > { %4418 = vst [vmem:[%s6783_s28 + $0x620] sm:$0xff] %v1208_v56  ;;  %4392 = vst [vmem:[%s6783_s28 + $0x600] sm:$0xff] %v1153_v59  ;;  %v1250_v38 = vmul.f32 %v4433_v23, %v4433_v23  ;;  %v1253_v39 = vmul.f32 %v4436_v28, %v4436_v28  ;;  %v1256_v40 = vmul.f32 %v4436_v28, %v4433_v23 }
 0x14f   : > { %4393 = vst [vmem:[%s6783_s28 + $0x608] sm:$0xff] %v1154_v60  ;;  %4394 = vst [vmem:[%s6783_s28 + $0x610] sm:$0xff] %v1155_v61  ;;  %v1283_v41 = vadd.f32 %v4434_v33, %v1217_v11  ;;  %v1284_v42 = vadd.f32 %v4437_v34, %v1218_v12  ;;  %v1251_v45 = vmul.f32 %v4434_v33, %v4434_v33 }
 0x150   : > { %4422 = vst [vmem:[%s6783_s28 + $0x640] sm:$0xff] %v1212_v1  ;;  %4423 = vst [vmem:[%s6783_s28 + $0x648] sm:$0xff] %v1213_v2  ;;  %v1280_v44 = vadd.f32 %v1250_v38, %v1214_v15  ;;  %v1254_v46 = vmul.f32 %v4437_v34, %v4437_v34  ;;  %v1257_v47 = vmul.f32 %v4437_v34, %v4434_v33 }
 0x151   : > { %4419 = vst [vmem:[%s6783_s28 + $0x628] sm:$0xff] %v1209_v4  ;;  %4420 = vst [vmem:[%s6783_s28 + $0x630] sm:$0xff] %v1210_v9  ;;  %v1281_v49 = vadd.f32 %v1253_v39, %v1215_v16  ;;  %v1282_v50 = vadd.f32 %v1256_v40, %v1216_v17  ;;  %v1339_v51 = vadd.f32 %v4469_v43, %v1273_v21  ;;  %v4474_v4 = vld [vmem:[%s6725_s27 + $0x160] sm:$0xff]  ;;  %v4506_v9 = vld [vmem:[%s6718_s15 + $0x168] sm:$0xff] }
 0x152   : > { %4421 = vst [vmem:[%s6783_s28 + $0x638] sm:$0xff] %v1211_v10  ;;  %4427 = vst [vmem:[%s6783_s28 + $0x668] sm:$0xff] %v1217_v11  ;;  %v1340_v52 = vadd.f32 %v4472_v48, %v1274_v22  ;;  %v1285_v55 = vadd.f32 %v1251_v45, %v1219_v24  ;;  %v1286_v56 = vadd.f32 %v1254_v46, %v1220_v29  ;;  %v4509_v10 = vld [vmem:[%s6725_s27 + $0x168] sm:$0xff] }
 0x153   : > { %4428 = vst [vmem:[%s6783_s28 + $0x670] sm:$0xff] %v1218_v12  ;;  %4424 = vst [vmem:[%s6783_s28 + $0x650] sm:$0xff] %v1214_v15  ;;  %v1287_v57 = vadd.f32 %v1257_v47, %v1221_v30  ;;  %v1315_v58 = vmul.f32 %v4469_v43, %v4469_v43  ;;  %v1318_v59 = vmul.f32 %v4472_v48, %v4472_v48 }
 0x154   : > { %4425 = vst [vmem:[%s6783_s28 + $0x658] sm:$0xff] %v1215_v16  ;;  %4426 = vst [vmem:[%s6783_s28 + $0x660] sm:$0xff] %v1216_v17  ;;  %v1321_v60 = vmul.f32 %v4472_v48, %v4469_v43  ;;  %v1344_v61 = vadd.f32 %v4470_v53, %v1278_v31  ;;  %v1345_v62 = vadd.f32 %v4473_v54, %v1279_v32 }
 0x155   : > { %4454 = vst [vmem:[%s6783_s28 + $0x690] sm:$0xff] %v1273_v21  ;;  %4455 = vst [vmem:[%s6783_s28 + $0x698] sm:$0xff] %v1274_v22  ;;  %v1341_v0 = vadd.f32 %v1315_v58, %v1275_v35  ;;  %v1316_v1 = vmul.f32 %v4470_v53, %v4470_v53  ;;  %v1319_v2 = vmul.f32 %v4473_v54, %v4473_v54 }
 0x156   : > { %4429 = vst [vmem:[%s6783_s28 + $0x678] sm:$0xff] %v1219_v24  ;;  %4430 = vst [vmem:[%s6783_s28 + $0x680] sm:$0xff] %v1220_v29  ;;  %v1322_v3 = vmul.f32 %v4473_v54, %v4470_v53  ;;  %v1342_v5 = vadd.f32 %v1318_v59, %v1276_v36  ;;  %v1343_v6 = vadd.f32 %v1321_v60, %v1277_v37  ;;  %v4510_v24 = vld [vmem:[%s6725_s27 + $0x170] sm:$0xff]  ;;  %v4508_v29 = vld [vmem:[%s6718_s15 + $0x178] sm:$0xff]  ;;  %s7805_s15 = sld [smem:[#allocation18_spill]] }
 0x157   : > { %4431 = vst [vmem:[%s6783_s28 + $0x688] sm:$0xff] %v1221_v30  ;;  %4459 = vst [vmem:[%s6783_s28 + $0x6b8] sm:$0xff] %v1278_v31  ;;  %v1349_v7 = vadd.f32 %v4471_v63, %v1283_v41  ;;  %v1350_v8 = vadd.f32 %v4474_v4, %v1284_v42  ;;  %v1346_v11 = vadd.f32 %v1316_v1, %v1280_v44  ;;  %v4511_v30 = vld [vmem:[%s6725_s27 + $0x178] sm:$0xff] }
 0x158   : > { %4460 = vst [vmem:[%s6783_s28 + $0x6c0] sm:$0xff] %v1279_v32  ;;  %4456 = vst [vmem:[%s6783_s28 + $0x6a0] sm:$0xff] %v1275_v35  ;;  %v1347_v12 = vadd.f32 %v1319_v2, %v1281_v49  ;;  %v1348_v13 = vadd.f32 %v1322_v3, %v1282_v50  ;;  %v1317_v14 = vmul.f32 %v4471_v63, %v4471_v63 }
 0x159   : > { %4457 = vst [vmem:[%s6783_s28 + $0x6a8] sm:$0xff] %v1276_v36  ;;  %4458 = vst [vmem:[%s6783_s28 + $0x6b0] sm:$0xff] %v1277_v37  ;;  %v1320_v15 = vmul.f32 %v4474_v4, %v4474_v4  ;;  %v1323_v16 = vmul.f32 %v4474_v4, %v4471_v63  ;;  %v1405_v17 = vadd.f32 %v4506_v9, %v1339_v51 }
 0x15a   : > { %4464 = vst [vmem:[%s6783_s28 + $0x6e0] sm:$0xff] %v1283_v41  ;;  %4465 = vst [vmem:[%s6783_s28 + $0x6e8] sm:$0xff] %v1284_v42  ;;  %v1406_v18 = vadd.f32 %v4509_v10, %v1340_v52  ;;  %v1351_v20 = vadd.f32 %v1317_v14, %v1285_v55  ;;  %v1381_v21 = vmul.f32 %v4506_v9, %v4506_v9 }
 0x15b   : > { %4461 = vst [vmem:[%s6783_s28 + $0x6c8] sm:$0xff] %v1280_v44  ;;  %4462 = vst [vmem:[%s6783_s28 + $0x6d0] sm:$0xff] %v1281_v49  ;;  %v1384_v22 = vmul.f32 %v4509_v10, %v4509_v10  ;;  %v1387_v23 = vmul.f32 %v4509_v10, %v4506_v9  ;;  %v1352_v25 = vadd.f32 %v1320_v15, %v1286_v56 }
 0x15c   : > { %4463 = vst [vmem:[%s6783_s28 + $0x6d8] sm:$0xff] %v1282_v50  ;;  %4491 = vst [vmem:[%s6783_s28 + $0x708] sm:$0xff] %v1339_v51  ;;  %v1353_v26 = vadd.f32 %v1323_v16, %v1287_v57  ;;  %v1410_v27 = vadd.f32 %v4507_v19, %v1344_v61  ;;  %v1411_v28 = vadd.f32 %v4510_v24, %v1345_v62  ;;  %p4543_p2 = scmp.le.s32.totalorder %s7805_s15, 0 }
 0x15d   : > { %4492 = vst [vmem:[%s6783_s28 + $0x710] sm:$0xff] %v1340_v52  ;;  %4466 = vst [vmem:[%s6783_s28 + $0x6f0] sm:$0xff] %v1285_v55  ;;  %v1407_v31 = vadd.f32 %v1381_v21, %v1341_v0  ;;  %v1408_v32 = vadd.f32 %v1384_v22, %v1342_v5  ;;  %v1409_v33 = vadd.f32 %v1387_v23, %v1343_v6  ;;  %s7146_s23 = smov (!%p4543_p2), 0.0   ;;  %s7148_s27 = smov (!%p4543_p2), 0.0  }
 0x15e   : > { %4467 = vst [vmem:[%s6783_s28 + $0x6f8] sm:$0xff] %v1286_v56  ;;  %4468 = vst [vmem:[%s6783_s28 + $0x700] sm:$0xff] %v1287_v57  ;;  %v1382_v34 = vmul.f32 %v4507_v19, %v4507_v19  ;;  %v1385_v35 = vmul.f32 %v4510_v24, %v4510_v24  ;;  %v1388_v36 = vmul.f32 %v4510_v24, %v4507_v19  ;;  %s7150_s6 = smov (!%p4543_p2), 0.0   ;;  %s7152_s29 = smov (!%p4543_p2), 0  }
 0x15f   : > { %4496 = vst [vmem:[%s6783_s28 + $0x730] sm:$0xff] %v1344_v61  ;;  %4497 = vst [vmem:[%s6783_s28 + $0x738] sm:$0xff] %v1345_v62  ;;  %v1415_v37 = vadd.f32 %v4508_v29, %v1349_v7  ;;  %v1416_v38 = vadd.f32 %v4511_v30, %v1350_v8  ;;  %v1383_v40 = vmul.f32 %v4508_v29, %v4508_v29 }
 0x160   : > { %4493 = vst [vmem:[%s6783_s28 + $0x718] sm:$0xff] %v1341_v0  ;;  %4494 = vst [vmem:[%s6783_s28 + $0x720] sm:$0xff] %v1342_v5  ;;  %v1412_v39 = vadd.f32 %v1382_v34, %v1346_v11  ;;  %v1386_v41 = vmul.f32 %v4511_v30, %v4511_v30  ;;  %v1389_v42 = vmul.f32 %v4511_v30, %v4508_v29 }
 0x161   : > { %4495 = vst [vmem:[%s6783_s28 + $0x728] sm:$0xff] %v1343_v6  ;;  %4501 = vst [vmem:[%s6783_s28 + $0x758] sm:$0xff] %v1349_v7  ;;  %v1413_v43 = vadd.f32 %v1385_v35, %v1347_v12  ;;  %v1414_v44 = vadd.f32 %v1388_v36, %v1348_v13  ;;  %v1417_v45 = vadd.f32 %v1383_v40, %v1351_v20 }
 0x162   : > { %4502 = vst [vmem:[%s6783_s28 + $0x760] sm:$0xff] %v1350_v8  ;;  %4498 = vst [vmem:[%s6783_s28 + $0x740] sm:$0xff] %v1346_v11  ;;  %v1418_v46 = vadd.f32 %v1386_v41, %v1352_v25  ;;  %v1419_v47 = vadd.f32 %v1389_v42, %v1353_v26 }
 0x163   : > { %4499 = vst [vmem:[%s6783_s28 + $0x748] sm:$0xff] %v1347_v12  ;;  %4500 = vst [vmem:[%s6783_s28 + $0x750] sm:$0xff] %v1348_v13 }
 0x164   : > { %4528 = vst [vmem:[%s6783_s28 + $0x780] sm:$0xff] %v1405_v17  ;;  %4529 = vst [vmem:[%s6783_s28 + $0x788] sm:$0xff] %v1406_v18 }
 0x165   : > { %4503 = vst [vmem:[%s6783_s28 + $0x768] sm:$0xff] %v1351_v20  ;;  %4504 = vst [vmem:[%s6783_s28 + $0x770] sm:$0xff] %v1352_v25 }
 0x166   : > { %4505 = vst [vmem:[%s6783_s28 + $0x778] sm:$0xff] %v1353_v26  ;;  %4533 = vst [vmem:[%s6783_s28 + $0x7a8] sm:$0xff] %v1410_v27  ;;  %1442 = sbr.rel (%p4543_p2) target bundleno = 1650 (0x672), region = 60 }
 0x167   : > { %4534 = vst [vmem:[%s6783_s28 + $0x7b0] sm:$0xff] %v1411_v28  ;;  %4530 = vst [vmem:[%s6783_s28 + $0x790] sm:$0xff] %v1407_v31 }
 0x168   : > { %4531 = vst [vmem:[%s6783_s28 + $0x798] sm:$0xff] %v1408_v32  ;;  %4532 = vst [vmem:[%s6783_s28 + $0x7a0] sm:$0xff] %v1409_v33 }
 0x169   : > { %4538 = vst [vmem:[%s6783_s28 + $0x7d0] sm:$0xff] %v1415_v37  ;;  %4539 = vst [vmem:[%s6783_s28 + $0x7d8] sm:$0xff] %v1416_v38 }
 0x16a   : > { %4535 = vst [vmem:[%s6783_s28 + $0x7b8] sm:$0xff] %v1412_v39  ;;  %4536 = vst [vmem:[%s6783_s28 + $0x7c0] sm:$0xff] %v1413_v43 }
 0x16b   : > { %4537 = vst [vmem:[%s6783_s28 + $0x7c8] sm:$0xff] %v1414_v44  ;;  %4540 = vst [vmem:[%s6783_s28 + $0x7e0] sm:$0xff] %v1417_v45 }
 0x16c   : > { %4541 = vst [vmem:[%s6783_s28 + $0x7e8] sm:$0xff] %v1418_v46  ;;  %4542 = vst [vmem:[%s6783_s28 + $0x7f0] sm:$0xff] %v1419_v47 }
 0x16d LB: >> { %s7806_s18 = sld [smem:[#allocation18_spill]]  ;;  %v1757_v48 = vld [vmem:[#allocation8] sm:$0xff]  ;;  %v6420_v49 = vmov 0.0   ;;  %v1758_v50 = vld [vmem:[#allocation8 + $0x8] sm:$0xff]  ;;  %v1759_v51 = vld [vmem:[#allocation8 + $0x10] sm:$0xff]  ;;  %p1481_p10 = scmp.le.s32.totalorder %s6411_s29, 16  ;;  %s6411_s29 = sphi %s7152_s29, %s1448_s29   ;;  %s6407_s6 = sphi %s7150_s6, %s7811_s6   ;;  %s6403_s27 = sphi %s7148_s27, %s7810_s27   ;;  %s6399_s23 = sphi %s7146_s23, %s7809_s23  }
 0x16e   : >> { %1592 = vmatprep.mubr.f32.mxu0 %v6420_v49  ;;  %v1760_v52 = vld [vmem:[#allocation8 + $0x18] sm:$0xff]  ;;  %v7175_v53 = vpack.c.bf16 %v1758_v50, %v1757_v48  ;;  %s1482_s26 = sadd.s32 %s6411_s29, %s6754_s21  ;;  %v1761_v55 = vld [vmem:[#allocation8 + $0x20] sm:$0xff]  ;;  %v1762_v56 = vld [vmem:[#allocation8 + $0x28] sm:$0xff]  ;;  %s4548_s0 = sadd.s32 4294967280, %s6411_s29  ;;  %vm1521_vm0 = vcmask 195584  }
 0x16f   : >> { %v7177_v54 = vpack.c.bf16 %v1760_v52, %v1759_v51  ;;  %s1484_s10 = sadd.s32 %s4548_s0, %s6751_s14  ;;  %v7189_v57 = vpack.c.bf16 %v1762_v56, %v1761_v55  ;;  %v1763_v58 = vld [vmem:[#allocation8 + $0x30] sm:$0xff]  ;;  %v1764_v59 = vld [vmem:[#allocation8 + $0x38] sm:$0xff]  ;;  %v1765_v61 = vld [vmem:[#allocation8 + $0x40] sm:$0xff] }
 0x170   : >> { %5437 = vmatprep.subr.bf16.mxu1 %v7175_v53  ;;  %s7842_s26 = smov (!%p1481_p10, %s1482_s26), %s1484_s10  ;;  %v7196_v60 = vpack.c.bf16 %v1764_v59, %v1763_v58  ;;  %v1766_v62 = vld [vmem:[#allocation8 + $0x48] sm:$0xff]  ;;  %v1767_v2 = vld [vmem:[#allocation8 + $0x50] sm:$0xff]  ;;  %v1768_v3 = vld [vmem:[#allocation8 + $0x58] sm:$0xff] }
 0x171   : >> { %5439 = vmatpush3.bf16.msra.mxu1 %v7175_v53  ;;  %v7210_v7 = vpack.c.bf16 %v1766_v62, %v1765_v61  ;;  %v7226_v28 = vpack.c.bf16 %v1768_v3, %v1767_v2  ;;  %v1769_v32 = vld [vmem:[#allocation8 + $0x60] sm:$0xff]  ;;  %v1770_v38 = vld [vmem:[#allocation8 + $0x68] sm:$0xff] }
 0x172   : >> { %5441 = vmatprep.subr.bf16.mxu1 %v7177_v54  ;;  %v1519_v43 = vld [vmem:[#allocation9] sm:$0xff]  ;;  %v7240_v52 = vpack.c.bf16 %v1770_v38, %v1769_v32  ;;  %v1520_v55 = vld [vmem:[#allocation9 + $0x8] sm:$0xff] }
 0x173   : >> { %s4544_s8 = sadd.s32 4294967295, %s7806_s18  ;;  %s4582_s18 = smul.u32 120, %s7842_s26 }
 0x174   : >> { %s7167_s4 = sshll.u32 %s4544_s8, 4 }
 0x175   : >> { %s7172_s11 = sadd.s32 %s6411_s29, %s7167_s4  ;;  %5443 = vmatpush3.bf16.msra.mxu1 %v7177_v54  ;;  %s1448_s29 = sadd.s32 1, %s6411_s29  }
 0x176   : >> { %s1456_s3 = sadd.s32 11, %s7172_s11  ;;  %5445 = vmatprep.subr.bf16.mxu1 %v7189_v57  ;;  %s2189_s26 = sadd.s32 10, %s7172_s11 }
 0x177   : >> { %s1457_s7 = ssub.s32 %s1456_s3, %s7167_s4  ;;  %s7204_s3 = scalar_lea.vmem [#allocation2], %s4582_s18 }
 0x178   : >> { %p1458_p1 = scmp.le.s32.totalorder %s1457_s7, 16  ;;  %s1459_s2 = sadd.s32 %s1457_s7, %s6754_s21  ;;  %v1490_v4 = vld [vmem:[%s7204_s3 + $0x8] sm:$0xff]  ;;  %v1495_v5 = vld [vmem:[%s7204_s3 + $0x30] sm:$0xff]  ;;  %v1489_v10 = vld [vmem:[%s7204_s3] sm:$0xff] }
 0x179   : >> { %s4546_s22 = sadd.s32 4294967280, %s1457_s7  ;;  %5447 = vmatpush3.bf16.msra.mxu1 %v7189_v57  ;;  %v1494_v11 = vld [vmem:[%s7204_s3 + $0x28] sm:$0xff]  ;;  %v1500_v15 = vld [vmem:[%s7204_s3 + $0x58] sm:$0xff]  ;;  %v1499_v17 = vld [vmem:[%s7204_s3 + $0x50] sm:$0xff]  ;;  %s2188_s7 = sadd.s32 1, %s7172_s11 }
 0x17a   : >> { %s1461_s28 = sadd.s32 %s4546_s22, %s6751_s14  ;;  %5449 = vmatprep.subr.bf16.mxu1 %v7196_v60  ;;  %v1492_v22 = vld [vmem:[%s7204_s3 + $0x18] sm:$0xff]  ;;  %v1497_v24 = vld [vmem:[%s7204_s3 + $0x40] sm:$0xff]  ;;  %v1491_v30 = vld [vmem:[%s7204_s3 + $0x10] sm:$0xff]  ;;  %s2190_s0 = ssub.s32 %s2189_s26, %s7167_s4 }
 0x17b   : >> { %s7840_s2 = smov (!%p1458_p1, %s1459_s2), %s1461_s28  ;;  %v1496_v31 = vld [vmem:[%s7204_s3 + $0x38] sm:$0xff]  ;;  %v1502_v37 = vld [vmem:[%s7204_s3 + $0x68] sm:$0xff]  ;;  %v1493_v42 = vld [vmem:[%s7204_s3 + $0x20] sm:$0xff]  ;;  %s4556_s22 = sadd.s32 4294967280, %s2190_s0 }
 0x17c   : >> { %s4581_s15 = smul.u32 120, %s7840_s2  ;;  %v1498_v45 = vld [vmem:[%s7204_s3 + $0x48] sm:$0xff]  ;;  %v1501_v48 = vld [vmem:[%s7204_s3 + $0x60] sm:$0xff]  ;;  %v1503_v61 = vld [vmem:[%s7204_s3 + $0x70] sm:$0xff]  ;;  %s2214_s2 = ssub.s32 %s2188_s7, %s7167_s4 }
 0x17d   : >> { %5451 = vmatpush3.bf16.msra.mxu1 %v7196_v60  ;;  %s4558_s10 = sadd.s32 4294967280, %s2214_s2  ;;  %p2191_p7 = scmp.le.s32.totalorder %s2190_s0, 16 }
 0x17e   : >> { %s7198_s8 = scalar_lea.vmem [#allocation2], %s4581_s15  ;;  %5453 = vmatprep.subr.bf16.mxu1 %v7210_v7  ;;  %s2192_s28 = sadd.s32 %s2190_s0, %s6754_s21 }
 0x17f   : >> { %v1467_v63 = vld [vmem:[%s7198_s8 + $0x8] sm:$0xff]  ;;  %v1472_v0 = vld [vmem:[%s7198_s8 + $0x30] sm:$0xff]  ;;  %v1466_v1 = vld [vmem:[%s7198_s8] sm:$0xff]  ;;  %s2194_s15 = sadd.s32 %s4556_s22, %s6751_s14  ;;  %p2215_p13 = scmp.le.s32.totalorder %s2214_s2, 16 }
 0x180   : >> { %v1471_v6 = vld [vmem:[%s7198_s8 + $0x28] sm:$0xff]  ;;  %v1505_v8 = vsub.f32 %v1467_v63, %v1490_v4  ;;  %v1510_v9 = vsub.f32 %v1472_v0, %v1495_v5  ;;  %v1477_v12 = vld [vmem:[%s7198_s8 + $0x58] sm:$0xff]  ;;  %v1504_v13 = vsub.f32 %v1466_v1, %v1489_v10  ;;  %v1476_v16 = vld [vmem:[%s7198_s8 + $0x50] sm:$0xff]  ;;  %s2216_s18 = sadd.s32 %s2214_s2, %s6754_s21  ;;  %s7844_s28 = smov (!%p2191_p7, %s2192_s28), %s2194_s15 }
 0x181   : >> { %v1509_v14 = vsub.f32 %v1471_v6, %v1494_v11  ;;  %v1515_v19 = vsub.f32 %v1477_v12, %v1500_v15  ;;  %v1469_v20 = vld [vmem:[%s7198_s8 + $0x18] sm:$0xff]  ;;  %v1474_v21 = vld [vmem:[%s7198_s8 + $0x40] sm:$0xff]  ;;  %v1468_v26 = vld [vmem:[%s7198_s8 + $0x10] sm:$0xff]  ;;  %v1514_v33 = vsub.f32 %v1476_v16, %v1499_v17  ;;  %5455 = vmatpush3.bf16.msra.mxu1 %v7210_v7  ;;  %s4583_s3 = smul.u32 120, %s7844_s28  ;;  %s2924_s2 = sadd.s32 9, %s7172_s11 }
 0x182   : >> { %v5424_v18 = vpack.c.bf16 %v1510_v9, %v1505_v8  ;;  %v1507_v25 = vsub.f32 %v1469_v20, %v1492_v22  ;;  %v1473_v27 = vld [vmem:[%s7198_s8 + $0x38] sm:$0xff]  ;;  %v1512_v29 = vsub.f32 %v1474_v21, %v1497_v24  ;;  %v1506_v34 = vsub.f32 %v1468_v26, %v1491_v30  ;;  %v1479_v36 = vld [vmem:[%s7198_s8 + $0x68] sm:$0xff]  ;;  %v1470_v40 = vld [vmem:[%s7198_s8 + $0x20] sm:$0xff]  ;;  %5457 = vmatprep.subr.bf16.mxu1 %v7226_v28  ;;  %s2923_s22 = sadd.s32 2, %s7172_s11  ;;  %p1455_p4 = scmp.lt.s32.totalorder %s7172_s11, 8 }
 0x183   : >> { %v5426_v23 = vpack.c.bf16 %v1509_v14, %v1504_v13  ;;  %v1511_v35 = vsub.f32 %v1473_v27, %v1496_v31  ;;  %v1475_v41 = vld [vmem:[%s7198_s8 + $0x48] sm:$0xff]  ;;  %v1517_v46 = vsub.f32 %v1479_v36, %v1502_v37  ;;  %v1478_v47 = vld [vmem:[%s7198_s8 + $0x60] sm:$0xff]  ;;  %v1508_v50 = vsub.f32 %v1470_v40, %v1493_v42  ;;  %v1480_v59 = vld [vmem:[%s7198_s8 + $0x70] sm:$0xff]  ;;  %s2218_s8 = sadd.s32 %s4558_s10, %s6751_s14  ;;  %s7314_s7 = scalar_lea.vmem [#allocation2], %s4583_s3 }
 0x184   : >> { %5425 = vmatprep.subr.bf16.mxu0 %v5424_v18  ;;  %v5428_v39 = vpack.c.bf16 %v1512_v29, %v1507_v25  ;;  %v1513_v51 = vsub.f32 %v1475_v41, %v1498_v45  ;;  %v1516_v56 = vsub.f32 %v1478_v47, %v1501_v48  ;;  %v1518_v62 = vsub.f32 %v1480_v59, %v1503_v61  ;;  %v1771_v63 = vld [vmem:[#allocation8 + $0x70] sm:$0xff]  ;;  %v1772_v0 = vld [vmem:[#allocation8 + $0x78] sm:$0xff]  ;;  %s7846_s18 = smov (!%p2215_p13, %s2216_s18), %s2218_s8  ;;  %v2205_v14 = vld [vmem:[%s7314_s7 + $0x30] sm:$0xff]  ;;  %s2925_s10 = ssub.s32 %s2924_s2, %s7167_s4 }
 0x185   : >> { %5427 = vmatpush1.bf16.msra.mxu0 %v5426_v23  ;;  %v5430_v44 = vpack.c.bf16 %v1511_v35, %v1506_v34  ;;  %5459 = vmatpush3.bf16.msra.mxu1 %v7226_v28  ;;  %v7270_v1 = vpack.c.bf16 %v1772_v0, %v1771_v63  ;;  %s4584_s26 = smul.u32 120, %s7846_s18  ;;  %v2200_v13 = vld [vmem:[%s7314_s7 + $0x8] sm:$0xff]  ;;  %v2199_v17 = vld [vmem:[%s7314_s7] sm:$0xff]  ;;  %v2210_v25 = vld [vmem:[%s7314_s7 + $0x58] sm:$0xff]  ;;  %s7449_s28 = ssub.s32 %s2923_s22, %s7167_s4 }
 0x186   : >> { %1532 = vmatprep.subr.mxu0 %v1515_v19  ;;  %v5432_v58 = vpack.c.bf16 %v1513_v51, %v1508_v50  ;;  %5461 = vmatprep.subr.bf16.mxu1 %v7240_v52  ;;  %v2204_v20 = vld [vmem:[%s7314_s7 + $0x28] sm:$0xff]  ;;  %v2202_v29 = vld [vmem:[%s7314_s7 + $0x18] sm:$0xff]  ;;  %v2207_v30 = vld [vmem:[%s7314_s7 + $0x40] sm:$0xff]  ;;  %s4566_s15 = sadd.s32 4294967280, %s2925_s10  ;;  %s4568_s18 = sadd.s32 4294967280, %s7449_s28 }
 0x187   : >> { %s7318_s0 = scalar_lea.vmem [#allocation2], %s4584_s26  ;;  %v2206_v34 = vld [vmem:[%s7314_s7 + $0x38] sm:$0xff]  ;;  %v2212_v45 = vld [vmem:[%s7314_s7 + $0x68] sm:$0xff]  ;;  %v2203_v47 = vld [vmem:[%s7314_s7 + $0x20] sm:$0xff]  ;;  %p2926_p6 = scmp.le.s32.totalorder %s2925_s10, 16 }
 0x188   : >> { %v2224_v15 = vld [vmem:[%s7318_s0 + $0x8] sm:$0xff]  ;;  %v2229_v16 = vld [vmem:[%s7318_s0 + $0x30] sm:$0xff]  ;;  %v2223_v21 = vld [vmem:[%s7318_s0] sm:$0xff]  ;;  %s2927_s4 = sadd.s32 %s2925_s10, %s6754_s21  ;;  %s2929_s8 = sadd.s32 %s4566_s15, %s6751_s14 }
 0x189   : >> { %1533 = vmatpush1.msra.mxu0 %v1514_v33  ;;  %5463 = vmatpush3.bf16.msra.mxu1 %v7240_v52  ;;  %v2239_v18 = vsub.f32 %v2200_v13, %v2224_v15  ;;  %v2244_v19 = vsub.f32 %v2205_v14, %v2229_v16  ;;  %v2228_v22 = vld [vmem:[%s7318_s0 + $0x28] sm:$0xff]  ;;  %v2238_v23 = vsub.f32 %v2199_v17, %v2223_v21  ;;  %v2234_v27 = vld [vmem:[%s7318_s0 + $0x58] sm:$0xff]  ;;  %v2231_v32 = vld [vmem:[%s7318_s0 + $0x40] sm:$0xff]  ;;  %p2950_p3 = scmp.le.s32.totalorder %s7449_s28, 16  ;;  %s2951_s3 = sadd.s32 %s7449_s28, %s6754_s21 }
 0x18a   : >> { %4550 = vmatmul.mubr.msk.f32.vlgmr.msra.gmra.mrb[0].mxu0 %vm1521_vm0, %v1519_v43  ;;  %5429 = vmatprep.subr.bf16.mxu0 %v5428_v39  ;;  %v2243_v24 = vsub.f32 %v2204_v20, %v2228_v22  ;;  %v2226_v31 = vld [vmem:[%s7318_s0 + $0x18] sm:$0xff]  ;;  %v2201_v33 = vld [vmem:[%s7314_s7 + $0x10] sm:$0xff]  ;;  %v2249_v38 = vsub.f32 %v2210_v25, %v2234_v27  ;;  %v2246_v42 = vsub.f32 %v2207_v30, %v2231_v32  ;;  %v2208_v50 = vld [vmem:[%s7314_s7 + $0x48] sm:$0xff]  ;;  %s2953_s26 = sadd.s32 %s4568_s18, %s6751_s14  ;;  %s7848_s4 = smov (!%p2926_p6, %s2927_s4), %s2929_s8 }
 0x18b   : >> { %1598 = vmatprep.mubr.f32.mxu0 %v6420_v49  ;;  %5431 = vmatpush1.bf16.msra.mxu0 %v5430_v44  ;;  %v5596_v26 = vpack.c.bf16 %v2244_v19, %v2239_v18  ;;  %v2225_v35 = vld [vmem:[%s7318_s0 + $0x10] sm:$0xff]  ;;  %v2230_v36 = vld [vmem:[%s7318_s0 + $0x38] sm:$0xff]  ;;  %v2241_v41 = vsub.f32 %v2202_v29, %v2226_v31  ;;  %v2227_v51 = vld [vmem:[%s7318_s0 + $0x20] sm:$0xff]  ;;  %s7850_s3 = smov (!%p2950_p3, %s2951_s3), %s2953_s26  ;;  %p1445_p9 = scmp.ge.s32.totalorder %s1448_s29, 16  }
 0x18c   : >> { %1609 = vmatprep.subr.mxu0 %v1517_v46  ;;  %5465 = vmatprep.subr.bf16.mxu1 %v7270_v1  ;;  %v5598_v37 = vpack.c.bf16 %v2243_v24, %v2238_v23  ;;  %v2209_v39 = vld [vmem:[%s7314_s7 + $0x50] sm:$0xff]  ;;  %v2245_v44 = vsub.f32 %v2206_v34, %v2230_v36  ;;  %v2236_v46 = vld [vmem:[%s7318_s0 + $0x68] sm:$0xff]  ;;  %v2211_v61 = vld [vmem:[%s7314_s7 + $0x60] sm:$0xff]  ;;  %v2242_v63 = vsub.f32 %v2203_v47, %v2227_v51 }
 0x18d   : >> { %5467 = vmatpush3.bf16.msra.mxu1 %v7270_v1  ;;  %v2233_v40 = vld [vmem:[%s7318_s0 + $0x50] sm:$0xff]  ;;  %v2251_v59 = vsub.f32 %v2212_v45, %v2236_v46  ;;  %v2501_v15 = vld [vmem:[#allocation8 + $0xc8] sm:$0xff]  ;;  %v2502_v17 = vld [vmem:[#allocation8 + $0xd0] sm:$0xff] }
 0x18e   : >> { %4551 = vmatmul.mubr.msk.f32.gmra.mrb[2].mxu0 %vm1521_vm0, %v1520_v55  ;;  %5501 = vmatprep.subr.bf16.mxu1 %v7175_v53  ;;  %v2248_v48 = vsub.f32 %v2209_v39, %v2233_v40  ;;  %v2500_v14 = vld [vmem:[#allocation8 + $0xc0] sm:$0xff]  ;;  %v2503_v18 = vld [vmem:[#allocation8 + $0xd8] sm:$0xff]  ;;  %v2505_v21 = vld [vmem:[#allocation8 + $0xe8] sm:$0xff] }
 0x18f   : >> { %1610 = vmatpush1.msra.mxu0 %v1516_v56  ;;  %1669 = vmatprep.mubr.f32.mxu0 %v6420_v49  ;;  %v5600_v56 = vpack.c.bf16 %v2246_v42, %v2241_v41  ;;  %v7410_v16 = vpack.c.bf16 %v2501_v15, %v2500_v14  ;;  %v7416_v19 = vpack.c.bf16 %v2503_v18, %v2502_v17  ;;  %v2504_v20 = vld [vmem:[#allocation8 + $0xe0] sm:$0xff]  ;;  %v2506_v23 = vld [vmem:[#allocation8 + $0xf0] sm:$0xff]  ;;  %v2507_v24 = vld [vmem:[#allocation8 + $0xf8] sm:$0xff] }
 0x190   : >> { %5433 = vmatprep.subr.bf16.mxu0 %v5432_v58  ;;  %v7424_v22 = vpack.c.bf16 %v2505_v21, %v2504_v20  ;;  %v7430_v25 = vpack.c.bf16 %v2507_v24, %v2506_v23 }
 0x192   : >> { %4552 = vmatmul.mubr.msk.f32.vlgmr.msra.gmra.mrb[4].mxu0 %vm1521_vm0, %v1519_v43 }
 0x193   : >> { %1675 = vmatprep.mubr.f32.mxu0 %v6420_v49  ;;  %5435 = vmatpush3.bf16.msra.mxu0 %v5432_v58  ;;  %v2254_v58 = vld [vmem:[#allocation9 + $0x10] sm:$0xff] }
 0x194   : >> { %4876 = vmatprep.subr.mxu0 %v1518_v62 }
 0x196   : >> { %4553 = vmatmul.mubr.msk.f32.gmra.mrb[6].mxu0 %vm1521_vm0, %v1520_v55 }
 0x197   : >> { %4877 = vmatpush3.msra.mxu0 %v1518_v62  ;;  %4878 = vmatprep.mubr.msk.f32.mxu0 %vm1521_vm0, %v1519_v43  ;;  %v2240_v43 = vsub.f32 %v2201_v33, %v2225_v35  ;;  %v2235_v62 = vld [vmem:[%s7318_s0 + $0x60] sm:$0xff] }
 0x198   : >> { %5469 = vmatprep.subr.bf16.mxu0 %v7175_v53 }
 0x19a   : >> { %4879 = vmatmul.mubr.msk.f32.vlgmr.msra.gmra.mrb[8].mxu0 %vm1521_vm0, %v1520_v55  ;;  %v2232_v55 = vld [vmem:[%s7318_s0 + $0x48] sm:$0xff] }
 0x19b   : >> { %5471 = vmatpush3.bf16.msra.mxu0 %v7175_v53  ;;  %v2247_v0 = vsub.f32 %v2208_v50, %v2232_v55 }
 0x19c   : >> { %5473 = vmatprep.subr.bf16.mxu0 %v7177_v54 }
 0x19f   : >> { %5475 = vmatpush3.bf16.msra.mxu0 %v7177_v54 }
 0x1a0   : >> { %5477 = vmatprep.subr.bf16.mxu0 %v7189_v57 }
 0x1a3   : >> { %5479 = vmatpush3.bf16.msra.mxu0 %v7189_v57 }
 0x1a4   : >> { %5481 = vmatprep.subr.bf16.mxu0 %v7196_v60 }
 0x1a7   : >> { %5483 = vmatpush3.bf16.msra.mxu0 %v7196_v60 }
 0x1a8   : >> { %5485 = vmatprep.subr.bf16.mxu0 %v7210_v7 }
 0x1ab   : >> { %5487 = vmatpush3.bf16.msra.mxu0 %v7210_v7 }
 0x1ac   : >> { %5489 = vmatprep.subr.bf16.mxu0 %v7226_v28 }
 0x1af   : >> { %5491 = vmatpush3.bf16.msra.mxu0 %v7226_v28 }
 0x1b0   : >> { %5493 = vmatprep.subr.bf16.mxu0 %v7240_v52 }
 0x1b3   : >> { %5495 = vmatpush3.bf16.msra.mxu0 %v7240_v52 }
 0x1b4   : >> { %5497 = vmatprep.subr.bf16.mxu0 %v7270_v1 }
 0x1b7   : >> { %5499 = vmatpush3.bf16.msra.mxu0 %v7270_v1 }
 0x1b8   : >> { %5533 = vmatprep.subr.bf16.mxu0 %v7175_v53 }
 0x25d   : >> { %v1594_v2 = vpop.f32.mrb[0].mxu0 }
 0x25e   : >> { %v1596_v3 = vpop.f32.mrb[1].mxu0  ;;  %4913 = vmatprep.mubr.f32.mxu1 %v1594_v2  ;;  %v2255_v2 = vld [vmem:[#allocation9 + $0x18] sm:$0xff] }
 0x25f   : >> { %4948 = vmatprep.mubr.f32.mxu0 %v1596_v3  ;;  %v2250_v3 = vsub.f32 %v2211_v61, %v2235_v62 }
 0x261   : >> { %v1600_v4 = vpop.f32.mrb[2].mxu0 }
 0x262   : >> { %v1602_v5 = vpop.f32.mrb[3].mxu0  ;;  %4914 = vmatmul.mubr.f32.vlgmr.msra.gmra.mrb[0].mxu1 %v1600_v4  ;;  %v2213_v4 = vld [vmem:[%s7314_s7 + $0x70] sm:$0xff]  ;;  %s4585_s7 = smul.u32 120, %s7848_s4 }
 0x263   : >> { %5503 = vmatpush3.bf16.msra.mxu1 %v7175_v53  ;;  %4949 = vmatmul.mubr.f32.vlgmr.msra.gmra.mrb[10].mxu0 %v1602_v5  ;;  %v2237_v5 = vld [vmem:[%s7318_s0 + $0x70] sm:$0xff]  ;;  %s4586_s0 = smul.u32 120, %s7850_s3 }
 0x264   : >> { %5535 = vmatpush3.bf16.msra.mxu0 %v7175_v53  ;;  %5505 = vmatprep.subr.bf16.mxu1 %v7177_v54  ;;  %s7484_s2 = scalar_lea.vmem [#allocation2], %s4585_s7 }
 0x265   : >> { %5537 = vmatprep.subr.bf16.mxu0 %v7177_v54  ;;  %v1671_v6 = vpop.f32.mrb[4].mxu0  ;;  %s7489_s22 = scalar_lea.vmem [#allocation2], %s4586_s0  ;;  %v2936_v17 = vld [vmem:[%s7484_s2 + $0x10] sm:$0xff]  ;;  %v2941_v21 = vld [vmem:[%s7484_s2 + $0x38] sm:$0xff] }
 0x266   : >> { %v1673_v8 = vpop.f32.mrb[5].mxu0  ;;  %4983 = vmatprep.mubr.f32.mxu1 %v1671_v6  ;;  %v2252_v6 = vsub.f32 %v2213_v4, %v2237_v5  ;;  %v2937_v5 = vld [vmem:[%s7484_s2 + $0x18] sm:$0xff]  ;;  %v2960_v23 = vld [vmem:[%s7489_s22 + $0x10] sm:$0xff] }
 0x267   : >> { %5507 = vmatpush3.bf16.msra.mxu1 %v7177_v54  ;;  %5018 = vmatprep.mubr.f32.mxu0 %v1673_v8  ;;  %v2965_v24 = vld [vmem:[%s7489_s22 + $0x38] sm:$0xff] }
 0x268   : >> { %5539 = vmatpush3.bf16.msra.mxu0 %v7177_v54  ;;  %5509 = vmatprep.subr.bf16.mxu1 %v7189_v57 }
 0x269   : >> { %5541 = vmatprep.subr.bf16.mxu0 %v7189_v57  ;;  %v7294_v9 = vpop.f32.mrb[6].mxu0 }
 0x26a   : >> { %v7296_v10 = vpop.f32.mrb[7].mxu0 }
 0x26b   : >> { %5511 = vmatpush3.bf16.msra.mxu1 %v7189_v57 }
 0x26c   : >> { %5543 = vmatpush3.bf16.msra.mxu0 %v7189_v57  ;;  %5513 = vmatprep.subr.bf16.mxu1 %v7196_v60 }
 0x26d   : >> { %5545 = vmatprep.subr.bf16.mxu0 %v7196_v60  ;;  %v7302_v11 = vpop.f32.mrb[8].mxu0 }
 0x26e   : >> { %v7304_v12 = vpop.f32.mrb[9].mxu0 }
 0x26f   : >> { %5515 = vmatpush3.bf16.msra.mxu1 %v7196_v60 }
 0x270   : >> { %5547 = vmatpush3.bf16.msra.mxu0 %v7196_v60  ;;  %5517 = vmatprep.subr.bf16.mxu1 %v7210_v7 }
 0x271   : >> { %5549 = vmatprep.subr.bf16.mxu0 %v7210_v7 }
 0x273   : >> { %5519 = vmatpush3.bf16.msra.mxu1 %v7210_v7 }
 0x274   : >> { %5551 = vmatpush3.bf16.msra.mxu0 %v7210_v7  ;;  %5521 = vmatprep.subr.bf16.mxu1 %v7226_v28 }
 0x275   : >> { %5553 = vmatprep.subr.bf16.mxu0 %v7226_v28 }
 0x277   : >> { %5523 = vmatpush3.bf16.msra.mxu1 %v7226_v28 }
 0x278   : >> { %5555 = vmatpush3.bf16.msra.mxu0 %v7226_v28  ;;  %5525 = vmatprep.subr.bf16.mxu1 %v7240_v52 }
 0x279   : >> { %5557 = vmatprep.subr.bf16.mxu0 %v7240_v52 }
 0x27b   : >> { %5527 = vmatpush3.bf16.msra.mxu1 %v7240_v52 }
 0x27c   : >> { %5559 = vmatpush3.bf16.msra.mxu0 %v7240_v52  ;;  %5529 = vmatprep.subr.bf16.mxu1 %v7270_v1 }
 0x27d   : >> { %5561 = vmatprep.subr.bf16.mxu0 %v7270_v1 }
 0x27f   : >> { %5531 = vmatpush3.bf16.msra.mxu1 %v7270_v1 }
 0x280   : >> { %5563 = vmatpush3.bf16.msra.mxu0 %v7270_v1  ;;  %5565 = vmatprep.subr.bf16.mxu1 %v7175_v53 }
 0x281   : >> { %5597 = vmatprep.subr.bf16.mxu0 %v5596_v26 }
 0x282   : >> { %4984 = vmatmul.mubr.f32.vlgmr.msra.gmra.mrb[2].mxu1 %v7294_v9  ;;  %v2495_v9 = vld [vmem:[#allocation8 + $0x98] sm:$0xff] }
 0x283   : >> { %5019 = vmatmul.mubr.f32.vlgmr.msra.gmra.mrb[12].mxu0 %v7296_v10  ;;  %5567 = vmatpush3.bf16.msra.mxu1 %v7175_v53  ;;  %v5602_v53 = vpack.c.bf16 %v2245_v44, %v2240_v43 }
 0x284   : >> { %5599 = vmatpush1.bf16.msra.mxu0 %v5598_v37  ;;  %5569 = vmatprep.subr.bf16.mxu1 %v7177_v54 }
 0x285   : >> { %2266 = vmatprep.subr.mxu0 %v2249_v38  ;;  %2326 = vmatprep.mubr.f32.mxu0 %v6420_v49 }
 0x286   : >> { %5053 = vmatprep.mubr.f32.mxu1 %v7304_v12  ;;  %v2497_v12 = vld [vmem:[#allocation8 + $0xa8] sm:$0xff] }
 0x287   : >> { %5571 = vmatpush3.bf16.msra.mxu1 %v7177_v54  ;;  %v5604_v54 = vpack.c.bf16 %v2247_v0, %v2242_v63 }
 0x288   : >> { %2267 = vmatpush1.msra.mxu0 %v2248_v48  ;;  %5573 = vmatprep.subr.bf16.mxu1 %v7189_v57 }
 0x289   : >> { %4560 = vmatmul.mubr.msk.f32.vlgmr.msra.gmra.mrb[14].mxu0 %vm1521_vm0, %v2254_v58  ;;  %5601 = vmatprep.subr.bf16.mxu0 %v5600_v56 }
 0x28a   : >> { %2332 = vmatprep.mubr.f32.mxu0 %v6420_v49  ;;  %5603 = vmatpush1.bf16.msra.mxu0 %v5602_v53 }
 0x28b   : >> { %5575 = vmatpush3.bf16.msra.mxu1 %v7189_v57  ;;  %2343 = vmatprep.subr.mxu0 %v2251_v59  ;;  %v2492_v57 = vld [vmem:[#allocation8 + $0x80] sm:$0xff] }
 0x28c   : >> { %5577 = vmatprep.subr.bf16.mxu1 %v7196_v60 }
 0x28d   : >> { %4561 = vmatmul.mubr.msk.f32.gmra.mrb[16].mxu0 %vm1521_vm0, %v2255_v2 }
 0x28e   : >> { %2344 = vmatpush1.msra.mxu0 %v2250_v3  ;;  %2403 = vmatprep.mubr.f32.mxu0 %v6420_v49 }
 0x28f   : >> { %5579 = vmatpush3.bf16.msra.mxu1 %v7196_v60  ;;  %5605 = vmatprep.subr.bf16.mxu0 %v5604_v54  ;;  %v2493_v60 = vld [vmem:[#allocation8 + $0x88] sm:$0xff] }
 0x290   : >> { %5581 = vmatprep.subr.bf16.mxu1 %v7210_v7  ;;  %v7388_v8 = vpack.c.bf16 %v2493_v60, %v2492_v57  ;;  %v2942_v60 = vld [vmem:[%s7484_s2 + $0x40] sm:$0xff] }
 0x291   : >> { %4562 = vmatmul.mubr.msk.f32.vlgmr.msra.gmra.mrb[18].mxu0 %vm1521_vm0, %v2254_v58 }
 0x292   : >> { %2409 = vmatprep.mubr.f32.mxu0 %v6420_v49  ;;  %5607 = vmatpush3.bf16.msra.mxu0 %v5604_v54 }
 0x293   : >> { %5583 = vmatpush3.bf16.msra.mxu1 %v7210_v7  ;;  %5060 = vmatprep.subr.mxu0 %v2252_v6  ;;  %v2494_v7 = vld [vmem:[#allocation8 + $0x90] sm:$0xff] }
 0x294   : >> { %5585 = vmatprep.subr.bf16.mxu1 %v7226_v28  ;;  %v7390_v10 = vpack.c.bf16 %v2495_v9, %v2494_v7  ;;  %v2961_v7 = vld [vmem:[%s7489_s22 + $0x18] sm:$0xff]  ;;  %v2966_v9 = vld [vmem:[%s7489_s22 + $0x40] sm:$0xff] }
 0x295   : >> { %4563 = vmatmul.mubr.msk.f32.gmra.mrb[20].mxu0 %vm1521_vm0, %v2255_v2  ;;  %v2976_v14 = vsub.f32 %v2937_v5, %v2961_v7  ;;  %v2981_v15 = vsub.f32 %v2942_v60, %v2966_v9  ;;  %v3229_v9 = vld [vmem:[#allocation8 + $0x110] sm:$0xff] }
 0x296   : >> { %5061 = vmatpush3.msra.mxu0 %v2252_v6  ;;  %5062 = vmatprep.mubr.msk.f32.mxu0 %vm1521_vm0, %v2254_v58 }
 0x297   : >> { %5587 = vmatpush3.bf16.msra.mxu1 %v7226_v28  ;;  %v2496_v28 = vld [vmem:[#allocation8 + $0xa0] sm:$0xff]  ;;  %5609 = vmatprep.subr.bf16.mxu0 %v7388_v8 }
 0x298   : >> { %5589 = vmatprep.subr.bf16.mxu1 %v7240_v52 }
 0x299   : >> { %5063 = vmatmul.mubr.msk.f32.vlgmr.msra.gmra.mrb[22].mxu0 %vm1521_vm0, %v2255_v2 }
 0x29a   : >> { %5611 = vmatpush3.bf16.msra.mxu0 %v7388_v8 }
 0x29b   : >> { %5591 = vmatpush3.bf16.msra.mxu1 %v7240_v52  ;;  %5613 = vmatprep.subr.bf16.mxu0 %v7390_v10  ;;  %v7398_v52 = vpack.c.bf16 %v2497_v12, %v2496_v28 }
 0x29c   : >> { %5593 = vmatprep.subr.bf16.mxu1 %v7270_v1 }
 0x29e   : >> { %5615 = vmatpush3.bf16.msra.mxu0 %v7390_v10 }
 0x29f   : >> { %5595 = vmatpush3.bf16.msra.mxu1 %v7270_v1  ;;  %v2498_v1 = vld [vmem:[#allocation8 + $0xb0] sm:$0xff]  ;;  %5617 = vmatprep.subr.bf16.mxu0 %v7398_v52 }
 0x2a0   : >> { %5641 = vmatprep.subr.bf16.mxu1 %v7388_v8 }
 0x2a2   : >> { %5054 = vmatmul.mubr.f32.vlgmr.msra.gmra.mrb[4].mxu1 %v7302_v11  ;;  %v2499_v11 = vld [vmem:[#allocation8 + $0xb8] sm:$0xff]  ;;  %5619 = vmatpush3.bf16.msra.mxu0 %v7398_v52 }
 0x2a3   : >> { %5643 = vmatpush3.bf16.msra.mxu1 %v7388_v8  ;;  %v7404_v13 = vpack.c.bf16 %v2499_v11, %v2498_v1 }
 0x2a4   : >> { %5645 = vmatprep.subr.bf16.mxu1 %v7390_v10 }
 0x2a5   : >> { %5621 = vmatprep.subr.bf16.mxu0 %v7404_v13 }
 0x2a6   : >> { %5623 = vmatpush3.bf16.msra.mxu0 %v7404_v13 }
 0x2a7   : >> { %5647 = vmatpush3.bf16.msra.mxu1 %v7390_v10  ;;  %5625 = vmatprep.subr.bf16.mxu0 %v7410_v16 }
 0x2a8   : >> { %5649 = vmatprep.subr.bf16.mxu1 %v7398_v52 }
 0x2aa   : >> { %5627 = vmatpush3.bf16.msra.mxu0 %v7410_v16 }
 0x2ab   : >> { %5651 = vmatpush3.bf16.msra.mxu1 %v7398_v52  ;;  %5629 = vmatprep.subr.bf16.mxu0 %v7416_v19 }
 0x2ac   : >> { %5653 = vmatprep.subr.bf16.mxu1 %v7404_v13 }
 0x2ae   : >> { %5631 = vmatpush3.bf16.msra.mxu0 %v7416_v19 }
 0x2af   : >> { %5655 = vmatpush3.bf16.msra.mxu1 %v7404_v13  ;;  %5633 = vmatprep.subr.bf16.mxu0 %v7424_v22 }
 0x2b0   : >> { %5657 = vmatprep.subr.bf16.mxu1 %v7410_v16 }
 0x2b2   : >> { %5635 = vmatpush3.bf16.msra.mxu0 %v7424_v22 }
 0x2b3   : >> { %5659 = vmatpush3.bf16.msra.mxu1 %v7410_v16  ;;  %5637 = vmatprep.subr.bf16.mxu0 %v7430_v25 }
 0x2b4   : >> { %5661 = vmatprep.subr.bf16.mxu1 %v7416_v19 }
 0x2b6   : >> { %5639 = vmatpush3.bf16.msra.mxu0 %v7430_v25 }
 0x2b7   : >> { %5663 = vmatpush3.bf16.msra.mxu1 %v7416_v19  ;;  %5673 = vmatprep.subr.bf16.mxu0 %v7388_v8 }
 0x2b8   : >> { %5665 = vmatprep.subr.bf16.mxu1 %v7424_v22 }
 0x2bb   : >> { %5667 = vmatpush3.bf16.msra.mxu1 %v7424_v22 }
 0x2bc   : >> { %5669 = vmatprep.subr.bf16.mxu1 %v7430_v25 }
 0x2bf   : >> { %5671 = vmatpush3.bf16.msra.mxu1 %v7430_v25 }
 0x2c0   : >> { %5705 = vmatprep.subr.bf16.mxu1 %v7388_v8 }
 0x335   : >> { %v4915_v26 = vpop.f32.mrb[0].mxu1 }
 0x336   : >> { %v1839_v27 = vpop.f32.mrb[1].mxu1  ;;  %v4950_v29 = vpop.f32.mrb[10].mxu0  ;;  %v2155_v33 = vmul.f32 %v4915_v26, %v4915_v26 }
 0x337   : >> { %v7438_v30 = vmul.f32 %v4950_v29, %v4915_v26  ;;  %v1914_v31 = vpop.f32.mrb[11].mxu0  ;;  %v2154_v34 = vmul.f32 %v1839_v27, %v1839_v27  ;;  %v2161_v35 = vmul.f32 %v4950_v29, %v4950_v29 }
 0x338   : >> { %v7440_v32 = vmul.f32 %v1914_v31, %v1839_v27  ;;  %v2160_v36 = vmul.f32 %v1914_v31, %v1914_v31  ;;  %v2157_v37 = vmul.f32 0.0007513148, %v2155_v33  ;;  %v2975_v31 = vsub.f32 %v2936_v17, %v2960_v23  ;;  %v3235_v17 = vld [vmem:[#allocation8 + $0x140] sm:$0xff]  ;;  %v3238_v23 = vld [vmem:[#allocation8 + $0x158] sm:$0xff] }
 0x339   : >> { %v2156_v38 = vmul.f32 0.0007513148, %v2154_v34  ;;  %v2163_v39 = vmul.f32 0.0007513148, %v2161_v35  ;;  %v2151_v4 = vmul.f32 0.0007513148, %v7438_v30  ;;  %v5772_v30 = vpack.c.bf16 %v2981_v15, %v2976_v14 }
 0x33a   : >> { %v2162_v41 = vmul.f32 0.0007513148, %v2160_v36  ;;  %v2150_v6 = vmul.f32 0.0007513148, %v7440_v32  ;;  %v2980_v32 = vsub.f32 %v2941_v21, %v2965_v24  ;;  %v2947_v34 = vld [vmem:[%s7484_s2 + $0x68] sm:$0xff]  ;;  %v2938_v36 = vld [vmem:[%s7484_s2 + $0x20] sm:$0xff] }
 0x33b   : >> { %v2971_v35 = vld [vmem:[%s7489_s22 + $0x68] sm:$0xff]  ;;  %v3237_v21 = vld [vmem:[#allocation8 + $0x150] sm:$0xff] }
 0x33c   : >> { %v3234_v14 = vld [vmem:[#allocation8 + $0x138] sm:$0xff]  ;;  %v7587_v24 = vpack.c.bf16 %v3238_v23, %v3237_v21 }
 0x355   : >> { %v4985_v40 = vpop.f32.mrb[2].mxu1 }
 0x356   : >> { %v2159_v42 = vsub.f32 %v4985_v40, %v2157_v37  ;;  %v1989_v43 = vpop.f32.mrb[3].mxu1  ;;  %v5020_v44 = vpop.f32.mrb[12].mxu0  ;;  %v2943_v37 = vld [vmem:[%s7484_s2 + $0x48] sm:$0xff]  ;;  %v5774_v40 = vpack.c.bf16 %v2980_v32, %v2975_v31 }
 0x357   : >> { %v2158_v45 = vsub.f32 %v1989_v43, %v2156_v38  ;;  %v2165_v46 = vsub.f32 %v5020_v44, %v2163_v39  ;;  %v2064_v47 = vpop.f32.mrb[13].mxu0  ;;  %v2962_v38 = vld [vmem:[%s7489_s22 + $0x20] sm:$0xff]  ;;  %v2967_v39 = vld [vmem:[%s7489_s22 + $0x48] sm:$0xff] }
 0x358   : >> { %v2164_v48 = vsub.f32 %v2064_v47, %v2162_v41  ;;  %v2986_v41 = vsub.f32 %v2947_v34, %v2971_v35  ;;  %v2970_v43 = vld [vmem:[%s7489_s22 + $0x60] sm:$0xff]  ;;  %v2977_v44 = vsub.f32 %v2938_v36, %v2962_v38  ;;  %v3242_v31 = vld [vmem:[#allocation8 + $0x178] sm:$0xff] }
 0x359   : >> { %v2169_v50 = vmul.f32 %v2165_v46, %v2159_v42  ;;  %v2946_v42 = vld [vmem:[%s7484_s2 + $0x60] sm:$0xff] }
 0x35a   : >> { %v2168_v51 = vmul.f32 %v2164_v48, %v2158_v45  ;;  %v2982_v45 = vsub.f32 %v2943_v37, %v2967_v39  ;;  %v2985_v46 = vsub.f32 %v2946_v42, %v2970_v43  ;;  %v2948_v48 = vld [vmem:[%s7484_s2 + $0x70] sm:$0xff] }
 0x35b   : >> { %v2171_v0 = vadd.f32 0.001, %v2169_v50  ;;  %v2972_v50 = vld [vmem:[%s7489_s22 + $0x70] sm:$0xff] }
 0x35c   : >> { %v2328_v55 = vpop.f32.mrb[14].mxu0  ;;  %v2170_v2 = vadd.f32 0.001, %v2168_v51  ;;  %v5776_v47 = vpack.c.bf16 %v2982_v45, %v2977_v44  ;;  %v2989_v51 = vld [vmem:[#allocation9 + $0x20] sm:$0xff] }
 0x35d   : >> { %v2330_v56 = vpop.f32.mrb[15].mxu0  ;;  %5097 = vmatprep.mubr.f32.mxu0 %v2328_v55  ;;  %6117 = vrcp.f32 %v2171_v0  ;;  %v2987_v55 = vsub.f32 %v2948_v48, %v2972_v50 }
 0x35e   : >> { %5132 = vmatprep.mubr.f32.mxu1 %v2330_v56  ;;  %6119 = vrcp.f32 %v2170_v2  ;;  %v2959_v56 = vld [vmem:[%s7489_s22 + $0x8] sm:$0xff] }
 0x360   : >> { %v2334_v58 = vpop.f32.mrb[16].mxu0 }
 0x361   : >> { %v2336_v53 = vpop.f32.mrb[17].mxu0  ;;  %5098 = vmatmul.mubr.f32.vlgmr.msra.gmra.mrb[24].mxu0 %v2334_v58  ;;  %v2934_v58 = vld [vmem:[%s7484_s2] sm:$0xff] }
 0x362   : >> { %5675 = vmatpush3.bf16.msra.mxu0 %v7388_v8  ;;  %5133 = vmatmul.mubr.f32.vlgmr.msra.gmra.mrb[6].mxu1 %v2336_v53 }
 0x363   : >> { %5707 = vmatpush3.bf16.msra.mxu1 %v7388_v8  ;;  %5677 = vmatprep.subr.bf16.mxu0 %v7390_v10 }
 0x364   : >> { %5709 = vmatprep.subr.bf16.mxu1 %v7390_v10  ;;  %v2405_v59 = vpop.f32.mrb[18].mxu0 }
 0x365   : >> { %v2407_v61 = vpop.f32.mrb[19].mxu0  ;;  %5167 = vmatprep.mubr.f32.mxu0 %v2405_v59 }
 0x366   : >> { %5679 = vmatpush3.bf16.msra.mxu0 %v7390_v10  ;;  %5202 = vmatprep.mubr.f32.mxu1 %v2407_v61  ;;  %v2939_v61 = vld [vmem:[%s7484_s2 + $0x28] sm:$0xff] }
 0x367   : >> { %5711 = vmatpush3.bf16.msra.mxu1 %v7390_v10  ;;  %5681 = vmatprep.subr.bf16.mxu0 %v7398_v52  ;;  %v6118_v18 = vpop.eup %6117 }
 0x368   : >> { %5713 = vmatprep.subr.bf16.mxu1 %v7398_v52  ;;  %v7458_v62 = vpop.f32.mrb[20].mxu0  ;;  %v6120_v26 = vpop.eup %6119 }
 0x369   : >> { %v7462_v63 = vpop.f32.mrb[21].mxu0 }
 0x36a   : >> { %5683 = vmatpush3.bf16.msra.mxu0 %v7398_v52 }
 0x36b   : >> { %5715 = vmatpush3.bf16.msra.mxu1 %v7398_v52  ;;  %5685 = vmatprep.subr.bf16.mxu0 %v7404_v13 }
 0x36c   : >> { %5717 = vmatprep.subr.bf16.mxu1 %v7404_v13  ;;  %v7471_v3 = vpop.f32.mrb[22].mxu0 }
 0x36d   : >> { %v7473_v54 = vpop.f32.mrb[23].mxu0 }
 0x36e   : >> { %5687 = vmatpush3.bf16.msra.mxu0 %v7404_v13 }
 0x36f   : >> { %5719 = vmatpush3.bf16.msra.mxu1 %v7404_v13  ;;  %5689 = vmatprep.subr.bf16.mxu0 %v7410_v16 }
 0x370   : >> { %5721 = vmatprep.subr.bf16.mxu1 %v7410_v16 }
 0x372   : >> { %5691 = vmatpush3.bf16.msra.mxu0 %v7410_v16 }
 0x373   : >> { %5723 = vmatpush3.bf16.msra.mxu1 %v7410_v16  ;;  %5693 = vmatprep.subr.bf16.mxu0 %v7416_v19 }
 0x374   : >> { %5725 = vmatprep.subr.bf16.mxu1 %v7416_v19 }
 0x375   : >> { %v5055_v57 = vpop.f32.mrb[4].mxu1 }
 0x376   : >> { %v2153_v28 = vsub.f32 %v5055_v57, %v2151_v4  ;;  %5695 = vmatpush3.bf16.msra.mxu0 %v7416_v19  ;;  %v2139_v12 = vpop.f32.mrb[5].mxu1  ;;  %v2969_v4 = vld [vmem:[%s7489_s22 + $0x58] sm:$0xff]  ;;  %v2968_v57 = vld [vmem:[%s7489_s22 + $0x50] sm:$0xff] }
 0x377   : >> { %v2152_v1 = vsub.f32 %v2139_v12, %v2150_v6  ;;  %5727 = vmatpush3.bf16.msra.mxu1 %v7416_v19  ;;  %5697 = vmatprep.subr.bf16.mxu0 %v7424_v22  ;;  %v2944_v6 = vld [vmem:[%s7484_s2 + $0x50] sm:$0xff] }
 0x378   : >> { %v2167_v11 = vmul.f32 %v2153_v28, %v2153_v28  ;;  %5729 = vmatprep.subr.bf16.mxu1 %v7424_v22  ;;  %v2983_v60 = vsub.f32 %v2944_v6, %v2968_v57  ;;  %v3230_v28 = vld [vmem:[#allocation8 + $0x118] sm:$0xff]  ;;  %v3231_v12 = vld [vmem:[#allocation8 + $0x120] sm:$0xff] }
 0x379   : >> { %v2166_v20 = vmul.f32 %v2152_v1, %v2152_v1  ;;  %v3232_v1 = vld [vmem:[#allocation8 + $0x128] sm:$0xff] }
 0x37a   : >> { %5699 = vmatpush3.bf16.msra.mxu0 %v7424_v22  ;;  %v2175_v27 = vmul.f32 %v6118_v18, %v2167_v11  ;;  %v3233_v11 = vld [vmem:[#allocation8 + $0x130] sm:$0xff]  ;;  %v3236_v18 = vld [vmem:[#allocation8 + $0x148] sm:$0xff] }
 0x37b   : >> { %5731 = vmatpush3.bf16.msra.mxu1 %v7424_v22  ;;  %5701 = vmatprep.subr.bf16.mxu0 %v7430_v25  ;;  %v2174_v29 = vmul.f32 %v6120_v26, %v2166_v20  ;;  %v7575_v15 = vpack.c.bf16 %v3234_v14, %v3233_v11  ;;  %v7581_v20 = vpack.c.bf16 %v3236_v18, %v3235_v17  ;;  %v3239_v26 = vld [vmem:[#allocation8 + $0x160] sm:$0xff] }
 0x37c   : >> { %5733 = vmatprep.subr.bf16.mxu1 %v7430_v25 }
 0x37d   : >> { %v2176_v33 = vadd.f32 %v2175_v27, %v2174_v29  ;;  %v3240_v27 = vld [vmem:[#allocation8 + $0x168] sm:$0xff] }
 0x37e   : >> { %5703 = vmatpush3.bf16.msra.mxu0 %v7430_v25  ;;  %v7595_v29 = vpack.c.bf16 %v3240_v27, %v3239_v26 }
 0x37f   : >> { %5735 = vmatpush3.bf16.msra.mxu1 %v7430_v25  ;;  %2177 = vadd.xlane.f32.xlu0 %v2176_v33 }
 0x380   : >> { %5737 = vmatprep.subr.bf16.mxu0 %v7388_v8  ;;  %5773 = vmatprep.subr.bf16.mxu1 %v5772_v30  ;;  %v3241_v30 = vld [vmem:[#allocation8 + $0x170] sm:$0xff] }
 0x381   : >> { %5168 = vmatmul.mubr.f32.vlgmr.msra.gmra.mrb[26].mxu0 %v7458_v62  ;;  %v2958_v62 = vld [vmem:[%s7489_s22] sm:$0xff]  ;;  %v7601_v32 = vpack.c.bf16 %v3242_v31, %v3241_v30 }
 0x382   : >> { %5203 = vmatmul.mubr.f32.vlgmr.msra.gmra.mrb[8].mxu1 %v7462_v63  ;;  %5739 = vmatpush3.bf16.msra.mxu0 %v7388_v8  ;;  %v2990_v8 = vld [vmem:[#allocation9 + $0x28] sm:$0xff]  ;;  %v2973_v63 = vsub.f32 %v2934_v58, %v2958_v62 }
 0x383   : >> { %5741 = vmatprep.subr.bf16.mxu0 %v7390_v10  ;;  %5237 = vmatprep.mubr.f32.mxu0 %v7473_v54  ;;  %v2945_v54 = vld [vmem:[%s7484_s2 + $0x58] sm:$0xff] }
 0x384   : >> { %5775 = vmatpush1.bf16.msra.mxu1 %v5774_v40  ;;  %3138 = vmatprep.mubr.f32.mxu1 %v6420_v49  ;;  %v2984_v5 = vsub.f32 %v2945_v54, %v2969_v4 }
 0x385   : >> { %3078 = vmatprep.subr.mxu1 %v2986_v41 }
 0x386   : >> { %5743 = vmatpush3.bf16.msra.mxu0 %v7390_v10  ;;  %v2935_v10 = vld [vmem:[%s7484_s2 + $0x8] sm:$0xff] }
 0x387   : >> { %5745 = vmatprep.subr.bf16.mxu0 %v7398_v52  ;;  %v2974_v53 = vsub.f32 %v2935_v10, %v2959_v56 }
 0x388   : >> { %3079 = vmatpush1.msra.mxu1 %v2985_v46 }
 0x389   : >> { %4572 = vmatmul.mubr.msk.f32.vlgmr.msra.gmra.mrb[10].mxu1 %vm1521_vm0, %v2989_v51  ;;  %5777 = vmatprep.subr.bf16.mxu1 %v5776_v47 }
 0x38a   : >> { %5747 = vmatpush3.bf16.msra.mxu0 %v7398_v52  ;;  %3144 = vmatprep.mubr.f32.mxu1 %v6420_v49  ;;  %v2940_v52 = vld [vmem:[%s7484_s2 + $0x30] sm:$0xff] }
 0x38b   : >> { %5749 = vmatprep.subr.bf16.mxu0 %v7404_v13  ;;  %5779 = vmatpush3.bf16.msra.mxu1 %v5776_v47 }
 0x38c   : >> { %5244 = vmatprep.subr.mxu1 %v2987_v55 }
 0x38d   : >> { %4573 = vmatmul.mubr.msk.f32.gmra.mrb[12].mxu1 %vm1521_vm0, %v2990_v8 }
 0x38e   : >> { %5751 = vmatpush3.bf16.msra.mxu0 %v7404_v13  ;;  %5246 = vmatprep.mubr.msk.f32.mxu1 %vm1521_vm0, %v2989_v51  ;;  %v2964_v13 = vld [vmem:[%s7489_s22 + $0x30] sm:$0xff] }
 0x38f   : >> { %5753 = vmatprep.subr.bf16.mxu0 %v7410_v16  ;;  %5245 = vmatpush3.msra.mxu1 %v2987_v55  ;;  %v2979_v59 = vsub.f32 %v2940_v52, %v2964_v13 }
 0x391   : >> { %5247 = vmatmul.mubr.msk.f32.vlgmr.msra.gmra.mrb[14].mxu1 %vm1521_vm0, %v2990_v8  ;;  %v5768_v2 = vpack.c.bf16 %v2979_v59, %v2974_v53 }
 0x392   : >> { %5755 = vmatpush3.bf16.msra.mxu0 %v7410_v16  ;;  %v2963_v16 = vld [vmem:[%s7489_s22 + $0x28] sm:$0xff] }
 0x393   : >> { %5757 = vmatprep.subr.bf16.mxu0 %v7416_v19  ;;  %v2978_v0 = vsub.f32 %v2939_v61, %v2963_v16 }
 0x396   : >> { %5759 = vmatpush3.bf16.msra.mxu0 %v7416_v19  ;;  %v5770_v19 = vpack.c.bf16 %v2978_v0, %v2973_v63 }
 0x397   : >> { %5761 = vmatprep.subr.bf16.mxu0 %v7424_v22 }
 0x39a   : >> { %5763 = vmatpush3.bf16.msra.mxu0 %v7424_v22  ;;  %v3227_v22 = vld [vmem:[#allocation8 + $0x100] sm:$0xff] }
 0x39b   : >> { %5765 = vmatprep.subr.bf16.mxu0 %v7430_v25 }
 0x39e   : >> { %5767 = vmatpush3.bf16.msra.mxu0 %v7430_v25  ;;  %v3228_v25 = vld [vmem:[#allocation8 + $0x108] sm:$0xff] }
 0x39f   : >> { %5769 = vmatprep.subr.bf16.mxu0 %v5768_v2  ;;  %v7559_v7 = vpack.c.bf16 %v3228_v25, %v3227_v22 }
 0x3a1   : >> { %5238 = vmatmul.mubr.f32.vlgmr.msra.gmra.mrb[28].mxu0 %v7471_v3  ;;  %5781 = vmatprep.subr.bf16.mxu1 %v7559_v7  ;;  %v7563_v3 = vpack.c.bf16 %v3230_v28, %v3229_v9 }
 0x3a2   : >> { %5771 = vmatpush1.bf16.msra.mxu0 %v5770_v19  ;;  %3061 = vmatprep.mubr.f32.mxu0 %v6420_v49 }
 0x3a3   : >> { %3001 = vmatprep.subr.mxu0 %v2984_v5  ;;  %5783 = vmatpush3.bf16.msra.mxu1 %v7559_v7 }
 0x3a4   : >> { %5785 = vmatprep.subr.bf16.mxu1 %v7563_v3 }
 0x3a6   : >> { %3002 = vmatpush1.msra.mxu0 %v2983_v60 }
 0x3a7   : >> { %4570 = vmatmul.mubr.msk.f32.vlgmr.msra.gmra.mrb[30].mxu0 %vm1521_vm0, %v2989_v51  ;;  %5813 = vmatprep.subr.bf16.mxu0 %v7559_v7 }
 0x3a8   : >> { %3067 = vmatprep.mubr.f32.mxu0 %v6420_v49  ;;  %5815 = vmatpush3.bf16.msra.mxu0 %v7559_v7  ;;  %v7569_v49 = vpack.c.bf16 %v3232_v1, %v3231_v12 }
 0x3a9   : >> { %5817 = vmatprep.subr.bf16.mxu0 %v7563_v3  ;;  %5787 = vmatpush3.bf16.msra.mxu1 %v7563_v3 }
 0x3aa   : >> { %5789 = vmatprep.subr.bf16.mxu1 %v7569_v49 }
 0x3ab   : >> { %4571 = vmatmul.mubr.msk.f32.gmra.mrb[32].mxu0 %vm1521_vm0, %v2990_v8 }
 0x3ac   : >> { %5819 = vmatpush3.bf16.msra.mxu0 %v7563_v3 }
 0x3ad   : >> { %5821 = vmatprep.subr.bf16.mxu0 %v7569_v49  ;;  %5791 = vmatpush3.bf16.msra.mxu1 %v7569_v49 }
 0x3ae   : >> { %5793 = vmatprep.subr.bf16.mxu1 %v7575_v15 }
 0x3b0   : >> { %5823 = vmatpush3.bf16.msra.mxu0 %v7569_v49 }
 0x3b1   : >> { %5825 = vmatprep.subr.bf16.mxu0 %v7575_v15  ;;  %5795 = vmatpush3.bf16.msra.mxu1 %v7575_v15 }
 0x3b2   : >> { %5797 = vmatprep.subr.bf16.mxu1 %v7581_v20 }
 0x3b4   : >> { %5827 = vmatpush3.bf16.msra.mxu0 %v7575_v15 }
 0x3b5   : >> { %5829 = vmatprep.subr.bf16.mxu0 %v7581_v20  ;;  %5799 = vmatpush3.bf16.msra.mxu1 %v7581_v20 }
 0x3b6   : >> { %5801 = vmatprep.subr.bf16.mxu1 %v7587_v24 }
 0x3b8   : >> { %5831 = vmatpush3.bf16.msra.mxu0 %v7581_v20 }
 0x3b9   : >> { %5833 = vmatprep.subr.bf16.mxu0 %v7587_v24  ;;  %5803 = vmatpush3.bf16.msra.mxu1 %v7587_v24 }
 0x3ba   : >> { %5805 = vmatprep.subr.bf16.mxu1 %v7595_v29 }
 0x3bc   : >> { %5835 = vmatpush3.bf16.msra.mxu0 %v7587_v24 }
 0x3bd   : >> { %5837 = vmatprep.subr.bf16.mxu0 %v7595_v29  ;;  %5807 = vmatpush3.bf16.msra.mxu1 %v7595_v29 }
 0x3be   : >> { %5809 = vmatprep.subr.bf16.mxu1 %v7601_v32 }
 0x3c0   : >> { %5839 = vmatpush3.bf16.msra.mxu0 %v7595_v29 }
 0x3c1   : >> { %5841 = vmatprep.subr.bf16.mxu0 %v7601_v32  ;;  %5811 = vmatpush3.bf16.msra.mxu1 %v7601_v32 }
 0x3c2   : >> { %5845 = vmatprep.subr.bf16.mxu1 %v7559_v7 }
 0x3c4   : >> { %5843 = vmatpush3.bf16.msra.mxu0 %v7601_v32 }
 0x3c5   : >> { %5877 = vmatprep.subr.bf16.mxu0 %v7559_v7 }
 0x40c   : >> { %v2178_v33 = vpop.xlane.xlu0 %2177 }
 0x40d   : >> { %v2179_v34 = vrot.slane %v2178_v33, 4 }
 0x40f   : >> { %v2180_v35 = vadd.f32 %v2179_v34, %v2178_v33 }
 0x411   : >> { %v2181_v36 = vrot.slane %v2180_v35, 2 }
 0x413   : >> { %v2182_v37 = vadd.f32 %v2181_v36, %v2180_v35 }
 0x415   : >> { %v2183_v38 = vrot.slane %v2182_v37, 1 }
 0x417   : >> { %v2184_v39 = vadd.f32 %v2183_v38, %v2182_v37 }
 0x419   : >> { %5947 = vpush %v2184_v39 }
 0x434   : >> { %v5099_v40 = vpop.f32.mrb[24].mxu0 }
 0x435   : >> { %v2574_v41 = vpop.f32.mrb[25].mxu0  ;;  %v5134_v42 = vpop.f32.mrb[6].mxu1  ;;  %v2890_v46 = vmul.f32 %v5099_v40, %v5099_v40 }
 0x436   : >> { %v2884_v43 = vmul.f32 %v5134_v42, %v5099_v40  ;;  %v2649_v44 = vpop.f32.mrb[7].mxu1  ;;  %v2889_v47 = vmul.f32 %v2574_v41, %v2574_v41  ;;  %v2896_v48 = vmul.f32 %v5134_v42, %v5134_v42 }
 0x437   : >> { %v2883_v45 = vmul.f32 %v2649_v44, %v2574_v41  ;;  %v2895_v50 = vmul.f32 %v2649_v44, %v2649_v44  ;;  %v2892_v51 = vmul.f32 0.0013717421, %v2890_v46 }
 0x438   : >> { %v2891_v55 = vmul.f32 0.0013717421, %v2889_v47  ;;  %v2898_v8 = vmul.f32 0.0013717421, %v2896_v48  ;;  %v2886_v60 = vmul.f32 0.0013717421, %v2884_v43 }
 0x439   : >> { %v2897_v52 = vmul.f32 0.0013717421, %v2895_v50  ;;  %v2885_v22 = vmul.f32 0.0013717421, %v2883_v45 }
 0x44a   : >> { %s5948_s10 = spop %5947 }
 0x44b   : >> { %s7852_s10 = smov (!%p1455_p4, %s5948_s10), 0.0 }
 0x44c   : >> { %s7613_s6 = sadd.f32 %s6407_s6, %s7852_s10  }
 0x44e   : >> { %s7807_s28 = smov %s7613_s6 }
 0x454   : >> { %v5169_v10 = vpop.f32.mrb[26].mxu0 }
 0x455   : >> { %v2894_v56 = vsub.f32 %v5169_v10, %v2892_v51  ;;  %v2724_v13 = vpop.f32.mrb[27].mxu0  ;;  %v5204_v58 = vpop.f32.mrb[8].mxu1 }
 0x456   : >> { %v2893_v53 = vsub.f32 %v2724_v13, %v2891_v55  ;;  %v2900_v59 = vsub.f32 %v5204_v58, %v2898_v8  ;;  %v2799_v61 = vpop.f32.mrb[9].mxu1 }
 0x457   : >> { %v2899_v62 = vsub.f32 %v2799_v61, %v2897_v52 }
 0x458   : >> { %v2904_v16 = vmul.f32 %v2900_v59, %v2894_v56 }
 0x459   : >> { %v2903_v63 = vmul.f32 %v2899_v62, %v2893_v53 }
 0x45a   : >> { %v2906_v6 = vadd.f32 0.001, %v2904_v16 }
 0x45b   : >> { %v2905_v57 = vadd.f32 0.001, %v2903_v63 }
 0x45c   : >> { %v3140_v0 = vpop.f32.mrb[10].mxu1  ;;  %6121 = vrcp.f32 %v2906_v6 }
 0x45d   : >> { %v3142_v2 = vpop.f32.mrb[11].mxu1  ;;  %6123 = vrcp.f32 %v2905_v57 }
 0x460   : >> { %v3146_v54 = vpop.f32.mrb[12].mxu1 }
 0x461   : >> { %v3148_v4 = vpop.f32.mrb[13].mxu1 }
 0x464   : >> { %v7615_v19 = vpop.f32.mrb[14].mxu1 }
 0x465   : >> { %v7617_v5 = vpop.f32.mrb[15].mxu1 }
 0x466   : >> { %v6122_v11 = vpop.eup %6121 }
 0x467   : >> { %v6124_v17 = vpop.eup %6123 }
 0x474   : >> { %v5239_v25 = vpop.f32.mrb[28].mxu0 }
 0x475   : >> { %v2888_v9 = vsub.f32 %v5239_v25, %v2886_v60  ;;  %v2874_v28 = vpop.f32.mrb[29].mxu0 }
 0x476   : >> { %v2887_v12 = vsub.f32 %v2874_v28, %v2885_v22 }
 0x477   : >> { %v2902_v1 = vmul.f32 %v2888_v9, %v2888_v9 }
 0x478   : >> { %v2901_v14 = vmul.f32 %v2887_v12, %v2887_v12 }
 0x479   : >> { %v2910_v18 = vmul.f32 %v6122_v11, %v2902_v1  ;;  %v3658_v1 = vlaneseq (%p1445_p9) }
 0x47a   : >> { %v2909_v21 = vmul.f32 %v6124_v17, %v2901_v14  ;;  %v3063_v23 = vpop.f32.mrb[30].mxu0  ;;  %v3661_v14 = vstv (%p1445_p9), %s7807_s28 }
 0x47b   : >> { %v3065_v26 = vpop.f32.mrb[31].mxu0  ;;  %5281 = vmatprep.mubr.f32.mxu1 %v3063_v23  ;;  %v3659_v11 = vshrl.u32 (%p1445_p9), %v3658_v1, 7 }
 0x47c   : >> { %5316 = vmatprep.mubr.f32.mxu0 %v3065_v26  ;;  %v2911_v27 = vadd.f32 %v2910_v18, %v2909_v21 }
 0x47d   : > { %vm3660_vm1 = vcmp.eq.s32.totalorder (%p1445_p9), %v3659_v11, 0  ;;  %vm3664_vm2 = vcmp.eq.s32.totalorder (%p1445_p9), %v3659_v11, 1  ;;  %vm3668_vm3 = vcmp.eq.s32.totalorder (%p1445_p9), %v3659_v11, 2 }
 0x47e   : >> { %v3069_v30 = vpop.f32.mrb[32].mxu0  ;;  %2912 = vadd.xlane.f32.xlu0 %v2911_v27  ;;  %v3662_v21 = vsel (%p1445_p9), %vm3660_vm1, %v3661_v14, 0.0 }
 0x47f   : >> { %v3071_v31 = vpop.f32.mrb[33].mxu0  ;;  %5282 = vmatmul.mubr.f32.vlgmr.msra.gmra.mrb[16].mxu1 %v3069_v30  ;;  %v3672_v30 = vld [vmem:[%s6756_s5] sm:$0xff] (%p1445_p9) }
 0x480   : >> { %5847 = vmatpush3.bf16.msra.mxu1 %v7559_v7  ;;  %5317 = vmatmul.mubr.f32.vlgmr.msra.gmra.mrb[34].mxu0 %v3071_v31 }
 0x481   : >> { %5879 = vmatpush3.bf16.msra.mxu0 %v7559_v7  ;;  %5849 = vmatprep.subr.bf16.mxu1 %v7563_v3 }
 0x482   : >> { %5881 = vmatprep.subr.bf16.mxu0 %v7563_v3  ;;  %5351 = vmatprep.mubr.f32.mxu1 %v3140_v0 }
 0x483   : >> { %5386 = vmatprep.mubr.f32.mxu0 %v3142_v2 }
 0x484   : >> { %5851 = vmatpush3.bf16.msra.mxu1 %v7563_v3 }
 0x485   : >> { %5883 = vmatpush3.bf16.msra.mxu0 %v7563_v3  ;;  %5853 = vmatprep.subr.bf16.mxu1 %v7569_v49 }
 0x486   : >> { %5885 = vmatprep.subr.bf16.mxu0 %v7569_v49 }
 0x488   : >> { %5855 = vmatpush3.bf16.msra.mxu1 %v7569_v49 }
 0x489   : >> { %5887 = vmatpush3.bf16.msra.mxu0 %v7569_v49  ;;  %5857 = vmatprep.subr.bf16.mxu1 %v7575_v15 }
 0x48a   : >> { %5889 = vmatprep.subr.bf16.mxu0 %v7575_v15 }
 0x48c   : >> { %5859 = vmatpush3.bf16.msra.mxu1 %v7575_v15 }
 0x48d   : >> { %5891 = vmatpush3.bf16.msra.mxu0 %v7575_v15  ;;  %5861 = vmatprep.subr.bf16.mxu1 %v7581_v20 }
 0x48e   : >> { %5893 = vmatprep.subr.bf16.mxu0 %v7581_v20 }
 0x490   : >> { %5863 = vmatpush3.bf16.msra.mxu1 %v7581_v20 }
 0x491   : >> { %5895 = vmatpush3.bf16.msra.mxu0 %v7581_v20  ;;  %5865 = vmatprep.subr.bf16.mxu1 %v7587_v24 }
 0x492   : >> { %5897 = vmatprep.subr.bf16.mxu0 %v7587_v24 }
 0x494   : >> { %5867 = vmatpush3.bf16.msra.mxu1 %v7587_v24 }
 0x495   : >> { %5899 = vmatpush3.bf16.msra.mxu0 %v7587_v24  ;;  %5869 = vmatprep.subr.bf16.mxu1 %v7595_v29 }
 0x496   : >> { %5901 = vmatprep.subr.bf16.mxu0 %v7595_v29 }
 0x498   : >> { %5871 = vmatpush3.bf16.msra.mxu1 %v7595_v29 }
 0x499   : >> { %5903 = vmatpush3.bf16.msra.mxu0 %v7595_v29  ;;  %5873 = vmatprep.subr.bf16.mxu1 %v7601_v32 }
 0x49a   : >> { %5905 = vmatprep.subr.bf16.mxu0 %v7601_v32 }
 0x49c   : >> { %5875 = vmatpush3.bf16.msra.mxu1 %v7601_v32 }
 0x49d   : >> { %5907 = vmatpush3.bf16.msra.mxu0 %v7601_v32  ;;  %5909 = vmatprep.subr.bf16.mxu1 %v7559_v7 }
 0x49f   : >> { %5352 = vmatmul.mubr.f32.vlgmr.msra.gmra.mrb[18].mxu1 %v3146_v54 }
 0x4a0   : >> { %5387 = vmatmul.mubr.f32.vlgmr.msra.gmra.mrb[36].mxu0 %v3148_v4  ;;  %5911 = vmatpush3.bf16.msra.mxu1 %v7559_v7 }
 0x4a1   : >> { %5913 = vmatprep.subr.bf16.mxu1 %v7563_v3  ;;  %5421 = vmatprep.mubr.f32.mxu1 %v7617_v5 }
 0x4a4   : >> { %5915 = vmatpush3.bf16.msra.mxu1 %v7563_v3 }
 0x4a5   : >> { %5917 = vmatprep.subr.bf16.mxu1 %v7569_v49 }
 0x4a8   : >> { %5919 = vmatpush3.bf16.msra.mxu1 %v7569_v49 }
 0x4a9   : >> { %5921 = vmatprep.subr.bf16.mxu1 %v7575_v15 }
 0x4ac   : >> { %5923 = vmatpush3.bf16.msra.mxu1 %v7575_v15 }
 0x4ad   : >> { %5925 = vmatprep.subr.bf16.mxu1 %v7581_v20 }
 0x4b0   : >> { %5927 = vmatpush3.bf16.msra.mxu1 %v7581_v20 }
 0x4b1   : >> { %5929 = vmatprep.subr.bf16.mxu1 %v7587_v24 }
 0x4b4   : >> { %5931 = vmatpush3.bf16.msra.mxu1 %v7587_v24 }
 0x4b5   : >> { %5933 = vmatprep.subr.bf16.mxu1 %v7595_v29 }
 0x4b8   : >> { %5935 = vmatpush3.bf16.msra.mxu1 %v7595_v29 }
 0x4b9   : >> { %5937 = vmatprep.subr.bf16.mxu1 %v7601_v32 }
 0x4bc   : >> { %5939 = vmatpush3.bf16.msra.mxu1 %v7601_v32 }
 0x4bf   : >> { %5422 = vmatmul.mubr.f32.vlgmr.msra.gmra.mrb[20].mxu1 %v7615_v19 }
 0x50b   : >> { %v2913_v7 = vpop.xlane.xlu0 %2912 }
 0x50c   : >> { %v2914_v3 = vrot.slane %v2913_v7, 4 }
 0x50e   : >> { %v2915_v49 = vadd.f32 %v2914_v3, %v2913_v7 }
 0x510   : >> { %v2916_v15 = vrot.slane %v2915_v49, 2 }
 0x512   : >> { %v2917_v20 = vadd.f32 %v2916_v15, %v2915_v49 }
 0x514   : >> { %v2918_v33 = vrot.slane %v2917_v20, 1 }
 0x516   : >> { %v2919_v34 = vadd.f32 %v2918_v33, %v2917_v20 }
 0x518   : >> { %5949 = vpush %v2919_v34 }
 0x549   : >> { %s5950_s6 = spop %5949 }
 0x54a   : >> { %s7854_s6 = smov (!%p1455_p4, %s5950_s6), 0.0 }
 0x54b   : >> { %s7670_s27 = sadd.f32 %s6403_s27, %s7854_s6   ;;  %s7811_s6 = smov %s7807_s28 }
 0x54d   : >> { %s7808_s15 = smov %s7670_s27 }
 0x54e   : > { %v3665_v17 = vstv (%p1445_p9), %s7808_s15 }
 0x54f   : > { %v3666_v23 = vsel (%p1445_p9), %vm3664_vm2, %v3665_v17, 0.0 }
 0x550   : > { %v3667_v27 = vadd.f32 (%p1445_p9), %v3666_v23, %v3662_v21 }
 0x552   : >> { %v5283_v24 = vpop.f32.mrb[16].mxu1 }
 0x553   : >> { %v3309_v29 = vpop.f32.mrb[17].mxu1  ;;  %v5318_v35 = vpop.f32.mrb[34].mxu0  ;;  %v3625_v38 = vmul.f32 %v5283_v24, %v5283_v24 }
 0x554   : >> { %v3619_v36 = vmul.f32 %v5318_v35, %v5283_v24  ;;  %v3384_v32 = vpop.f32.mrb[35].mxu0  ;;  %v3624_v39 = vmul.f32 %v3309_v29, %v3309_v29  ;;  %v3631_v40 = vmul.f32 %v5318_v35, %v5318_v35 }
 0x555   : >> { %v3618_v37 = vmul.f32 %v3384_v32, %v3309_v29  ;;  %v3630_v41 = vmul.f32 %v3384_v32, %v3384_v32  ;;  %v3627_v42 = vmul.f32 0.002915452, %v3625_v38 }
 0x556   : >> { %v3626_v43 = vmul.f32 0.002915452, %v3624_v39  ;;  %v3633_v44 = vmul.f32 0.002915452, %v3631_v40  ;;  %v3621_v53 = vmul.f32 0.002915452, %v3619_v36 }
 0x557   : >> { %v3632_v46 = vmul.f32 0.002915452, %v3630_v41  ;;  %v3620_v59 = vmul.f32 0.002915452, %v3618_v37 }
 0x572   : >> { %v5353_v45 = vpop.f32.mrb[18].mxu1 }
 0x573   : >> { %v3629_v47 = vsub.f32 %v5353_v45, %v3627_v42  ;;  %v3459_v48 = vpop.f32.mrb[19].mxu1  ;;  %v5388_v50 = vpop.f32.mrb[36].mxu0 }
 0x574   : >> { %v3628_v51 = vsub.f32 %v3459_v48, %v3626_v43  ;;  %v3635_v55 = vsub.f32 %v5388_v50, %v3633_v44  ;;  %v3534_v8 = vpop.f32.mrb[37].mxu0 }
 0x575   : >> { %v3634_v10 = vsub.f32 %v3534_v8, %v3632_v46 }
 0x576   : >> { %v3639_v52 = vmul.f32 %v3635_v55, %v3629_v47 }
 0x577   : >> { %v3638_v56 = vmul.f32 %v3634_v10, %v3628_v51 }
 0x578   : >> { %v3641_v13 = vadd.f32 0.001, %v3639_v52 }
 0x579   : >> { %v3640_v58 = vadd.f32 0.001, %v3638_v56 }
 0x57a   : >> { %6125 = vrcp.f32 %v3641_v13 }
 0x57b   : >> { %6127 = vrcp.f32 %v3640_v58 }
 0x584   : >> { %v6126_v2 = vpop.eup %6125 }
 0x585   : >> { %v6128_v4 = vpop.eup %6127 }
 0x592   : >> { %v5423_v61 = vpop.f32.mrb[20].mxu1 }
 0x593   : >> { %v3623_v62 = vsub.f32 %v5423_v61, %v3621_v53  ;;  %v3609_v16 = vpop.f32.mrb[21].mxu1 }
 0x594   : >> { %v3622_v63 = vsub.f32 %v3609_v16, %v3620_v59 }
 0x595   : >> { %v3637_v0 = vmul.f32 %v3623_v62, %v3623_v62 }
 0x596   : >> { %v3636_v54 = vmul.f32 %v3622_v63, %v3622_v63 }
 0x597   : >> { %v3645_v19 = vmul.f32 %v6126_v2, %v3637_v0 }
 0x598   : >> { %v3644_v5 = vmul.f32 %v6128_v4, %v3636_v54 }
 0x59a   : >> { %v3646_v6 = vadd.f32 %v3645_v19, %v3644_v5 }
 0x59c   : >> { %3647 = vadd.xlane.f32.xlu1 %v3646_v6 }
 0x629   : >> { %v3648_v57 = vpop.xlane.xlu1 %3647 }
 0x62a   : >> { %v3649_v60 = vrot.slane %v3648_v57, 4 }
 0x62c   : >> { %v3650_v22 = vadd.f32 %v3649_v60, %v3648_v57 }
 0x62e   : >> { %v3651_v25 = vrot.slane %v3650_v22, 2 }
 0x630   : >> { %v3652_v9 = vadd.f32 %v3651_v25, %v3650_v22 }
 0x632   : >> { %v3653_v28 = vrot.slane %v3652_v9, 1 }
 0x634   : >> { %v3654_v12 = vadd.f32 %v3653_v28, %v3652_v9 }
 0x636   : >> { %5951 = vpush %v3654_v12 }
 0x665   : > { %1447 = sbr.rel (!%p1445_p9) target bundleno = 365 (0x16d), region = 176 }
 0x667   : >> { %s5952_s27 = spop %5951 }
 0x668   : >> { %s7856_s27 = smov (!%p1455_p4, %s5952_s27), 0.0 }
 0x669   : >> { %s3657_s18 = sadd.f32 %s6399_s23, %s7856_s27   ;;  %s7810_s27 = smov %s7808_s15 }
 0x66b   : >> { %s7809_s23 = smov %s3657_s18  ;;  %v3669_v18 = vstv (%p1445_p9), %s3657_s18 }
 0x66c   : > { %v3670_v26 = vsel %vm3668_vm3, %v3669_v18, 0.0 }
 0x66d   : > { %v3671_v31 = vadd.f32 %v3670_v26, %v3667_v27 }
 0x66f   : > { %v3673_v7 = vadd.f32 %v3672_v30, %v3671_v31 }
 0x671   : > { %3674 = vst [vmem:[%s6756_s5] sm:$0xff] %v3673_v7 }
 0x672 PF: > { %s7812_s14 = sld [smem:[#allocation19_spill]]  ;;  %s7813_s21 = sld [smem:[#allocation21_spill]] }
 0x673   : > { %s7814_s4 = sld [smem:[#allocation27_spill]]  ;;  %s3689_s3 = sshll.u32 %s6756_s5, 4  ;;  %s3690_s3 = int_to_ptr.vmem [resolvable:$true] %s3689_s3 }
 0x674   : > { %s3676_s26 = scalar_lea.sflag [#allocation5], %s304_s30  ;;  %s6245_s7 = scalar_lea.vmem %s3690_s3, 128 }
 0x675   : > { %p6246_p11 = scmp.ne.s32.totalorder %s3690_s3, %s6245_s7  ;;  %s6421_s0 = smov [#allocation11]  }
 0x676   : > { %s6249_s2 = sshll.u32 %s6421_s0, 4  ;;  %s6250_s2 = int_to_ptr.vmem [resolvable:$false] %s6249_s2 }
 0x677   : > { %s6251_s22 = scalar_lea.vmem %s6250_s2, 256  ;;  %p6252_p12 = scmp.lt.s32.totalorder %s3690_s3, %s6250_s2 }
 0x678   : > { %s4577_s23 = sshll.u32 %s7812_s14, 7  ;;  %p7815_p0 = scmp.ne.s32.totalorder %s7813_s21, 0 }
 0x679   : > { %s7694_s8 = scalar_lea.hbm %s7814_s4, %s4577_s23  ;;  %p6253_p2 = scmp.lt.s32.totalorder %s6251_s22, %s6245_s7 }
 0x67a   : > { %p6247_p5 = pnand %p6246_p11, %p7815_p0 }
 0x67b   : > { %p6254_p10 = por %p6253_p2, %p6252_p12 }
 0x67c   : > { %p6248_p8 = pneg %p6247_p5 }
 0x67e   : > { %p6255_p1 = pnand %p6254_p10, %p6248_p8 }
 0x680   : > { %6258 = shalt.err (!%p6255_p1)
}
 0x681   : > { %s6259_s30 = scalar_lea.hbm %s7694_s8, 128  ;;  %s6263_s28 = scalar_lea.hbm %s7814_s4, 256 }
 0x682   : > { %p6260_p7 = scmp.ne.s32.totalorder %s7694_s8, %s6259_s30  ;;  %p6264_p3 = scmp.lt.u32.totalorder %s7694_s8, %s7814_s4 }
 0x683   : > { %p6265_p4 = scmp.lt.u32.totalorder %s6263_s28, %s6259_s30  ;;  %p6267_p11 = scmp.lt.u32.totalorder %s6259_s30, %s7694_s8 }
 0x684   : > { %p6261_p13 = pnand %p6260_p7, %p7815_p0 }
 0x685   : > { %p6266_p9 = por %p6265_p4, %p6264_p3 }
 0x686   : > { %p6262_p6 = pneg %p6261_p13 }
 0x687   : > { %p6268_p5 = por %p6267_p11, %p6266_p9 }
 0x689   : > { %p6269_p8 = pnand %p6268_p5, %p6262_p6 }
 0x68b   : > { %6272 = shalt.err (!%p6269_p8)
}
 0x68c   : > { %5965 = dma.vmem_to_hbm [thread:$0]  (%p7815_p0), %s3690_s3, 128, %s7694_s8, %s3676_s26  }
 0x68d PF: > { %s7816_s27 = sld [smem:[#allocation17_spill]]  ;;  %s7817_s18 = sld [smem:[#allocation22_spill]] }
 0x68e   : > { %p5990_p12 = scmp.ge.s32.totalorder %s6395_s25, 2 }
 0x693   : > { %s3701_s14 = sand.u32 1, %s7816_s27   ;;  %p7818_p2 = scmp.ne.s32.totalorder %s7817_s18, 0 }
 0x694   : > { %s3702_s23 = scalar_lea.sflag [#allocation5], %s3701_s14 }
 0x695   : > { %p5982_p10 = pnand %p5990_p12, %p7818_p2 }
 0x697   : > { %6350 = dma.done.wait (!%p5982_p10), %s3702_s23, 128  }
 0x698   : > { %6352 = vsyncadd (!%p5982_p10), %s3702_s23, 4294967168  ;;  %s24_s25 = sadd.s32 1, %s6395_s25   ;;  %s7819_s21 = sld [smem:[#allocation20_spill]] }
 0x699   : > { %p21_p1 = scmp.ge.s32.totalorder %s24_s25, 6   ;;  %s7820_s23 = sld [smem:[#allocation23_spill]] }
 0x69a   : > { %s7821_s15 = smov %s6359_s16  ;;  %s7822_s16 = smov %s6363_s17 }
 0x69b   : > { %s7823_s17 = smov %s6623_s12  ;;  %s7824_s18 = smov %s6371_s19 }
 0x69c   : > { %s7825_s19 = smov %s6375_s20  ;;  %s7826_s20 = smov %s6626_s13 }
 0x69d   : > { %s7827_s22 = smov %s6391_s24  ;;  %s7828_s24 = smov %s7834_s9 }
 0x69e   :  { %23 = sbr.rel (!%p21_p1) target bundleno = 17 (0x11), region = 187 }
 0x6a5   :  { %3707 = vsyncpa [#allocation4], 1 }
 0x6a6   :  { %3709 = vsyncpa [#allocation4 + $0x1], 1 }
 0x6a7   :  { %3710 = vsyncpa [#allocation7], 1 }
 0x6a8   :  { %3712 = vsyncpa [#allocation7 + $0x1], 1 }
 0x6a9   :  { %3713 = vsyncpa [#allocation10], 1 }
 0x6aa   :  { %3714 = vsyncpa [#allocation5], 1 }
 0x6ab   :  { %3716 = vsyncpa [#allocation5 + $0x1], 1 }

</bundles_post_ra>
